<compile_context>
chip_gen: v7x
topology: tpu7x:2x2x1
jax: 0.10.0
libtpu: 0.0.40
codegen_flags: <defaults>
</compile_context>

<pallas_src>
import jax
import jax.numpy as jnp
from jax.experimental import pallas as pl
from jax.experimental.pallas import tpu as pltpu


def _mlp_kernel(x_ref, w1_ref, b1_ref, w2_ref, b2_ref, w3_ref, b3_ref, out_ref):
    # x block: (TB, 12288); all weights/biases are full (small) arrays in VMEM.
    x = x_ref[...]
    h1 = jnp.dot(x, w1_ref[...], preferred_element_type=jnp.float32)   # (TB, 64)
    h1 = jnp.maximum(h1 + b1_ref[...], 0.0)                            # ReLU
    h2 = jnp.dot(h1, w2_ref[...], preferred_element_type=jnp.float32)  # (TB, 32)
    h2 = jnp.maximum(h2 + b2_ref[...], 0.0)                            # ReLU
    out = jnp.dot(h2, w3_ref[...], preferred_element_type=jnp.float32)  # (TB, 6)
    out_ref[...] = (out + b3_ref[...]).astype(out_ref.dtype)


def _round_up(n, m):
    return ((n + m - 1) // m) * m


def mlp_classifier_forward(x_nchw, params, *, batch_tile=256,
                           compute_dtype=jnp.float32):
    """x_nchw: (B, 3, 64, 64). Returns logits (B, 6) float32.

    batch_tile: max rows per grid step (multiple of 8). 256 keeps the
    double-buffered x tile + resident weights well under 48 MiB VMEM on all
    of v5e / v6e / v7x.
    compute_dtype: dtype for x and w1 (the dominant HBM stream). bf16 halves
    HBM bytes; accumulation is always f32.
    """
    w1, b1, w2, b2, w3, b3 = params
    B = x_nchw.shape[0]
    x = x_nchw.reshape(B, -1)            # row-major flatten, same as torch .view
    D = x.shape[1]
    num_classes = w3.shape[1]

    # Batch tile: multiple of 8 (sublane), capped at batch_tile; pad B to a
    # multiple of the tile so every block is full (zero rows are discarded).
    tb = min(batch_tile, _round_up(B, 8))
    b_pad = _round_up(B, tb)
    if b_pad != B:
        x = jnp.pad(x, ((0, b_pad - B), (0, 0)))

    # Optional bandwidth optimization: cast only the big operands.
    x = x.astype(compute_dtype)
    w1c = w1.astype(compute_dtype)

    grid = (b_pad // tb,)

    in_specs = [
        pl.BlockSpec((tb, D), lambda i: (i, 0)),        # x: streamed per tile
        pl.BlockSpec(w1c.shape, lambda i: (0, 0)),      # weights/biases: resident
        pl.BlockSpec(b1.shape, lambda i: (0, 0)),
        pl.BlockSpec(w2.shape, lambda i: (0, 0)),
        pl.BlockSpec(b2.shape, lambda i: (0, 0)),
        pl.BlockSpec(w3.shape, lambda i: (0, 0)),
        pl.BlockSpec(b3.shape, lambda i: (0, 0)),
    ]
    out_spec = pl.BlockSpec((tb, num_classes), lambda i: (i, 0))

    param_bytes = sum(int(a.size) * a.dtype.itemsize
                      for a in (w1c, b1, w2, b2, w3, b3))
    cost = pl.CostEstimate(
        flops=2 * b_pad * (D * 64 + 64 * 32 + 32 * num_classes),
        transcendentals=0,
        bytes_accessed=int(x.size) * x.dtype.itemsize
        + param_bytes
        + b_pad * num_classes * 4,
    )

    out = pl.pallas_call(
        _mlp_kernel,
        out_shape=jax.ShapeDtypeStruct((b_pad, num_classes), jnp.float32),
        grid_spec=pltpu.PrefetchScalarGridSpec(
            num_scalar_prefetch=0,
            grid=grid,
            in_specs=in_specs,
            out_specs=out_spec,
        ),
        compiler_params=pltpu.CompilerParams(
            dimension_semantics=("parallel",),   # megacore-shard batch on v7x
            vmem_limit_bytes=48 << 20,           # safe on v7x's 64 MiB VMEM
        ),
        cost_estimate=cost,
    )(x, w1c, b1, w2, b2, w3, b3)

    return out[:B]


def init_params(key, input_size=64 * 64 * 3, num_classes=6):
    # Deterministic synthetic init (shapes match the torch module):
    #   linear1: 12288 -> 64, linear2: 64 -> 32, linear3: 32 -> 6
    k1, k2, k3 = jax.random.split(key, 3)
    w1 = jax.random.normal(k1, (input_size, 64), jnp.float32) * 0.01
    b1 = jnp.zeros((1, 64), jnp.float32)
    w2 = jax.random.normal(k2, (64, 32), jnp.float32) * 0.05
    b2 = jnp.zeros((1, 32), jnp.float32)
    w3 = jax.random.normal(k3, (32, num_classes), jnp.float32) * 0.05
    b3 = jnp.zeros((1, num_classes), jnp.float32)
    return (w1, b1, w2, b2, w3, b3)


def _reference_forward(x_nchw, params):
    w1, b1, w2, b2, w3, b3 = params
    x = x_nchw.reshape(x_nchw.shape[0], -1)
    h1 = jnp.maximum(x @ w1 + b1, 0.0)
    h2 = jnp.maximum(h1 @ w2 + b2, 0.0)
    return h2 @ w3 + b3


if __name__ == "__main__":
    key = jax.random.PRNGKey(0)
    kx, kp = jax.random.split(key)
    # Small batch; full input resolution implied by input_size=64*64*3 (NCHW).
    x = jax.random.normal(kx, (2, 3, 64, 64), jnp.float32)
    params = init_params(kp)

    ref = _reference_forward(x, params)

    # Default f32 path: tight tolerance vs pure-f32 reference.
    logits = mlp_classifier_forward(x, params)
    jax.block_until_ready(logits)
    assert logits.shape == (2, 6)
    assert jnp.allclose(logits, ref, atol=1e-4, rtol=1e-4), float(
        jnp.max(jnp.abs(logits - ref)))

    # bf16-stream path (halves HBM bytes of the dominant operand x/w1):
    # accumulation stays f32, so only a small numeric gap vs the reference.
    logits_bf16 = mlp_classifier_forward(x, params, compute_dtype=jnp.bfloat16)
    jax.block_until_ready(logits_bf16)
    assert logits_bf16.shape == (2, 6)
    assert jnp.allclose(logits_bf16, ref, atol=5e-2, rtol=5e-2), float(
        jnp.max(jnp.abs(logits_bf16 - ref)))

    print("KERNEL_OK")
</pallas_src>

<mosaic_0001>
module attributes {stable_mosaic.version = 11 : i64} {
  func.func @_mlp_kernel(%arg0: i32, %arg1: memref<8x12288xf32, #tpu.memory_space<vmem>>, %arg2: memref<12288x64xf32, #tpu.memory_space<vmem>>, %arg3: memref<1x64xf32, #tpu.memory_space<vmem>>, %arg4: memref<64x32xf32, #tpu.memory_space<vmem>>, %arg5: memref<1x32xf32, #tpu.memory_space<vmem>>, %arg6: memref<32x6xf32, #tpu.memory_space<vmem>>, %arg7: memref<1x6xf32, #tpu.memory_space<vmem>>, %arg8: memref<8x6xf32, #tpu.memory_space<vmem>>) attributes {dimension_semantics = [#tpu.dimension_semantics<parallel>], iteration_bounds = array<i64: 1>, scalar_prefetch = 0 : i64, scratch_operands = 0 : i64, tpu.core_type = #tpu.core_type<tc>, window_params = [{transform_indices = @transform_0, window_bounds = array<i64: 8, 12288>}, {pipeline_mode = #tpu.pipeline_mode<synchronous>, transform_indices = @transform_1, window_bounds = array<i64: 12288, 64>}, {pipeline_mode = #tpu.pipeline_mode<synchronous>, transform_indices = @transform_2, window_bounds = array<i64: 1, 64>}, {pipeline_mode = #tpu.pipeline_mode<synchronous>, transform_indices = @transform_3, window_bounds = array<i64: 64, 32>}, {pipeline_mode = #tpu.pipeline_mode<synchronous>, transform_indices = @transform_4, window_bounds = array<i64: 1, 32>}, {pipeline_mode = #tpu.pipeline_mode<synchronous>, transform_indices = @transform_5, window_bounds = array<i64: 32, 6>}, {pipeline_mode = #tpu.pipeline_mode<synchronous>, transform_indices = @transform_6, window_bounds = array<i64: 1, 6>}, {transform_indices = @transform_7, window_bounds = array<i64: 8, 6>}]} {
    %c0 = arith.constant 0 : index
    %c0_0 = arith.constant 0 : index
    %0 = vector.load %arg1[%c0, %c0_0] : memref<8x12288xf32, #tpu.memory_space<vmem>>, vector<8x12288xf32>
    %c0_1 = arith.constant 0 : index
    %c0_2 = arith.constant 0 : index
    %1 = vector.load %arg2[%c0_1, %c0_2] : memref<12288x64xf32, #tpu.memory_space<vmem>>, vector<12288x64xf32>
    %cst = arith.constant dense<0.000000e+00> : vector<8x64xf32>
    %2 = tpu.matmul %0, %1, %cst {dimension_numbers = #tpu.dot_dimension_numbers<[1], [0], [0], [1], [0, 0, 1, 1], [], []>} : vector<8x12288xf32>, vector<12288x64xf32>, vector<8x64xf32> -> vector<8x64xf32>
    %c0_3 = arith.constant 0 : index
    %c0_4 = arith.constant 0 : index
    %3 = vector.load %arg3[%c0_3, %c0_4] : memref<1x64xf32, #tpu.memory_space<vmem>>, vector<1x64xf32>
    %4 = vector.broadcast %3 : vector<1x64xf32> to vector<8x64xf32>
    %5 = arith.addf %2, %4 : vector<8x64xf32>
    %cst_5 = arith.constant 0.000000e+00 : f32
    %6 = vector.broadcast %cst_5 : f32 to vector<8x64xf32>
    %7 = arith.maximumf %5, %6 : vector<8x64xf32>
    %c0_6 = arith.constant 0 : index
    %c0_7 = arith.constant 0 : index
    %8 = vector.load %arg4[%c0_6, %c0_7] : memref<64x32xf32, #tpu.memory_space<vmem>>, vector<64x32xf32>
    %cst_8 = arith.constant dense<0.000000e+00> : vector<8x32xf32>
    %9 = tpu.matmul %7, %8, %cst_8 {dimension_numbers = #tpu.dot_dimension_numbers<[1], [0], [0], [1], [0, 0, 1, 1], [], []>} : vector<8x64xf32>, vector<64x32xf32>, vector<8x32xf32> -> vector<8x32xf32>
    %c0_9 = arith.constant 0 : index
    %c0_10 = arith.constant 0 : index
    %10 = vector.load %arg5[%c0_9, %c0_10] : memref<1x32xf32, #tpu.memory_space<vmem>>, vector<1x32xf32>
    %11 = vector.broadcast %10 : vector<1x32xf32> to vector<8x32xf32>
    %12 = arith.addf %9, %11 : vector<8x32xf32>
    %cst_11 = arith.constant 0.000000e+00 : f32
    %13 = vector.broadcast %cst_11 : f32 to vector<8x32xf32>
    %14 = arith.maximumf %12, %13 : vector<8x32xf32>
    %c0_12 = arith.constant 0 : index
    %c0_13 = arith.constant 0 : index
    %15 = vector.load %arg6[%c0_12, %c0_13] : memref<32x6xf32, #tpu.memory_space<vmem>>, vector<32x6xf32>
    %cst_14 = arith.constant dense<0.000000e+00> : vector<8x6xf32>
    %16 = tpu.matmul %14, %15, %cst_14 {dimension_numbers = #tpu.dot_dimension_numbers<[1], [0], [0], [1], [0, 0, 1, 1], [], []>} : vector<8x32xf32>, vector<32x6xf32>, vector<8x6xf32> -> vector<8x6xf32>
    %c0_15 = arith.constant 0 : index
    %c0_16 = arith.constant 0 : index
    %17 = vector.load %arg7[%c0_15, %c0_16] : memref<1x6xf32, #tpu.memory_space<vmem>>, vector<1x6xf32>
    %18 = vector.broadcast %17 : vector<1x6xf32> to vector<8x6xf32>
    %19 = arith.addf %16, %18 : vector<8x6xf32>
    %c0_17 = arith.constant 0 : index
    %c0_18 = arith.constant 0 : index
    %20 = vector.load %arg8[%c0_17, %c0_18] : memref<8x6xf32, #tpu.memory_space<vmem>>, vector<8x6xf32>
    tpu.vector_store %arg8[%c0_17, %c0_18], %19 {strides = array<i32>} : memref<8x6xf32, #tpu.memory_space<vmem>>, vector<8x6xf32>,
    return
  }
  func.func @transform_0(%arg0: i32) -> (i32, i32) {
    %c0_i32 = arith.constant 0 : i32
    %c0_i32_0 = arith.constant 0 : i32
    return %arg0, %c0_i32 : i32, i32
  }
  func.func @transform_1(%arg0: i32) -> (i32, i32) {
    %c0_i32 = arith.constant 0 : i32
    %c0_i32_0 = arith.constant 0 : i32
    %c0_i32_1 = arith.constant 0 : i32
    return %c0_i32, %c0_i32_0 : i32, i32
  }
  func.func @transform_2(%arg0: i32) -> (i32, i32) {
    %c0_i32 = arith.constant 0 : i32
    %c0_i32_0 = arith.constant 0 : i32
    %c0_i32_1 = arith.constant 0 : i32
    return %c0_i32, %c0_i32_0 : i32, i32
  }
  func.func @transform_3(%arg0: i32) -> (i32, i32) {
    %c0_i32 = arith.constant 0 : i32
    %c0_i32_0 = arith.constant 0 : i32
    %c0_i32_1 = arith.constant 0 : i32
    return %c0_i32, %c0_i32_0 : i32, i32
  }
  func.func @transform_4(%arg0: i32) -> (i32, i32) {
    %c0_i32 = arith.constant 0 : i32
    %c0_i32_0 = arith.constant 0 : i32
    %c0_i32_1 = arith.constant 0 : i32
    return %c0_i32, %c0_i32_0 : i32, i32
  }
  func.func @transform_5(%arg0: i32) -> (i32, i32) {
    %c0_i32 = arith.constant 0 : i32
    %c0_i32_0 = arith.constant 0 : i32
    %c0_i32_1 = arith.constant 0 : i32
    return %c0_i32, %c0_i32_0 : i32, i32
  }
  func.func @transform_6(%arg0: i32) -> (i32, i32) {
    %c0_i32 = arith.constant 0 : i32
    %c0_i32_0 = arith.constant 0 : i32
    %c0_i32_1 = arith.constant 0 : i32
    return %c0_i32, %c0_i32_0 : i32, i32
  }
  func.func @transform_7(%arg0: i32) -> (i32, i32) {
    %c0_i32 = arith.constant 0 : i32
    %c0_i32_0 = arith.constant 0 : i32
    return %arg0, %c0_i32 : i32, i32
  }
}

</mosaic_0001>

<bundles_post_ra>
// kernel: tpu_custom_call.1
= control target key start
LH: loop header
LB: loop body
LE: loop exit
PB: predicated region body
PF: predicated region fallthrough
CT: control target
= control target key end

     0   :  { %s13574_s0 = inlined_call_operand.vmem [shape: f32[8,12288], index: 0, kind: input, shape index: {}]   ;;  %s13575_s1 = inlined_call_operand.vmem [shape: f32[12288,64], index: 1, kind: input, shape index: {}]   ;;  %s13576_s2 = inlined_call_operand.vmem [shape: f32[1,64], index: 2, kind: input, shape index: {}]   ;;  %s13577_s3 = inlined_call_operand.vmem [shape: f32[64,32], index: 3, kind: input, shape index: {}]   ;;  %s13578_s4 = inlined_call_operand.vmem [shape: f32[1,32], index: 4, kind: input, shape index: {}]   ;;  %s13579_s5 = inlined_call_operand.vmem [shape: f32[32,6], index: 5, kind: input, shape index: {}]   ;;  %s13580_s6 = inlined_call_operand.vmem [shape: f32[1,6], index: 6, kind: input, shape index: {}]   ;;  %s13581_s7 = inlined_call_operand.hbm [shape: f32[8,6], index: 7, kind: output, shape index: {}]  }
   0x1   :  { %v139_v0 = vld [vmem:[%s13575_s1 + $0x80] sm:$0xff]  ;;  %v140_v1 = vld [vmem:[%s13575_s1 + $0x88] sm:$0xff]  ;;  %v141_v11 = vld [vmem:[%s13575_s1 + $0x90] sm:$0xff] }
   0x2   :  { %v123_v2 = vld [vmem:[%s13575_s1] sm:$0xff]  ;;  %v6947_v3 = vpack.c.bf16 %v140_v1, %v139_v0  ;;  %v124_v4 = vld [vmem:[%s13575_s1 + $0x8] sm:$0xff]  ;;  %v142_v13 = vld [vmem:[%s13575_s1 + $0x98] sm:$0xff] }
   0x3   :  { %v171_v5 = vld [vmem:[%s13575_s1 + $0x180] sm:$0xff]  ;;  %v172_v6 = vld [vmem:[%s13575_s1 + $0x188] sm:$0xff]  ;;  %v6949_v7 = vpack.c.bf16 %v124_v4, %v123_v2  ;;  %v125_v14 = vld [vmem:[%s13575_s1 + $0x10] sm:$0xff]  ;;  %v6951_v16 = vpack.c.bf16 %v142_v13, %v141_v11 }
   0x4   :  { %v6979_v8 = vpack.c.bf16 %v172_v6, %v171_v5  ;;  %v155_v9 = vld [vmem:[%s13575_s1 + $0x100] sm:$0xff]  ;;  %v156_v10 = vld [vmem:[%s13575_s1 + $0x108] sm:$0xff]  ;;  %6948 = vmatprep.subr.bf16.mxu0 %v6947_v3  ;;  %v126_v15 = vld [vmem:[%s13575_s1 + $0x18] sm:$0xff] }
   0x5   :  { %v6981_v12 = vpack.c.bf16 %v156_v10, %v155_v9  ;;  %6950 = vmatpush3.bf16.msra.mxu0 %v6949_v7  ;;  %v6953_v17 = vpack.c.bf16 %v126_v15, %v125_v14  ;;  %v173_v18 = vld [vmem:[%s13575_s1 + $0x190] sm:$0xff]  ;;  %v174_v19 = vld [vmem:[%s13575_s1 + $0x198] sm:$0xff]  ;;  %v143_v23 = vld [vmem:[%s13575_s1 + $0xa0] sm:$0xff] }
   0x6   :  { %6980 = vmatprep.subr.bf16.mxu1 %v6979_v8  ;;  %v157_v20 = vld [vmem:[%s13575_s1 + $0x110] sm:$0xff]  ;;  %v6983_v21 = vpack.c.bf16 %v174_v19, %v173_v18  ;;  %v158_v22 = vld [vmem:[%s13575_s1 + $0x118] sm:$0xff]  ;;  %v144_v24 = vld [vmem:[%s13575_s1 + $0xa8] sm:$0xff]  ;;  %6952 = vmatprep.subr.bf16.mxu0 %v6951_v16 }
   0x7   :  { %6982 = vmatpush3.bf16.msra.mxu1 %v6981_v12  ;;  %v6985_v25 = vpack.c.bf16 %v158_v22, %v157_v20  ;;  %v6955_v26 = vpack.c.bf16 %v144_v24, %v143_v23  ;;  %v127_v27 = vld [vmem:[%s13575_s1 + $0x20] sm:$0xff]  ;;  %v128_v28 = vld [vmem:[%s13575_s1 + $0x28] sm:$0xff]  ;;  %v145_v35 = vld [vmem:[%s13575_s1 + $0xb0] sm:$0xff] }
   0x8   :  { %v175_v29 = vld [vmem:[%s13575_s1 + $0x1a0] sm:$0xff]  ;;  %6984 = vmatprep.subr.bf16.mxu1 %v6983_v21  ;;  %v176_v30 = vld [vmem:[%s13575_s1 + $0x1a8] sm:$0xff]  ;;  %v6957_v33 = vpack.c.bf16 %v128_v28, %v127_v27  ;;  %v146_v36 = vld [vmem:[%s13575_s1 + $0xb8] sm:$0xff] }
   0x9   :  { %v159_v31 = vld [vmem:[%s13575_s1 + $0x120] sm:$0xff]  ;;  %v160_v32 = vld [vmem:[%s13575_s1 + $0x128] sm:$0xff]  ;;  %6954 = vmatpush3.bf16.msra.mxu0 %v6953_v17  ;;  %v6987_v34 = vpack.c.bf16 %v176_v30, %v175_v29  ;;  %v129_v37 = vld [vmem:[%s13575_s1 + $0x30] sm:$0xff]  ;;  %v6959_v39 = vpack.c.bf16 %v146_v36, %v145_v35 }
   0xa   :  { %6956 = vmatprep.subr.bf16.mxu0 %v6955_v26  ;;  %v6989_v38 = vpack.c.bf16 %v160_v32, %v159_v31  ;;  %v130_v40 = vld [vmem:[%s13575_s1 + $0x38] sm:$0xff]  ;;  %v177_v41 = vld [vmem:[%s13575_s1 + $0x1b0] sm:$0xff]  ;;  %v147_v46 = vld [vmem:[%s13575_s1 + $0xc0] sm:$0xff] }
   0xb   :  { %6986 = vmatpush3.bf16.msra.mxu1 %v6985_v25  ;;  %v178_v42 = vld [vmem:[%s13575_s1 + $0x1b8] sm:$0xff]  ;;  %v161_v44 = vld [vmem:[%s13575_s1 + $0x130] sm:$0xff]  ;;  %v148_v47 = vld [vmem:[%s13575_s1 + $0xc8] sm:$0xff]  ;;  %v6961_v48 = vpack.c.bf16 %v130_v40, %v129_v37 }
   0xc   :  { %6988 = vmatprep.subr.bf16.mxu1 %v6987_v34  ;;  %v6991_v43 = vpack.c.bf16 %v178_v42, %v177_v41  ;;  %v162_v45 = vld [vmem:[%s13575_s1 + $0x138] sm:$0xff]  ;;  %v179_v49 = vld [vmem:[%s13575_s1 + $0x1c0] sm:$0xff]  ;;  %v180_v50 = vld [vmem:[%s13575_s1 + $0x1c8] sm:$0xff]  ;;  %v6963_v52 = vpack.c.bf16 %v148_v47, %v147_v46 }
   0xd   :  { %6958 = vmatpush3.bf16.msra.mxu0 %v6957_v33  ;;  %v6993_v51 = vpack.c.bf16 %v162_v45, %v161_v44  ;;  %v131_v53 = vld [vmem:[%s13575_s1 + $0x40] sm:$0xff]  ;;  %v132_v54 = vld [vmem:[%s13575_s1 + $0x48] sm:$0xff]  ;;  %v6995_v56 = vpack.c.bf16 %v180_v50, %v179_v49  ;;  %v149_v58 = vld [vmem:[%s13575_s1 + $0xd0] sm:$0xff] }
   0xe   :  { %6960 = vmatprep.subr.bf16.mxu0 %v6959_v39  ;;  %v163_v55 = vld [vmem:[%s13575_s1 + $0x140] sm:$0xff]  ;;  %v164_v57 = vld [vmem:[%s13575_s1 + $0x148] sm:$0xff]  ;;  %v150_v59 = vld [vmem:[%s13575_s1 + $0xd8] sm:$0xff]  ;;  %v6965_v62 = vpack.c.bf16 %v132_v54, %v131_v53 }
   0xf   :  { %6990 = vmatpush3.bf16.msra.mxu1 %v6989_v38  ;;  %v181_v60 = vld [vmem:[%s13575_s1 + $0x1d0] sm:$0xff]  ;;  %v182_v61 = vld [vmem:[%s13575_s1 + $0x1d8] sm:$0xff]  ;;  %v6997_v63 = vpack.c.bf16 %v164_v57, %v163_v55  ;;  %v6967_v0 = vpack.c.bf16 %v150_v59, %v149_v58  ;;  %v151_v6 = vld [vmem:[%s13575_s1 + $0xe0] sm:$0xff] }
  0x10   :  { %6992 = vmatprep.subr.bf16.mxu1 %v6991_v43  ;;  %v133_v1 = vld [vmem:[%s13575_s1 + $0x50] sm:$0xff]  ;;  %v134_v2 = vld [vmem:[%s13575_s1 + $0x58] sm:$0xff]  ;;  %v6999_v4 = vpack.c.bf16 %v182_v61, %v181_v60  ;;  %v152_v7 = vld [vmem:[%s13575_s1 + $0xe8] sm:$0xff] }
  0x11   :  { %6962 = vmatpush3.bf16.msra.mxu0 %v6961_v48  ;;  %v165_v3 = vld [vmem:[%s13575_s1 + $0x150] sm:$0xff]  ;;  %v166_v5 = vld [vmem:[%s13575_s1 + $0x158] sm:$0xff]  ;;  %v183_v8 = vld [vmem:[%s13575_s1 + $0x1e0] sm:$0xff]  ;;  %v6969_v10 = vpack.c.bf16 %v134_v2, %v133_v1  ;;  %v6971_v14 = vpack.c.bf16 %v152_v7, %v151_v6 }
  0x12   :  { %6964 = vmatprep.subr.bf16.mxu0 %v6963_v52  ;;  %v184_v9 = vld [vmem:[%s13575_s1 + $0x1e8] sm:$0xff]  ;;  %v135_v11 = vld [vmem:[%s13575_s1 + $0x60] sm:$0xff]  ;;  %v7001_v13 = vpack.c.bf16 %v166_v5, %v165_v3  ;;  %v153_v19 = vld [vmem:[%s13575_s1 + $0xf0] sm:$0xff] }
  0x13   :  { %6994 = vmatpush3.bf16.msra.mxu1 %v6993_v51  ;;  %v136_v12 = vld [vmem:[%s13575_s1 + $0x68] sm:$0xff]  ;;  %v167_v15 = vld [vmem:[%s13575_s1 + $0x160] sm:$0xff]  ;;  %v7003_v18 = vpack.c.bf16 %v184_v9, %v183_v8  ;;  %v154_v20 = vld [vmem:[%s13575_s1 + $0xf8] sm:$0xff] }
  0x14   :  { %6996 = vmatprep.subr.bf16.mxu1 %v6995_v56  ;;  %v168_v16 = vld [vmem:[%s13575_s1 + $0x168] sm:$0xff]  ;;  %v30_v21 = vld [vmem:[%s13574_s0 + $0x18] sm:$0xff]  ;;  %v185_v22 = vld [vmem:[%s13575_s1 + $0x1f0] sm:$0xff]  ;;  %v6973_v24 = vpack.c.bf16 %v136_v12, %v135_v11  ;;  %v6975_v26 = vpack.c.bf16 %v154_v20, %v153_v19 }
  0x15   :  { %6966 = vmatpush3.bf16.msra.mxu0 %v6965_v62  ;;  %v28_v17 = vld [vmem:[%s13574_s0 + $0x8] sm:$0xff]  ;;  %v186_v23 = vld [vmem:[%s13575_s1 + $0x1f8] sm:$0xff]  ;;  %1800 = vmatprep.mubr.f32.mxu1 %v30_v21  ;;  %v7005_v25 = vpack.c.bf16 %v168_v16, %v167_v15  ;;  %v137_v27 = vld [vmem:[%s13575_s1 + $0x70] sm:$0xff] }
  0x16   :  { %6968 = vmatprep.subr.bf16.mxu0 %v6967_v0  ;;  %1730 = vmatprep.mubr.f32.mxu0 %v28_v17  ;;  %v138_v28 = vld [vmem:[%s13575_s1 + $0x78] sm:$0xff]  ;;  %v169_v29 = vld [vmem:[%s13575_s1 + $0x170] sm:$0xff]  ;;  %v7007_v30 = vpack.c.bf16 %v186_v23, %v185_v22  ;;  %v203_v32 = vld [vmem:[%s13575_s1 + $0x280] sm:$0xff] }
  0x17   :  { %6998 = vmatpush3.bf16.msra.mxu1 %v6997_v63  ;;  %v170_v31 = vld [vmem:[%s13575_s1 + $0x178] sm:$0xff]  ;;  %v204_v33 = vld [vmem:[%s13575_s1 + $0x288] sm:$0xff]  ;;  %v235_v34 = vld [vmem:[%s13575_s1 + $0x380] sm:$0xff]  ;;  %v6977_v36 = vpack.c.bf16 %v138_v28, %v137_v27 }
  0x18   :  { %7000 = vmatprep.subr.bf16.mxu1 %v6999_v4  ;;  %v236_v35 = vld [vmem:[%s13575_s1 + $0x388] sm:$0xff]  ;;  %v7009_v37 = vpack.c.bf16 %v170_v31, %v169_v29  ;;  %v7011_v38 = vpack.c.bf16 %v204_v33, %v203_v32  ;;  %v187_v39 = vld [vmem:[%s13575_s1 + $0x200] sm:$0xff]  ;;  %v205_v44 = vld [vmem:[%s13575_s1 + $0x290] sm:$0xff] }
  0x19   :  { %6970 = vmatpush3.bf16.msra.mxu0 %v6969_v10  ;;  %v188_v40 = vld [vmem:[%s13575_s1 + $0x208] sm:$0xff]  ;;  %v219_v41 = vld [vmem:[%s13575_s1 + $0x300] sm:$0xff]  ;;  %v7043_v42 = vpack.c.bf16 %v236_v35, %v235_v34  ;;  %v206_v45 = vld [vmem:[%s13575_s1 + $0x298] sm:$0xff] }
  0x1a   :  { %6972 = vmatprep.subr.bf16.mxu0 %v6971_v14  ;;  %v220_v43 = vld [vmem:[%s13575_s1 + $0x308] sm:$0xff]  ;;  %v237_v46 = vld [vmem:[%s13575_s1 + $0x390] sm:$0xff]  ;;  %v238_v47 = vld [vmem:[%s13575_s1 + $0x398] sm:$0xff]  ;;  %v7013_v49 = vpack.c.bf16 %v188_v40, %v187_v39  ;;  %v7015_v52 = vpack.c.bf16 %v206_v45, %v205_v44 }
  0x1b   :  { %7002 = vmatpush3.bf16.msra.mxu1 %v7001_v13  ;;  %v27_v48 = vld [vmem:[%s13574_s0] sm:$0xff]  ;;  %v29_v50 = vld [vmem:[%s13574_s0 + $0x10] sm:$0xff]  ;;  %v7045_v51 = vpack.c.bf16 %v220_v43, %v219_v41  ;;  %v190_v54 = vld [vmem:[%s13575_s1 + $0x218] sm:$0xff]  ;;  %v7047_v56 = vpack.c.bf16 %v238_v47, %v237_v46 }
  0x1c   :  { %7004 = vmatprep.subr.bf16.mxu1 %v7003_v18  ;;  %v189_v53 = vld [vmem:[%s13575_s1 + $0x210] sm:$0xff]  ;;  %v222_v57 = vld [vmem:[%s13575_s1 + $0x318] sm:$0xff]  ;;  %v207_v58 = vld [vmem:[%s13575_s1 + $0x2a0] sm:$0xff] }
  0x1d   :  { %6974 = vmatpush3.bf16.msra.mxu0 %v6973_v24  ;;  %v221_v55 = vld [vmem:[%s13575_s1 + $0x310] sm:$0xff]  ;;  %v208_v59 = vld [vmem:[%s13575_s1 + $0x2a8] sm:$0xff]  ;;  %v239_v60 = vld [vmem:[%s13575_s1 + $0x3a0] sm:$0xff]  ;;  %v7017_v62 = vpack.c.bf16 %v190_v54, %v189_v53 }
  0x1e   :  { %6976 = vmatprep.subr.bf16.mxu0 %v6975_v26  ;;  %v240_v61 = vld [vmem:[%s13575_s1 + $0x3a8] sm:$0xff]  ;;  %v7049_v63 = vpack.c.bf16 %v222_v57, %v221_v55  ;;  %v7019_v0 = vpack.c.bf16 %v208_v59, %v207_v58  ;;  %v191_v1 = vld [vmem:[%s13575_s1 + $0x220] sm:$0xff]  ;;  %v209_v6 = vld [vmem:[%s13575_s1 + $0x2b0] sm:$0xff] }
  0x1f   :  { %7006 = vmatpush3.bf16.msra.mxu1 %v7005_v25  ;;  %v192_v2 = vld [vmem:[%s13575_s1 + $0x228] sm:$0xff]  ;;  %v223_v3 = vld [vmem:[%s13575_s1 + $0x320] sm:$0xff]  ;;  %v7051_v4 = vpack.c.bf16 %v240_v61, %v239_v60  ;;  %v210_v7 = vld [vmem:[%s13575_s1 + $0x2b8] sm:$0xff] }
  0x20   :  { %7008 = vmatprep.subr.bf16.mxu1 %v7007_v30  ;;  %v224_v5 = vld [vmem:[%s13575_s1 + $0x328] sm:$0xff]  ;;  %v241_v8 = vld [vmem:[%s13575_s1 + $0x3b0] sm:$0xff]  ;;  %v242_v9 = vld [vmem:[%s13575_s1 + $0x3b8] sm:$0xff]  ;;  %v7021_v10 = vpack.c.bf16 %v192_v2, %v191_v1  ;;  %v7023_v12 = vpack.c.bf16 %v210_v7, %v209_v6 }
  0x21   :  { %6978 = vmatpush3.bf16.msra.mxu0 %v6977_v36  ;;  %v7053_v11 = vpack.c.bf16 %v224_v5, %v223_v3  ;;  %v193_v13 = vld [vmem:[%s13575_s1 + $0x230] sm:$0xff]  ;;  %v194_v14 = vld [vmem:[%s13575_s1 + $0x238] sm:$0xff]  ;;  %v7055_v16 = vpack.c.bf16 %v242_v9, %v241_v8  ;;  %v211_v18 = vld [vmem:[%s13575_s1 + $0x2c0] sm:$0xff] }
  0x22   :  { %7012 = vmatprep.subr.bf16.mxu0 %v7011_v38  ;;  %v225_v15 = vld [vmem:[%s13575_s1 + $0x330] sm:$0xff]  ;;  %v226_v17 = vld [vmem:[%s13575_s1 + $0x338] sm:$0xff]  ;;  %v212_v19 = vld [vmem:[%s13575_s1 + $0x2c8] sm:$0xff]  ;;  %v7025_v22 = vpack.c.bf16 %v194_v14, %v193_v13 }
  0x23   :  { %7010 = vmatpush3.bf16.msra.mxu1 %v7009_v37  ;;  %v243_v20 = vld [vmem:[%s13575_s1 + $0x3c0] sm:$0xff]  ;;  %v244_v21 = vld [vmem:[%s13575_s1 + $0x3c8] sm:$0xff]  ;;  %v7057_v25 = vpack.c.bf16 %v226_v17, %v225_v15  ;;  %v7027_v26 = vpack.c.bf16 %v212_v19, %v211_v18  ;;  %v34_v29 = vld [vmem:[%s13574_s0 + $0x38] sm:$0xff] }
  0x24   :  { %7044 = vmatprep.subr.bf16.mxu1 %v7043_v42  ;;  %1731 = vmatmul.mubr.f32.vlgmr.msra.gmra.mrb[0].mxu0 %v27_v48  ;;  %v195_v23 = vld [vmem:[%s13575_s1 + $0x240] sm:$0xff]  ;;  %v32_v24 = vld [vmem:[%s13574_s0 + $0x28] sm:$0xff]  ;;  %v7059_v30 = vpack.c.bf16 %v244_v21, %v243_v20  ;;  %v213_v32 = vld [vmem:[%s13575_s1 + $0x2d0] sm:$0xff] }
  0x25   :  { %7014 = vmatpush3.bf16.msra.mxu0 %v7013_v49  ;;  %v196_v27 = vld [vmem:[%s13575_s1 + $0x248] sm:$0xff]  ;;  %v227_v28 = vld [vmem:[%s13575_s1 + $0x340] sm:$0xff]  ;;  %v214_v33 = vld [vmem:[%s13575_s1 + $0x2d8] sm:$0xff]  ;;  %1870 = vmatprep.mubr.f32.mxu0 %v32_v24 }
  0x26   :  { %1801 = vmatmul.mubr.f32.vlgmr.msra.gmra.mrb[0].mxu1 %v29_v50  ;;  %7016 = vmatprep.subr.bf16.mxu0 %v7015_v52  ;;  %v228_v31 = vld [vmem:[%s13575_s1 + $0x348] sm:$0xff]  ;;  %v245_v34 = vld [vmem:[%s13575_s1 + $0x3d0] sm:$0xff]  ;;  %v246_v35 = vld [vmem:[%s13575_s1 + $0x3d8] sm:$0xff]  ;;  %v7029_v36 = vpack.c.bf16 %v196_v27, %v195_v23  ;;  %v7031_v38 = vpack.c.bf16 %v214_v33, %v213_v32 }
  0x27   :  { %7046 = vmatpush3.bf16.msra.mxu1 %v7045_v51  ;;  %1940 = vmatprep.mubr.f32.mxu1 %v34_v29  ;;  %v7061_v37 = vpack.c.bf16 %v228_v31, %v227_v28  ;;  %v197_v39 = vld [vmem:[%s13575_s1 + $0x250] sm:$0xff]  ;;  %v198_v40 = vld [vmem:[%s13575_s1 + $0x258] sm:$0xff]  ;;  %v7063_v42 = vpack.c.bf16 %v246_v35, %v245_v34  ;;  %v215_v44 = vld [vmem:[%s13575_s1 + $0x2e0] sm:$0xff] }
  0x28   :  { %7048 = vmatprep.subr.bf16.mxu1 %v7047_v56  ;;  %v229_v41 = vld [vmem:[%s13575_s1 + $0x350] sm:$0xff]  ;;  %v230_v43 = vld [vmem:[%s13575_s1 + $0x358] sm:$0xff]  ;;  %v216_v45 = vld [vmem:[%s13575_s1 + $0x2e8] sm:$0xff]  ;;  %v7033_v48 = vpack.c.bf16 %v198_v40, %v197_v39 }
  0x29   :  { %7018 = vmatpush3.bf16.msra.mxu0 %v7017_v62  ;;  %v247_v46 = vld [vmem:[%s13575_s1 + $0x3e0] sm:$0xff]  ;;  %v248_v47 = vld [vmem:[%s13575_s1 + $0x3e8] sm:$0xff]  ;;  %v7065_v49 = vpack.c.bf16 %v230_v43, %v229_v41  ;;  %v7035_v50 = vpack.c.bf16 %v216_v45, %v215_v44  ;;  %v217_v56 = vld [vmem:[%s13575_s1 + $0x2f0] sm:$0xff] }
  0x2a   :  { %7020 = vmatprep.subr.bf16.mxu0 %v7019_v0  ;;  %v199_v51 = vld [vmem:[%s13575_s1 + $0x260] sm:$0xff]  ;;  %v200_v52 = vld [vmem:[%s13575_s1 + $0x268] sm:$0xff]  ;;  %v7067_v54 = vpack.c.bf16 %v248_v47, %v247_v46  ;;  %v218_v57 = vld [vmem:[%s13575_s1 + $0x2f8] sm:$0xff] }
  0x2b   :  { %7050 = vmatpush3.bf16.msra.mxu1 %v7049_v63  ;;  %v231_v53 = vld [vmem:[%s13575_s1 + $0x360] sm:$0xff]  ;;  %v232_v55 = vld [vmem:[%s13575_s1 + $0x368] sm:$0xff]  ;;  %v249_v58 = vld [vmem:[%s13575_s1 + $0x3f0] sm:$0xff]  ;;  %v7037_v60 = vpack.c.bf16 %v200_v52, %v199_v51  ;;  %v7039_v62 = vpack.c.bf16 %v218_v57, %v217_v56 }
  0x2c   :  { %7052 = vmatprep.subr.bf16.mxu1 %v7051_v4  ;;  %v250_v59 = vld [vmem:[%s13575_s1 + $0x3f8] sm:$0xff]  ;;  %v7069_v61 = vpack.c.bf16 %v232_v55, %v231_v53  ;;  %v201_v63 = vld [vmem:[%s13575_s1 + $0x270] sm:$0xff]  ;;  %v267_v4 = vld [vmem:[%s13575_s1 + $0x480] sm:$0xff] }
  0x2d   :  { %7022 = vmatpush3.bf16.msra.mxu0 %v7021_v10  ;;  %v202_v0 = vld [vmem:[%s13575_s1 + $0x278] sm:$0xff]  ;;  %v233_v1 = vld [vmem:[%s13575_s1 + $0x370] sm:$0xff]  ;;  %v7071_v2 = vpack.c.bf16 %v250_v59, %v249_v58  ;;  %v268_v5 = vld [vmem:[%s13575_s1 + $0x488] sm:$0xff] }
  0x2e   :  { %7024 = vmatprep.subr.bf16.mxu0 %v7023_v12  ;;  %v234_v3 = vld [vmem:[%s13575_s1 + $0x378] sm:$0xff]  ;;  %v299_v6 = vld [vmem:[%s13575_s1 + $0x580] sm:$0xff]  ;;  %v300_v7 = vld [vmem:[%s13575_s1 + $0x588] sm:$0xff]  ;;  %v7041_v8 = vpack.c.bf16 %v202_v0, %v201_v63  ;;  %v7075_v10 = vpack.c.bf16 %v268_v5, %v267_v4 }
  0x2f   :  { %7054 = vmatpush3.bf16.msra.mxu1 %v7053_v11  ;;  %v7073_v9 = vpack.c.bf16 %v234_v3, %v233_v1  ;;  %v251_v11 = vld [vmem:[%s13575_s1 + $0x400] sm:$0xff]  ;;  %v252_v12 = vld [vmem:[%s13575_s1 + $0x408] sm:$0xff]  ;;  %v7107_v14 = vpack.c.bf16 %v300_v7, %v299_v6  ;;  %v270_v17 = vld [vmem:[%s13575_s1 + $0x498] sm:$0xff] }
  0x30   :  { %7056 = vmatprep.subr.bf16.mxu1 %v7055_v16  ;;  %v283_v13 = vld [vmem:[%s13575_s1 + $0x500] sm:$0xff]  ;;  %v284_v15 = vld [vmem:[%s13575_s1 + $0x508] sm:$0xff]  ;;  %v269_v16 = vld [vmem:[%s13575_s1 + $0x490] sm:$0xff]  ;;  %v7077_v21 = vpack.c.bf16 %v252_v12, %v251_v11 }
  0x31   :  { %7026 = vmatpush3.bf16.msra.mxu0 %v7025_v22  ;;  %v301_v18 = vld [vmem:[%s13575_s1 + $0x590] sm:$0xff]  ;;  %v302_v19 = vld [vmem:[%s13575_s1 + $0x598] sm:$0xff]  ;;  %v31_v20 = vld [vmem:[%s13574_s0 + $0x20] sm:$0xff]  ;;  %v7109_v23 = vpack.c.bf16 %v284_v15, %v283_v13  ;;  %v7079_v24 = vpack.c.bf16 %v270_v17, %v269_v16 }
  0x32   :  { %7028 = vmatprep.subr.bf16.mxu0 %v7027_v26  ;;  %v33_v22 = vld [vmem:[%s13574_s0 + $0x30] sm:$0xff]  ;;  %v254_v26 = vld [vmem:[%s13575_s1 + $0x418] sm:$0xff]  ;;  %v7111_v28 = vpack.c.bf16 %v302_v19, %v301_v18  ;;  %v272_v31 = vld [vmem:[%s13575_s1 + $0x4a8] sm:$0xff] }
  0x33   :  { %7058 = vmatpush3.bf16.msra.mxu1 %v7057_v25  ;;  %v253_v25 = vld [vmem:[%s13575_s1 + $0x410] sm:$0xff]  ;;  %v286_v29 = vld [vmem:[%s13575_s1 + $0x518] sm:$0xff]  ;;  %v303_v32 = vld [vmem:[%s13575_s1 + $0x5a0] sm:$0xff] }
  0x34   :  { %7060 = vmatprep.subr.bf16.mxu1 %v7059_v30  ;;  %v285_v27 = vld [vmem:[%s13575_s1 + $0x510] sm:$0xff]  ;;  %v271_v30 = vld [vmem:[%s13575_s1 + $0x4a0] sm:$0xff]  ;;  %v304_v33 = vld [vmem:[%s13575_s1 + $0x5a8] sm:$0xff]  ;;  %v7081_v35 = vpack.c.bf16 %v254_v26, %v253_v25 }
  0x35   :  { %7030 = vmatpush3.bf16.msra.mxu0 %v7029_v36  ;;  %v36_v34 = vld [vmem:[%s13574_s0 + $0x48] sm:$0xff]  ;;  %v38_v36 = vld [vmem:[%s13574_s0 + $0x58] sm:$0xff]  ;;  %v255_v39 = vld [vmem:[%s13575_s1 + $0x420] sm:$0xff] }
  0x36   :  { %7032 = vmatprep.subr.bf16.mxu0 %v7031_v38  ;;  %v7083_v38 = vpack.c.bf16 %v272_v31, %v271_v30  ;;  %v256_v40 = vld [vmem:[%s13575_s1 + $0x428] sm:$0xff]  ;;  %v287_v41 = vld [vmem:[%s13575_s1 + $0x520] sm:$0xff]  ;;  %v273_v44 = vld [vmem:[%s13575_s1 + $0x4b0] sm:$0xff] }
  0x37   :  { %7062 = vmatpush3.bf16.msra.mxu1 %v7061_v37  ;;  %v7113_v37 = vpack.c.bf16 %v286_v29, %v285_v27  ;;  %v288_v43 = vld [vmem:[%s13575_s1 + $0x528] sm:$0xff]  ;;  %v274_v45 = vld [vmem:[%s13575_s1 + $0x4b8] sm:$0xff]  ;;  %v305_v46 = vld [vmem:[%s13575_s1 + $0x5b0] sm:$0xff] }
  0x38   :  { %7064 = vmatprep.subr.bf16.mxu1 %v7063_v42  ;;  %v7115_v42 = vpack.c.bf16 %v304_v33, %v303_v32  ;;  %v306_v47 = vld [vmem:[%s13575_s1 + $0x5b8] sm:$0xff]  ;;  %v257_v51 = vld [vmem:[%s13575_s1 + $0x430] sm:$0xff]  ;;  %v275_v56 = vld [vmem:[%s13575_s1 + $0x4c0] sm:$0xff] }
  0x39   :  { %7034 = vmatpush3.bf16.msra.mxu0 %v7033_v48  ;;  %v7085_v48 = vpack.c.bf16 %v256_v40, %v255_v39  ;;  %v258_v52 = vld [vmem:[%s13575_s1 + $0x438] sm:$0xff]  ;;  %v289_v53 = vld [vmem:[%s13575_s1 + $0x530] sm:$0xff]  ;;  %v276_v57 = vld [vmem:[%s13575_s1 + $0x4c8] sm:$0xff] }
  0x3a   :  { %7036 = vmatprep.subr.bf16.mxu0 %v7035_v50  ;;  %v7087_v50 = vpack.c.bf16 %v274_v45, %v273_v44  ;;  %v290_v55 = vld [vmem:[%s13575_s1 + $0x538] sm:$0xff]  ;;  %v307_v58 = vld [vmem:[%s13575_s1 + $0x5c0] sm:$0xff]  ;;  %v308_v59 = vld [vmem:[%s13575_s1 + $0x5c8] sm:$0xff] }
  0x3b   :  { %7066 = vmatpush3.bf16.msra.mxu1 %v7065_v49  ;;  %v7117_v49 = vpack.c.bf16 %v288_v43, %v287_v41  ;;  %v259_v63 = vld [vmem:[%s13575_s1 + $0x440] sm:$0xff]  ;;  %v260_v0 = vld [vmem:[%s13575_s1 + $0x448] sm:$0xff]  ;;  %v277_v4 = vld [vmem:[%s13575_s1 + $0x4d0] sm:$0xff] }
  0x3c   :  { %7068 = vmatprep.subr.bf16.mxu1 %v7067_v54  ;;  %v7119_v54 = vpack.c.bf16 %v306_v47, %v305_v46  ;;  %v291_v1 = vld [vmem:[%s13575_s1 + $0x540] sm:$0xff]  ;;  %v292_v3 = vld [vmem:[%s13575_s1 + $0x548] sm:$0xff]  ;;  %v278_v5 = vld [vmem:[%s13575_s1 + $0x4d8] sm:$0xff] }
  0x3d   :  { %7038 = vmatpush3.bf16.msra.mxu0 %v7037_v60  ;;  %v7089_v60 = vpack.c.bf16 %v258_v52, %v257_v51  ;;  %v309_v6 = vld [vmem:[%s13575_s1 + $0x5d0] sm:$0xff]  ;;  %v310_v7 = vld [vmem:[%s13575_s1 + $0x5d8] sm:$0xff]  ;;  %v279_v16 = vld [vmem:[%s13575_s1 + $0x4e0] sm:$0xff] }
  0x3e   :  { %7040 = vmatprep.subr.bf16.mxu0 %v7039_v62  ;;  %v7091_v62 = vpack.c.bf16 %v276_v57, %v275_v56  ;;  %v261_v11 = vld [vmem:[%s13575_s1 + $0x450] sm:$0xff]  ;;  %v262_v12 = vld [vmem:[%s13575_s1 + $0x458] sm:$0xff]  ;;  %v280_v17 = vld [vmem:[%s13575_s1 + $0x4e8] sm:$0xff] }
  0x3f   :  { %7070 = vmatpush3.bf16.msra.mxu1 %v7069_v61  ;;  %v7121_v61 = vpack.c.bf16 %v290_v55, %v289_v53  ;;  %v293_v13 = vld [vmem:[%s13575_s1 + $0x550] sm:$0xff]  ;;  %v294_v15 = vld [vmem:[%s13575_s1 + $0x558] sm:$0xff]  ;;  %v311_v18 = vld [vmem:[%s13575_s1 + $0x5e0] sm:$0xff] }
  0x40   :  { %7072 = vmatprep.subr.bf16.mxu1 %v7071_v2  ;;  %v7123_v2 = vpack.c.bf16 %v308_v59, %v307_v58  ;;  %v312_v19 = vld [vmem:[%s13575_s1 + $0x5e8] sm:$0xff]  ;;  %v295_v25 = vld [vmem:[%s13575_s1 + $0x560] sm:$0xff]  ;;  %v282_v29 = vld [vmem:[%s13575_s1 + $0x4f8] sm:$0xff] }
  0x41   :  { %7042 = vmatpush3.bf16.msra.mxu0 %v7041_v8  ;;  %v7093_v8 = vpack.c.bf16 %v260_v0, %v259_v63  ;;  %v7131_v26 = vpack.c.bf16 %v312_v19, %v311_v18  ;;  %v296_v27 = vld [vmem:[%s13575_s1 + $0x568] sm:$0xff]  ;;  %v313_v30 = vld [vmem:[%s13575_s1 + $0x5f0] sm:$0xff]  ;;  %v314_v31 = vld [vmem:[%s13575_s1 + $0x5f8] sm:$0xff] }
  0x42   :  { %7076 = vmatprep.subr.bf16.mxu0 %v7075_v10  ;;  %v7095_v10 = vpack.c.bf16 %v278_v5, %v277_v4  ;;  %v7133_v33 = vpack.c.bf16 %v296_v27, %v295_v25  ;;  %v298_v39 = vld [vmem:[%s13575_s1 + $0x578] sm:$0xff]  ;;  %v331_v40 = vld [vmem:[%s13575_s1 + $0x680] sm:$0xff]  ;;  %v332_v41 = vld [vmem:[%s13575_s1 + $0x688] sm:$0xff] }
  0x43   :  { %7074 = vmatpush3.bf16.msra.mxu1 %v7073_v9  ;;  %v7125_v9 = vpack.c.bf16 %v292_v3, %v291_v1  ;;  %v364_v43 = vld [vmem:[%s13575_s1 + $0x788] sm:$0xff]  ;;  %v7139_v46 = vpack.c.bf16 %v332_v41, %v331_v40  ;;  %v315_v47 = vld [vmem:[%s13575_s1 + $0x600] sm:$0xff]  ;;  %v333_v52 = vld [vmem:[%s13575_s1 + $0x690] sm:$0xff] }
  0x44   :  { %7108 = vmatprep.subr.bf16.mxu1 %v7107_v14  ;;  %1871 = vmatmul.mubr.f32.vlgmr.msra.gmra.mrb[2].mxu0 %v31_v20  ;;  %v7127_v14 = vpack.c.bf16 %v310_v7, %v309_v6  ;;  %v7097_v20 = vpack.c.bf16 %v262_v12, %v261_v11  ;;  %v348_v51 = vld [vmem:[%s13575_s1 + $0x708] sm:$0xff]  ;;  %v334_v53 = vld [vmem:[%s13575_s1 + $0x698] sm:$0xff]  ;;  %v35_v56 = vld [vmem:[%s13574_s0 + $0x40] sm:$0xff] }
  0x45   :  { %7078 = vmatpush3.bf16.msra.mxu0 %v7077_v21  ;;  %2010 = vmatprep.mubr.f32.mxu0 %v36_v34  ;;  %v7129_v21 = vpack.c.bf16 %v294_v15, %v293_v13  ;;  %v366_v55 = vld [vmem:[%s13575_s1 + $0x798] sm:$0xff]  ;;  %v37_v58 = vld [vmem:[%s13574_s0 + $0x50] sm:$0xff]  ;;  %v336_v3 = vld [vmem:[%s13575_s1 + $0x6a8] sm:$0xff] }
  0x46   :  { %1941 = vmatmul.mubr.f32.vlgmr.msra.gmra.mrb[2].mxu1 %v33_v22  ;;  %7080 = vmatprep.subr.bf16.mxu0 %v7079_v24  ;;  %v7099_v22 = vpack.c.bf16 %v280_v17, %v279_v16  ;;  %v264_v24 = vld [vmem:[%s13575_s1 + $0x468] sm:$0xff]  ;;  %v349_v63 = vld [vmem:[%s13575_s1 + $0x710] sm:$0xff]  ;;  %v350_v1 = vld [vmem:[%s13575_s1 + $0x718] sm:$0xff] }
  0x47   :  { %7110 = vmatpush3.bf16.msra.mxu1 %v7109_v23  ;;  %2080 = vmatprep.mubr.f32.mxu1 %v38_v36  ;;  %v263_v23 = vld [vmem:[%s13575_s1 + $0x460] sm:$0xff]  ;;  %v266_v36 = vld [vmem:[%s13575_s1 + $0x478] sm:$0xff]  ;;  %v368_v5 = vld [vmem:[%s13575_s1 + $0x7a8] sm:$0xff] }
  0x48   :  { %7112 = vmatprep.subr.bf16.mxu1 %v7111_v28  ;;  %v281_v28 = vld [vmem:[%s13575_s1 + $0x4f0] sm:$0xff]  ;;  %v7101_v32 = vpack.c.bf16 %v264_v24, %v263_v23  ;;  %v367_v4 = vld [vmem:[%s13575_s1 + $0x7a0] sm:$0xff]  ;;  %v40_v6 = vld [vmem:[%s13574_s0 + $0x68] sm:$0xff] }
  0x49   :  { %7082 = vmatpush3.bf16.msra.mxu0 %v7081_v35  ;;  %v7103_v34 = vpack.c.bf16 %v282_v29, %v281_v28  ;;  %v265_v35 = vld [vmem:[%s13575_s1 + $0x470] sm:$0xff]  ;;  %v319_v11 = vld [vmem:[%s13575_s1 + $0x620] sm:$0xff]  ;;  %v320_v12 = vld [vmem:[%s13575_s1 + $0x628] sm:$0xff] }
  0x4a   :  { %7084 = vmatprep.subr.bf16.mxu0 %v7083_v38  ;;  %v7135_v38 = vpack.c.bf16 %v314_v31, %v313_v30  ;;  %v7105_v44 = vpack.c.bf16 %v266_v36, %v265_v35  ;;  %v351_v13 = vld [vmem:[%s13575_s1 + $0x720] sm:$0xff]  ;;  %v352_v15 = vld [vmem:[%s13575_s1 + $0x728] sm:$0xff]  ;;  %v337_v16 = vld [vmem:[%s13575_s1 + $0x6b0] sm:$0xff] }
  0x4b   :  { %7114 = vmatpush3.bf16.msra.mxu1 %v7113_v37  ;;  %v297_v37 = vld [vmem:[%s13575_s1 + $0x570] sm:$0xff]  ;;  %v338_v17 = vld [vmem:[%s13575_s1 + $0x6b8] sm:$0xff]  ;;  %v339_v28 = vld [vmem:[%s13575_s1 + $0x6c0] sm:$0xff] }
  0x4c   :  { %7116 = vmatprep.subr.bf16.mxu1 %v7115_v42  ;;  %v363_v42 = vld [vmem:[%s13575_s1 + $0x780] sm:$0xff]  ;;  %v7137_v45 = vpack.c.bf16 %v298_v39, %v297_v37  ;;  %v369_v18 = vld [vmem:[%s13575_s1 + $0x7b0] sm:$0xff]  ;;  %v370_v19 = vld [vmem:[%s13575_s1 + $0x7b8] sm:$0xff] }
  0x4d   :  { %7086 = vmatpush3.bf16.msra.mxu0 %v7085_v48  ;;  %v316_v48 = vld [vmem:[%s13575_s1 + $0x608] sm:$0xff]  ;;  %v321_v23 = vld [vmem:[%s13575_s1 + $0x630] sm:$0xff]  ;;  %v322_v24 = vld [vmem:[%s13575_s1 + $0x638] sm:$0xff] }
  0x4e   :  { %7088 = vmatprep.subr.bf16.mxu0 %v7087_v50  ;;  %v7171_v50 = vpack.c.bf16 %v364_v43, %v363_v42  ;;  %v7141_v57 = vpack.c.bf16 %v316_v48, %v315_v47  ;;  %v353_v25 = vld [vmem:[%s13575_s1 + $0x730] sm:$0xff]  ;;  %v354_v27 = vld [vmem:[%s13575_s1 + $0x738] sm:$0xff]  ;;  %v340_v29 = vld [vmem:[%s13575_s1 + $0x6c8] sm:$0xff] }
  0x4f   :  { %7118 = vmatpush3.bf16.msra.mxu1 %v7117_v49  ;;  %v347_v49 = vld [vmem:[%s13575_s1 + $0x700] sm:$0xff]  ;;  %v372_v31 = vld [vmem:[%s13575_s1 + $0x7c8] sm:$0xff]  ;;  %v341_v40 = vld [vmem:[%s13575_s1 + $0x6d0] sm:$0xff] }
  0x50   :  { %7120 = vmatprep.subr.bf16.mxu1 %v7119_v54  ;;  %v365_v54 = vld [vmem:[%s13575_s1 + $0x790] sm:$0xff]  ;;  %v7173_v59 = vpack.c.bf16 %v348_v51, %v347_v49  ;;  %v371_v30 = vld [vmem:[%s13575_s1 + $0x7c0] sm:$0xff]  ;;  %v324_v36 = vld [vmem:[%s13575_s1 + $0x648] sm:$0xff] }
  0x51   :  { %7090 = vmatpush3.bf16.msra.mxu0 %v7089_v60  ;;  %v7143_v60 = vpack.c.bf16 %v334_v53, %v333_v52  ;;  %v7175_v0 = vpack.c.bf16 %v366_v55, %v365_v54  ;;  %v323_v35 = vld [vmem:[%s13575_s1 + $0x640] sm:$0xff]  ;;  %v356_v39 = vld [vmem:[%s13575_s1 + $0x748] sm:$0xff]  ;;  %v342_v41 = vld [vmem:[%s13575_s1 + $0x6d8] sm:$0xff] }
  0x52   :  { %7092 = vmatprep.subr.bf16.mxu0 %v7091_v62  ;;  %v318_v62 = vld [vmem:[%s13575_s1 + $0x618] sm:$0xff]  ;;  %v355_v37 = vld [vmem:[%s13575_s1 + $0x740] sm:$0xff]  ;;  %v373_v42 = vld [vmem:[%s13575_s1 + $0x7d0] sm:$0xff] }
  0x53   :  { %7122 = vmatpush3.bf16.msra.mxu1 %v7121_v61  ;;  %v317_v61 = vld [vmem:[%s13575_s1 + $0x610] sm:$0xff]  ;;  %v374_v43 = vld [vmem:[%s13575_s1 + $0x7d8] sm:$0xff]  ;;  %v343_v52 = vld [vmem:[%s13575_s1 + $0x6e0] sm:$0xff] }
  0x54   :  { %7124 = vmatprep.subr.bf16.mxu1 %v7123_v2  ;;  %v335_v2 = vld [vmem:[%s13575_s1 + $0x6a0] sm:$0xff]  ;;  %v7145_v7 = vpack.c.bf16 %v318_v62, %v317_v61  ;;  %v325_v47 = vld [vmem:[%s13575_s1 + $0x650] sm:$0xff]  ;;  %v326_v48 = vld [vmem:[%s13575_s1 + $0x658] sm:$0xff] }
  0x55   :  { %7094 = vmatpush3.bf16.msra.mxu0 %v7093_v8  ;;  %v42_v8 = vld [vmem:[%s13574_s0 + $0x78] sm:$0xff]  ;;  %v357_v49 = vld [vmem:[%s13575_s1 + $0x750] sm:$0xff]  ;;  %v344_v53 = vld [vmem:[%s13575_s1 + $0x6e8] sm:$0xff] }
  0x56   :  { %7096 = vmatprep.subr.bf16.mxu0 %v7095_v10  ;;  %v7147_v10 = vpack.c.bf16 %v336_v3, %v335_v2  ;;  %v358_v51 = vld [vmem:[%s13575_s1 + $0x758] sm:$0xff]  ;;  %v375_v54 = vld [vmem:[%s13575_s1 + $0x7e0] sm:$0xff]  ;;  %v376_v55 = vld [vmem:[%s13575_s1 + $0x7e8] sm:$0xff] }
  0x57   :  { %7126 = vmatpush3.bf16.msra.mxu1 %v7125_v9  ;;  %v7177_v9 = vpack.c.bf16 %v350_v1, %v349_v63  ;;  %v359_v61 = vld [vmem:[%s13575_s1 + $0x760] sm:$0xff]  ;;  %v7195_v62 = vpack.c.bf16 %v376_v55, %v375_v54  ;;  %v360_v63 = vld [vmem:[%s13575_s1 + $0x768] sm:$0xff]  ;;  %v346_v1 = vld [vmem:[%s13575_s1 + $0x6f8] sm:$0xff] }
  0x58   :  { %7128 = vmatprep.subr.bf16.mxu1 %v7127_v14  ;;  %v7179_v14 = vpack.c.bf16 %v368_v5, %v367_v4  ;;  %v377_v2 = vld [vmem:[%s13575_s1 + $0x7f0] sm:$0xff]  ;;  %v378_v3 = vld [vmem:[%s13575_s1 + $0x7f8] sm:$0xff]  ;;  %v7197_v5 = vpack.c.bf16 %v360_v63, %v359_v61 }
  0x59   :  { %7098 = vmatpush3.bf16.msra.mxu0 %v7097_v20  ;;  %v7149_v20 = vpack.c.bf16 %v320_v12, %v319_v11  ;;  %v362_v11 = vld [vmem:[%s13575_s1 + $0x778] sm:$0xff]  ;;  %v395_v12 = vld [vmem:[%s13575_s1 + $0x880] sm:$0xff]  ;;  %v433_v54 = vld [vmem:[%s13575_s1 + $0x9b0] sm:$0xff] }
  0x5a   :  { %7100 = vmatprep.subr.bf16.mxu0 %v7099_v22  ;;  %v7151_v22 = vpack.c.bf16 %v338_v17, %v337_v16  ;;  %v434_v55 = vld [vmem:[%s13575_s1 + $0x9b8] sm:$0xff]  ;;  %v417_v61 = vld [vmem:[%s13575_s1 + $0x930] sm:$0xff] }
  0x5b   :  { %7130 = vmatpush3.bf16.msra.mxu1 %v7129_v21  ;;  %v7181_v21 = vpack.c.bf16 %v352_v15, %v351_v13  ;;  %v396_v13 = vld [vmem:[%s13575_s1 + $0x888] sm:$0xff]  ;;  %v418_v63 = vld [vmem:[%s13575_s1 + $0x938] sm:$0xff] }
  0x5c   :  { %7132 = vmatprep.subr.bf16.mxu1 %v7131_v26  ;;  %v7183_v26 = vpack.c.bf16 %v370_v19, %v369_v18  ;;  %v428_v15 = vld [vmem:[%s13575_s1 + $0x988] sm:$0xff]  ;;  %v7203_v18 = vpack.c.bf16 %v396_v13, %v395_v12  ;;  %v379_v19 = vld [vmem:[%s13575_s1 + $0x800] sm:$0xff]  ;;  %v405_v12 = vld [vmem:[%s13575_s1 + $0x8d0] sm:$0xff] }
  0x5d   :  { %7102 = vmatpush3.bf16.msra.mxu0 %v7101_v32  ;;  %v7153_v32 = vpack.c.bf16 %v322_v24, %v321_v23  ;;  %v412_v23 = vld [vmem:[%s13575_s1 + $0x908] sm:$0xff]  ;;  %v397_v24 = vld [vmem:[%s13575_s1 + $0x890] sm:$0xff]  ;;  %v406_v13 = vld [vmem:[%s13575_s1 + $0x8d8] sm:$0xff] }
  0x5e   :  { %7104 = vmatprep.subr.bf16.mxu0 %v7103_v34  ;;  %v7155_v34 = vpack.c.bf16 %v340_v29, %v339_v28  ;;  %v39_v28 = vld [vmem:[%s13574_s0 + $0x60] sm:$0xff] }
  0x5f   :  { %7134 = vmatpush3.bf16.msra.mxu1 %v7133_v33  ;;  %v7185_v33 = vpack.c.bf16 %v354_v27, %v353_v25  ;;  %v398_v25 = vld [vmem:[%s13575_s1 + $0x898] sm:$0xff] }
  0x60   :  { %7136 = vmatprep.subr.bf16.mxu1 %v7135_v38  ;;  %v7187_v38 = vpack.c.bf16 %v372_v31, %v371_v30  ;;  %v430_v27 = vld [vmem:[%s13575_s1 + $0x998] sm:$0xff]  ;;  %v41_v30 = vld [vmem:[%s13574_s0 + $0x70] sm:$0xff] }
  0x61   :  { %7106 = vmatpush3.bf16.msra.mxu0 %v7105_v44  ;;  %v7157_v44 = vpack.c.bf16 %v324_v36, %v323_v35  ;;  %v413_v35 = vld [vmem:[%s13575_s1 + $0x910] sm:$0xff] }
  0x62   :  { %7140 = vmatprep.subr.bf16.mxu0 %v7139_v46  ;;  %v7159_v46 = vpack.c.bf16 %v342_v41, %v341_v40  ;;  %v431_v40 = vld [vmem:[%s13575_s1 + $0x9a0] sm:$0xff]  ;;  %v432_v41 = vld [vmem:[%s13575_s1 + $0x9a8] sm:$0xff] }
  0x63   :  { %7138 = vmatpush3.bf16.msra.mxu1 %v7137_v45  ;;  %v7189_v45 = vpack.c.bf16 %v356_v39, %v355_v37  ;;  %v414_v37 = vld [vmem:[%s13575_s1 + $0x918] sm:$0xff]  ;;  %v400_v39 = vld [vmem:[%s13575_s1 + $0x8a8] sm:$0xff] }
  0x64   :  { %7172 = vmatprep.subr.bf16.mxu1 %v7171_v50  ;;  %2011 = vmatmul.mubr.f32.vlgmr.msra.gmra.mrb[4].mxu0 %v35_v56  ;;  %v7191_v50 = vpack.c.bf16 %v374_v43, %v373_v42  ;;  %v7161_v56 = vpack.c.bf16 %v326_v48, %v325_v47  ;;  %v44_v42 = vld [vmem:[%s13574_s0 + $0x88] sm:$0xff]  ;;  %v383_v47 = vld [vmem:[%s13575_s1 + $0x820] sm:$0xff] }
  0x65   :  { %7142 = vmatpush3.bf16.msra.mxu0 %v7141_v57  ;;  %2150 = vmatprep.mubr.f32.mxu0 %v40_v6  ;;  %v7193_v57 = vpack.c.bf16 %v358_v51, %v357_v49  ;;  %v384_v48 = vld [vmem:[%s13575_s1 + $0x828] sm:$0xff]  ;;  %v415_v49 = vld [vmem:[%s13575_s1 + $0x920] sm:$0xff] }
  0x66   :  { %2081 = vmatmul.mubr.f32.vlgmr.msra.gmra.mrb[4].mxu1 %v37_v58  ;;  %7144 = vmatprep.subr.bf16.mxu0 %v7143_v60  ;;  %v7163_v58 = vpack.c.bf16 %v344_v53, %v343_v52  ;;  %v328_v60 = vld [vmem:[%s13575_s1 + $0x668] sm:$0xff]  ;;  %v401_v52 = vld [vmem:[%s13575_s1 + $0x8b0] sm:$0xff]  ;;  %v402_v53 = vld [vmem:[%s13575_s1 + $0x8b8] sm:$0xff] }
  0x67   :  { %7174 = vmatpush3.bf16.msra.mxu1 %v7173_v59  ;;  %2220 = vmatprep.mubr.f32.mxu1 %v42_v8  ;;  %v327_v59 = vld [vmem:[%s13575_s1 + $0x660] sm:$0xff]  ;;  %v330_v8 = vld [vmem:[%s13575_s1 + $0x678] sm:$0xff]  ;;  %v416_v51 = vld [vmem:[%s13575_s1 + $0x928] sm:$0xff] }
  0x68   :  { %7176 = vmatprep.subr.bf16.mxu1 %v7175_v0  ;;  %v345_v0 = vld [vmem:[%s13575_s1 + $0x6f0] sm:$0xff]  ;;  %v7165_v4 = vpack.c.bf16 %v328_v60, %v327_v59  ;;  %v386_v60 = vld [vmem:[%s13575_s1 + $0x838] sm:$0xff] }
  0x69   :  { %7146 = vmatpush3.bf16.msra.mxu0 %v7145_v7  ;;  %v7167_v6 = vpack.c.bf16 %v346_v1, %v345_v0  ;;  %v329_v7 = vld [vmem:[%s13575_s1 + $0x670] sm:$0xff]  ;;  %v403_v0 = vld [vmem:[%s13575_s1 + $0x8c0] sm:$0xff]  ;;  %v404_v1 = vld [vmem:[%s13575_s1 + $0x8c8] sm:$0xff] }
  0x6a   :  { %7148 = vmatprep.subr.bf16.mxu0 %v7147_v10  ;;  %v7199_v10 = vpack.c.bf16 %v378_v3, %v377_v2  ;;  %v7169_v16 = vpack.c.bf16 %v330_v8, %v329_v7  ;;  %v385_v59 = vld [vmem:[%s13575_s1 + $0x830] sm:$0xff]  ;;  %v435_v2 = vld [vmem:[%s13575_s1 + $0x9c0] sm:$0xff]  ;;  %v436_v3 = vld [vmem:[%s13575_s1 + $0x9c8] sm:$0xff] }
  0x6b   :  { %7178 = vmatpush3.bf16.msra.mxu1 %v7177_v9  ;;  %v361_v9 = vld [vmem:[%s13575_s1 + $0x770] sm:$0xff]  ;;  %v387_v7 = vld [vmem:[%s13575_s1 + $0x840] sm:$0xff]  ;;  %v388_v8 = vld [vmem:[%s13575_s1 + $0x848] sm:$0xff] }
  0x6c   :  { %7180 = vmatprep.subr.bf16.mxu1 %v7179_v14  ;;  %v427_v14 = vld [vmem:[%s13575_s1 + $0x980] sm:$0xff]  ;;  %v7201_v17 = vpack.c.bf16 %v362_v11, %v361_v9  ;;  %v420_v11 = vld [vmem:[%s13575_s1 + $0x948] sm:$0xff] }
  0x6d   :  { %7150 = vmatpush3.bf16.msra.mxu0 %v7149_v20  ;;  %v380_v20 = vld [vmem:[%s13575_s1 + $0x808] sm:$0xff]  ;;  %v419_v9 = vld [vmem:[%s13575_s1 + $0x940] sm:$0xff] }
  0x6e   :  { %7152 = vmatprep.subr.bf16.mxu0 %v7151_v22  ;;  %v7235_v22 = vpack.c.bf16 %v428_v15, %v427_v14  ;;  %v7205_v29 = vpack.c.bf16 %v380_v20, %v379_v19  ;;  %v437_v14 = vld [vmem:[%s13575_s1 + $0x9d0] sm:$0xff]  ;;  %v438_v15 = vld [vmem:[%s13575_s1 + $0x9d8] sm:$0xff] }
  0x6f   :  { %7182 = vmatpush3.bf16.msra.mxu1 %v7181_v21  ;;  %v411_v21 = vld [vmem:[%s13575_s1 + $0x900] sm:$0xff]  ;;  %v389_v19 = vld [vmem:[%s13575_s1 + $0x850] sm:$0xff]  ;;  %v390_v20 = vld [vmem:[%s13575_s1 + $0x858] sm:$0xff] }
  0x70   :  { %7184 = vmatprep.subr.bf16.mxu1 %v7183_v26  ;;  %v429_v26 = vld [vmem:[%s13575_s1 + $0x990] sm:$0xff]  ;;  %v7237_v31 = vpack.c.bf16 %v412_v23, %v411_v21  ;;  %v422_v23 = vld [vmem:[%s13575_s1 + $0x958] sm:$0xff] }
  0x71   :  { %7154 = vmatpush3.bf16.msra.mxu0 %v7153_v32  ;;  %v7207_v32 = vpack.c.bf16 %v398_v25, %v397_v24  ;;  %v7239_v36 = vpack.c.bf16 %v430_v27, %v429_v26  ;;  %v421_v21 = vld [vmem:[%s13575_s1 + $0x950] sm:$0xff]  ;;  %v407_v24 = vld [vmem:[%s13575_s1 + $0x8e0] sm:$0xff]  ;;  %v408_v25 = vld [vmem:[%s13575_s1 + $0x8e8] sm:$0xff] }
  0x72   :  { %7156 = vmatprep.subr.bf16.mxu0 %v7155_v34  ;;  %v382_v34 = vld [vmem:[%s13575_s1 + $0x818] sm:$0xff]  ;;  %v439_v26 = vld [vmem:[%s13575_s1 + $0x9e0] sm:$0xff]  ;;  %v440_v27 = vld [vmem:[%s13575_s1 + $0x9e8] sm:$0xff] }
  0x73   :  { %7186 = vmatpush3.bf16.msra.mxu1 %v7185_v33  ;;  %v381_v33 = vld [vmem:[%s13575_s1 + $0x810] sm:$0xff] }
  0x74   :  { %7188 = vmatprep.subr.bf16.mxu1 %v7187_v38  ;;  %v399_v38 = vld [vmem:[%s13575_s1 + $0x8a0] sm:$0xff]  ;;  %v7209_v43 = vpack.c.bf16 %v382_v34, %v381_v33  ;;  %v7259_v34 = vpack.c.bf16 %v440_v27, %v439_v26  ;;  %v497_v26 = vld [vmem:[%s13575_s1 + $0xbb0] sm:$0xff]  ;;  %v498_v27 = vld [vmem:[%s13575_s1 + $0xbb8] sm:$0xff] }
  0x75   :  { %7158 = vmatpush3.bf16.msra.mxu0 %v7157_v44  ;;  %v46_v44 = vld [vmem:[%s13574_s0 + $0x98] sm:$0xff]  ;;  %v423_v33 = vld [vmem:[%s13575_s1 + $0x960] sm:$0xff] }
  0x76   :  { %7160 = vmatprep.subr.bf16.mxu0 %v7159_v46  ;;  %v7211_v46 = vpack.c.bf16 %v400_v39, %v399_v38  ;;  %v441_v38 = vld [vmem:[%s13575_s1 + $0x9f0] sm:$0xff]  ;;  %v442_v39 = vld [vmem:[%s13575_s1 + $0x9f8] sm:$0xff] }
  0x77   :  { %7190 = vmatpush3.bf16.msra.mxu1 %v7189_v45  ;;  %v7241_v45 = vpack.c.bf16 %v414_v37, %v413_v35  ;;  %v424_v35 = vld [vmem:[%s13575_s1 + $0x968] sm:$0xff]  ;;  %v410_v37 = vld [vmem:[%s13575_s1 + $0x8f8] sm:$0xff] }
  0x78   :  { %7192 = vmatprep.subr.bf16.mxu1 %v7191_v50  ;;  %v7243_v50 = vpack.c.bf16 %v432_v41, %v431_v40  ;;  %v7261_v41 = vpack.c.bf16 %v424_v35, %v423_v33  ;;  %v481_v33 = vld [vmem:[%s13575_s1 + $0xb30] sm:$0xff]  ;;  %v482_v35 = vld [vmem:[%s13575_s1 + $0xb38] sm:$0xff] }
  0x79   :  { %7162 = vmatpush3.bf16.msra.mxu0 %v7161_v56  ;;  %v7213_v56 = vpack.c.bf16 %v384_v48, %v383_v47  ;;  %v426_v47 = vld [vmem:[%s13575_s1 + $0x978] sm:$0xff]  ;;  %v459_v48 = vld [vmem:[%s13575_s1 + $0xa80] sm:$0xff] }
  0x7a   :  { %7164 = vmatprep.subr.bf16.mxu0 %v7163_v58  ;;  %v7215_v58 = vpack.c.bf16 %v402_v53, %v401_v52 }
  0x7b   :  { %7194 = vmatpush3.bf16.msra.mxu1 %v7193_v57  ;;  %v7245_v57 = vpack.c.bf16 %v416_v51, %v415_v49  ;;  %v460_v49 = vld [vmem:[%s13575_s1 + $0xa88] sm:$0xff] }
  0x7c   :  { %7196 = vmatprep.subr.bf16.mxu1 %v7195_v62  ;;  %v7247_v62 = vpack.c.bf16 %v434_v55, %v433_v54  ;;  %v492_v51 = vld [vmem:[%s13575_s1 + $0xb88] sm:$0xff]  ;;  %v7267_v54 = vpack.c.bf16 %v460_v49, %v459_v48  ;;  %v443_v55 = vld [vmem:[%s13575_s1 + $0xa00] sm:$0xff]  ;;  %v469_v48 = vld [vmem:[%s13575_s1 + $0xad0] sm:$0xff] }
  0x7d   :  { %7166 = vmatpush3.bf16.msra.mxu0 %v7165_v4  ;;  %v7217_v4 = vpack.c.bf16 %v386_v60, %v385_v59  ;;  %v476_v59 = vld [vmem:[%s13575_s1 + $0xb08] sm:$0xff]  ;;  %v461_v60 = vld [vmem:[%s13575_s1 + $0xa90] sm:$0xff]  ;;  %v470_v49 = vld [vmem:[%s13575_s1 + $0xad8] sm:$0xff] }
  0x7e   :  { %7168 = vmatprep.subr.bf16.mxu0 %v7167_v6  ;;  %v7219_v6 = vpack.c.bf16 %v404_v1, %v403_v0  ;;  %v43_v0 = vld [vmem:[%s13574_s0 + $0x80] sm:$0xff] }
  0x7f   :  { %7198 = vmatpush3.bf16.msra.mxu1 %v7197_v5  ;;  %v7249_v5 = vpack.c.bf16 %v418_v63, %v417_v61  ;;  %v462_v61 = vld [vmem:[%s13575_s1 + $0xa98] sm:$0xff] }
  0x80   :  { %7200 = vmatprep.subr.bf16.mxu1 %v7199_v10  ;;  %v7251_v10 = vpack.c.bf16 %v436_v3, %v435_v2  ;;  %v494_v63 = vld [vmem:[%s13575_s1 + $0xb98] sm:$0xff]  ;;  %v45_v2 = vld [vmem:[%s13574_s0 + $0x90] sm:$0xff] }
  0x81   :  { %7170 = vmatpush3.bf16.msra.mxu0 %v7169_v16  ;;  %v7221_v16 = vpack.c.bf16 %v388_v8, %v387_v7  ;;  %v477_v7 = vld [vmem:[%s13575_s1 + $0xb10] sm:$0xff] }
  0x82   :  { %7204 = vmatprep.subr.bf16.mxu0 %v7203_v18  ;;  %v7223_v18 = vpack.c.bf16 %v406_v13, %v405_v12  ;;  %v495_v12 = vld [vmem:[%s13575_s1 + $0xba0] sm:$0xff]  ;;  %v496_v13 = vld [vmem:[%s13575_s1 + $0xba8] sm:$0xff] }
  0x83   :  { %7202 = vmatpush3.bf16.msra.mxu1 %v7201_v17  ;;  %v7253_v17 = vpack.c.bf16 %v420_v11, %v419_v9  ;;  %v478_v9 = vld [vmem:[%s13575_s1 + $0xb18] sm:$0xff]  ;;  %v464_v11 = vld [vmem:[%s13575_s1 + $0xaa8] sm:$0xff] }
  0x84   :  { %7236 = vmatprep.subr.bf16.mxu1 %v7235_v22  ;;  %2151 = vmatmul.mubr.f32.vlgmr.msra.gmra.mrb[6].mxu0 %v39_v28  ;;  %v7255_v22 = vpack.c.bf16 %v438_v15, %v437_v14  ;;  %v7225_v28 = vpack.c.bf16 %v390_v20, %v389_v19  ;;  %v48_v14 = vld [vmem:[%s13574_s0 + $0xa8] sm:$0xff]  ;;  %v447_v19 = vld [vmem:[%s13575_s1 + $0xa20] sm:$0xff] }
  0x85   :  { %7206 = vmatpush3.bf16.msra.mxu0 %v7205_v29  ;;  %2290 = vmatprep.mubr.f32.mxu0 %v44_v42  ;;  %v7257_v29 = vpack.c.bf16 %v422_v23, %v421_v21  ;;  %v448_v20 = vld [vmem:[%s13575_s1 + $0xa28] sm:$0xff]  ;;  %v479_v21 = vld [vmem:[%s13575_s1 + $0xb20] sm:$0xff] }
  0x86   :  { %2221 = vmatmul.mubr.f32.vlgmr.msra.gmra.mrb[6].mxu1 %v41_v30  ;;  %7208 = vmatprep.subr.bf16.mxu0 %v7207_v32  ;;  %v7227_v30 = vpack.c.bf16 %v408_v25, %v407_v24  ;;  %v392_v32 = vld [vmem:[%s13575_s1 + $0x868] sm:$0xff]  ;;  %v465_v24 = vld [vmem:[%s13575_s1 + $0xab0] sm:$0xff]  ;;  %v466_v25 = vld [vmem:[%s13575_s1 + $0xab8] sm:$0xff] }
  0x87   :  { %7238 = vmatpush3.bf16.msra.mxu1 %v7237_v31  ;;  %2360 = vmatprep.mubr.f32.mxu1 %v46_v44  ;;  %v391_v31 = vld [vmem:[%s13575_s1 + $0x860] sm:$0xff]  ;;  %v394_v44 = vld [vmem:[%s13575_s1 + $0x878] sm:$0xff]  ;;  %v480_v23 = vld [vmem:[%s13575_s1 + $0xb28] sm:$0xff] }
  0x88   :  { %7240 = vmatprep.subr.bf16.mxu1 %v7239_v36  ;;  %v409_v36 = vld [vmem:[%s13575_s1 + $0x8f0] sm:$0xff]  ;;  %v7229_v40 = vpack.c.bf16 %v392_v32, %v391_v31  ;;  %v450_v32 = vld [vmem:[%s13575_s1 + $0xa38] sm:$0xff] }
  0x89   :  { %7210 = vmatpush3.bf16.msra.mxu0 %v7209_v43  ;;  %v7231_v42 = vpack.c.bf16 %v410_v37, %v409_v36  ;;  %v393_v43 = vld [vmem:[%s13575_s1 + $0x870] sm:$0xff]  ;;  %v467_v36 = vld [vmem:[%s13575_s1 + $0xac0] sm:$0xff]  ;;  %v468_v37 = vld [vmem:[%s13575_s1 + $0xac8] sm:$0xff] }
  0x8a   :  { %7212 = vmatprep.subr.bf16.mxu0 %v7211_v46  ;;  %v7263_v46 = vpack.c.bf16 %v442_v39, %v441_v38  ;;  %v7233_v52 = vpack.c.bf16 %v394_v44, %v393_v43  ;;  %v449_v31 = vld [vmem:[%s13575_s1 + $0xa30] sm:$0xff]  ;;  %v499_v38 = vld [vmem:[%s13575_s1 + $0xbc0] sm:$0xff]  ;;  %v500_v39 = vld [vmem:[%s13575_s1 + $0xbc8] sm:$0xff] }
  0x8b   :  { %7242 = vmatpush3.bf16.msra.mxu1 %v7241_v45  ;;  %v425_v45 = vld [vmem:[%s13575_s1 + $0x970] sm:$0xff]  ;;  %v451_v43 = vld [vmem:[%s13575_s1 + $0xa40] sm:$0xff]  ;;  %v452_v44 = vld [vmem:[%s13575_s1 + $0xa48] sm:$0xff] }
  0x8c   :  { %7244 = vmatprep.subr.bf16.mxu1 %v7243_v50  ;;  %v491_v50 = vld [vmem:[%s13575_s1 + $0xb80] sm:$0xff]  ;;  %v7265_v53 = vpack.c.bf16 %v426_v47, %v425_v45  ;;  %v484_v47 = vld [vmem:[%s13575_s1 + $0xb48] sm:$0xff] }
  0x8d   :  { %7214 = vmatpush3.bf16.msra.mxu0 %v7213_v56  ;;  %v444_v56 = vld [vmem:[%s13575_s1 + $0xa08] sm:$0xff]  ;;  %v483_v45 = vld [vmem:[%s13575_s1 + $0xb40] sm:$0xff] }
  0x8e   :  { %7216 = vmatprep.subr.bf16.mxu0 %v7215_v58  ;;  %v7299_v58 = vpack.c.bf16 %v492_v51, %v491_v50  ;;  %v7269_v1 = vpack.c.bf16 %v444_v56, %v443_v55  ;;  %v501_v50 = vld [vmem:[%s13575_s1 + $0xbd0] sm:$0xff]  ;;  %v502_v51 = vld [vmem:[%s13575_s1 + $0xbd8] sm:$0xff] }
  0x8f   :  { %7246 = vmatpush3.bf16.msra.mxu1 %v7245_v57  ;;  %v475_v57 = vld [vmem:[%s13575_s1 + $0xb00] sm:$0xff]  ;;  %v453_v55 = vld [vmem:[%s13575_s1 + $0xa50] sm:$0xff]  ;;  %v454_v56 = vld [vmem:[%s13575_s1 + $0xa58] sm:$0xff] }
  0x90   :  { %7248 = vmatprep.subr.bf16.mxu1 %v7247_v62  ;;  %v493_v62 = vld [vmem:[%s13575_s1 + $0xb90] sm:$0xff]  ;;  %v7301_v3 = vpack.c.bf16 %v476_v59, %v475_v57  ;;  %v486_v59 = vld [vmem:[%s13575_s1 + $0xb58] sm:$0xff] }
  0x91   :  { %7218 = vmatpush3.bf16.msra.mxu0 %v7217_v4  ;;  %v7271_v4 = vpack.c.bf16 %v462_v61, %v461_v60  ;;  %v7303_v8 = vpack.c.bf16 %v494_v63, %v493_v62  ;;  %v485_v57 = vld [vmem:[%s13575_s1 + $0xb50] sm:$0xff]  ;;  %v471_v60 = vld [vmem:[%s13575_s1 + $0xae0] sm:$0xff]  ;;  %v472_v61 = vld [vmem:[%s13575_s1 + $0xae8] sm:$0xff] }
  0x92   :  { %7220 = vmatprep.subr.bf16.mxu0 %v7219_v6  ;;  %v446_v6 = vld [vmem:[%s13575_s1 + $0xa18] sm:$0xff]  ;;  %v503_v62 = vld [vmem:[%s13575_s1 + $0xbe0] sm:$0xff]  ;;  %v504_v63 = vld [vmem:[%s13575_s1 + $0xbe8] sm:$0xff] }
  0x93   :  { %7250 = vmatpush3.bf16.msra.mxu1 %v7249_v5  ;;  %v445_v5 = vld [vmem:[%s13575_s1 + $0xa10] sm:$0xff] }
  0x94   :  { %7252 = vmatprep.subr.bf16.mxu1 %v7251_v10  ;;  %v463_v10 = vld [vmem:[%s13575_s1 + $0xaa0] sm:$0xff]  ;;  %v7273_v15 = vpack.c.bf16 %v446_v6, %v445_v5  ;;  %v7323_v6 = vpack.c.bf16 %v504_v63, %v503_v62  ;;  %v561_v62 = vld [vmem:[%s13575_s1 + $0xdb0] sm:$0xff]  ;;  %v562_v63 = vld [vmem:[%s13575_s1 + $0xdb8] sm:$0xff] }
  0x95   :  { %7222 = vmatpush3.bf16.msra.mxu0 %v7221_v16  ;;  %v50_v16 = vld [vmem:[%s13574_s0 + $0xb8] sm:$0xff]  ;;  %v487_v5 = vld [vmem:[%s13575_s1 + $0xb60] sm:$0xff] }
  0x96   :  { %7224 = vmatprep.subr.bf16.mxu0 %v7223_v18  ;;  %v7275_v18 = vpack.c.bf16 %v464_v11, %v463_v10  ;;  %v505_v10 = vld [vmem:[%s13575_s1 + $0xbf0] sm:$0xff]  ;;  %v506_v11 = vld [vmem:[%s13575_s1 + $0xbf8] sm:$0xff] }
  0x97   :  { %7254 = vmatpush3.bf16.msra.mxu1 %v7253_v17  ;;  %v7305_v17 = vpack.c.bf16 %v478_v9, %v477_v7  ;;  %v488_v7 = vld [vmem:[%s13575_s1 + $0xb68] sm:$0xff]  ;;  %v474_v9 = vld [vmem:[%s13575_s1 + $0xaf8] sm:$0xff] }
  0x98   :  { %7256 = vmatprep.subr.bf16.mxu1 %v7255_v22  ;;  %v7307_v22 = vpack.c.bf16 %v496_v13, %v495_v12  ;;  %v7325_v13 = vpack.c.bf16 %v488_v7, %v487_v5  ;;  %v545_v5 = vld [vmem:[%s13575_s1 + $0xd30] sm:$0xff]  ;;  %v546_v7 = vld [vmem:[%s13575_s1 + $0xd38] sm:$0xff] }
  0x99   :  { %7226 = vmatpush3.bf16.msra.mxu0 %v7225_v28  ;;  %v7277_v28 = vpack.c.bf16 %v448_v20, %v447_v19  ;;  %v490_v19 = vld [vmem:[%s13575_s1 + $0xb78] sm:$0xff]  ;;  %v523_v20 = vld [vmem:[%s13575_s1 + $0xc80] sm:$0xff] }
  0x9a   :  { %7228 = vmatprep.subr.bf16.mxu0 %v7227_v30  ;;  %v7279_v30 = vpack.c.bf16 %v466_v25, %v465_v24 }
  0x9b   :  { %7258 = vmatpush3.bf16.msra.mxu1 %v7257_v29  ;;  %v7309_v29 = vpack.c.bf16 %v480_v23, %v479_v21  ;;  %v524_v21 = vld [vmem:[%s13575_s1 + $0xc88] sm:$0xff] }
  0x9c   :  { %7260 = vmatprep.subr.bf16.mxu1 %v7259_v34  ;;  %v7311_v34 = vpack.c.bf16 %v498_v27, %v497_v26  ;;  %v556_v23 = vld [vmem:[%s13575_s1 + $0xd88] sm:$0xff]  ;;  %v7331_v26 = vpack.c.bf16 %v524_v21, %v523_v20  ;;  %v507_v27 = vld [vmem:[%s13575_s1 + $0xc00] sm:$0xff]  ;;  %v533_v20 = vld [vmem:[%s13575_s1 + $0xcd0] sm:$0xff] }
  0x9d   :  { %7230 = vmatpush3.bf16.msra.mxu0 %v7229_v40  ;;  %v7281_v40 = vpack.c.bf16 %v450_v32, %v449_v31  ;;  %v540_v31 = vld [vmem:[%s13575_s1 + $0xd08] sm:$0xff]  ;;  %v525_v32 = vld [vmem:[%s13575_s1 + $0xc90] sm:$0xff]  ;;  %v534_v21 = vld [vmem:[%s13575_s1 + $0xcd8] sm:$0xff] }
  0x9e   :  { %7232 = vmatprep.subr.bf16.mxu0 %v7231_v42  ;;  %v7283_v42 = vpack.c.bf16 %v468_v37, %v467_v36  ;;  %v47_v36 = vld [vmem:[%s13574_s0 + $0xa0] sm:$0xff] }
  0x9f   :  { %7262 = vmatpush3.bf16.msra.mxu1 %v7261_v41  ;;  %v7313_v41 = vpack.c.bf16 %v482_v35, %v481_v33  ;;  %v526_v33 = vld [vmem:[%s13575_s1 + $0xc98] sm:$0xff] }
  0xa0   :  { %7264 = vmatprep.subr.bf16.mxu1 %v7263_v46  ;;  %v7315_v46 = vpack.c.bf16 %v500_v39, %v499_v38  ;;  %v558_v35 = vld [vmem:[%s13575_s1 + $0xd98] sm:$0xff]  ;;  %v49_v38 = vld [vmem:[%s13574_s0 + $0xb0] sm:$0xff] }
  0xa1   :  { %7234 = vmatpush3.bf16.msra.mxu0 %v7233_v52  ;;  %v7285_v52 = vpack.c.bf16 %v452_v44, %v451_v43  ;;  %v541_v43 = vld [vmem:[%s13575_s1 + $0xd10] sm:$0xff] }
  0xa2   :  { %7268 = vmatprep.subr.bf16.mxu0 %v7267_v54  ;;  %v7287_v54 = vpack.c.bf16 %v470_v49, %v469_v48  ;;  %v559_v48 = vld [vmem:[%s13575_s1 + $0xda0] sm:$0xff]  ;;  %v560_v49 = vld [vmem:[%s13575_s1 + $0xda8] sm:$0xff] }
  0xa3   :  { %7266 = vmatpush3.bf16.msra.mxu1 %v7265_v53  ;;  %v7317_v53 = vpack.c.bf16 %v484_v47, %v483_v45  ;;  %v542_v45 = vld [vmem:[%s13575_s1 + $0xd18] sm:$0xff]  ;;  %v528_v47 = vld [vmem:[%s13575_s1 + $0xca8] sm:$0xff] }
  0xa4   :  { %7300 = vmatprep.subr.bf16.mxu1 %v7299_v58  ;;  %2291 = vmatmul.mubr.f32.vlgmr.msra.gmra.mrb[8].mxu0 %v43_v0  ;;  %v7319_v58 = vpack.c.bf16 %v502_v51, %v501_v50  ;;  %v7289_v0 = vpack.c.bf16 %v454_v56, %v453_v55  ;;  %v52_v50 = vld [vmem:[%s13574_s0 + $0xc8] sm:$0xff]  ;;  %v511_v55 = vld [vmem:[%s13575_s1 + $0xc20] sm:$0xff] }
  0xa5   :  { %7270 = vmatpush3.bf16.msra.mxu0 %v7269_v1  ;;  %2430 = vmatprep.mubr.f32.mxu0 %v48_v14  ;;  %v7321_v1 = vpack.c.bf16 %v486_v59, %v485_v57  ;;  %v512_v56 = vld [vmem:[%s13575_s1 + $0xc28] sm:$0xff]  ;;  %v543_v57 = vld [vmem:[%s13575_s1 + $0xd20] sm:$0xff] }
  0xa6   :  { %2361 = vmatmul.mubr.f32.vlgmr.msra.gmra.mrb[8].mxu1 %v45_v2  ;;  %7272 = vmatprep.subr.bf16.mxu0 %v7271_v4  ;;  %v7291_v2 = vpack.c.bf16 %v472_v61, %v471_v60  ;;  %v456_v4 = vld [vmem:[%s13575_s1 + $0xa68] sm:$0xff]  ;;  %v529_v60 = vld [vmem:[%s13575_s1 + $0xcb0] sm:$0xff]  ;;  %v530_v61 = vld [vmem:[%s13575_s1 + $0xcb8] sm:$0xff] }
  0xa7   :  { %7302 = vmatpush3.bf16.msra.mxu1 %v7301_v3  ;;  %2500 = vmatprep.mubr.f32.mxu1 %v50_v16  ;;  %v455_v3 = vld [vmem:[%s13575_s1 + $0xa60] sm:$0xff]  ;;  %v458_v16 = vld [vmem:[%s13575_s1 + $0xa78] sm:$0xff]  ;;  %v544_v59 = vld [vmem:[%s13575_s1 + $0xd28] sm:$0xff] }
  0xa8   :  { %7304 = vmatprep.subr.bf16.mxu1 %v7303_v8  ;;  %v473_v8 = vld [vmem:[%s13575_s1 + $0xaf0] sm:$0xff]  ;;  %v7293_v12 = vpack.c.bf16 %v456_v4, %v455_v3  ;;  %v514_v4 = vld [vmem:[%s13575_s1 + $0xc38] sm:$0xff] }
  0xa9   :  { %7274 = vmatpush3.bf16.msra.mxu0 %v7273_v15  ;;  %v7295_v14 = vpack.c.bf16 %v474_v9, %v473_v8  ;;  %v457_v15 = vld [vmem:[%s13575_s1 + $0xa70] sm:$0xff]  ;;  %v531_v8 = vld [vmem:[%s13575_s1 + $0xcc0] sm:$0xff]  ;;  %v532_v9 = vld [vmem:[%s13575_s1 + $0xcc8] sm:$0xff] }
  0xaa   :  { %7276 = vmatprep.subr.bf16.mxu0 %v7275_v18  ;;  %v7327_v18 = vpack.c.bf16 %v506_v11, %v505_v10  ;;  %v7297_v24 = vpack.c.bf16 %v458_v16, %v457_v15  ;;  %v513_v3 = vld [vmem:[%s13575_s1 + $0xc30] sm:$0xff]  ;;  %v563_v10 = vld [vmem:[%s13575_s1 + $0xdc0] sm:$0xff]  ;;  %v564_v11 = vld [vmem:[%s13575_s1 + $0xdc8] sm:$0xff] }
  0xab   :  { %7306 = vmatpush3.bf16.msra.mxu1 %v7305_v17  ;;  %v489_v17 = vld [vmem:[%s13575_s1 + $0xb70] sm:$0xff]  ;;  %v515_v15 = vld [vmem:[%s13575_s1 + $0xc40] sm:$0xff]  ;;  %v516_v16 = vld [vmem:[%s13575_s1 + $0xc48] sm:$0xff] }
  0xac   :  { %7308 = vmatprep.subr.bf16.mxu1 %v7307_v22  ;;  %v555_v22 = vld [vmem:[%s13575_s1 + $0xd80] sm:$0xff]  ;;  %v7329_v25 = vpack.c.bf16 %v490_v19, %v489_v17  ;;  %v548_v19 = vld [vmem:[%s13575_s1 + $0xd48] sm:$0xff] }
  0xad   :  { %7278 = vmatpush3.bf16.msra.mxu0 %v7277_v28  ;;  %v508_v28 = vld [vmem:[%s13575_s1 + $0xc08] sm:$0xff]  ;;  %v547_v17 = vld [vmem:[%s13575_s1 + $0xd40] sm:$0xff] }
  0xae   :  { %7280 = vmatprep.subr.bf16.mxu0 %v7279_v30  ;;  %v7363_v30 = vpack.c.bf16 %v556_v23, %v555_v22  ;;  %v7333_v37 = vpack.c.bf16 %v508_v28, %v507_v27  ;;  %v565_v22 = vld [vmem:[%s13575_s1 + $0xdd0] sm:$0xff]  ;;  %v566_v23 = vld [vmem:[%s13575_s1 + $0xdd8] sm:$0xff] }
  0xaf   :  { %7310 = vmatpush3.bf16.msra.mxu1 %v7309_v29  ;;  %v539_v29 = vld [vmem:[%s13575_s1 + $0xd00] sm:$0xff]  ;;  %v517_v27 = vld [vmem:[%s13575_s1 + $0xc50] sm:$0xff]  ;;  %v518_v28 = vld [vmem:[%s13575_s1 + $0xc58] sm:$0xff] }
  0xb0   :  { %7312 = vmatprep.subr.bf16.mxu1 %v7311_v34  ;;  %v557_v34 = vld [vmem:[%s13575_s1 + $0xd90] sm:$0xff]  ;;  %v7365_v39 = vpack.c.bf16 %v540_v31, %v539_v29  ;;  %v550_v31 = vld [vmem:[%s13575_s1 + $0xd58] sm:$0xff] }
  0xb1   :  { %7282 = vmatpush3.bf16.msra.mxu0 %v7281_v40  ;;  %v7335_v40 = vpack.c.bf16 %v526_v33, %v525_v32  ;;  %v7367_v44 = vpack.c.bf16 %v558_v35, %v557_v34  ;;  %v549_v29 = vld [vmem:[%s13575_s1 + $0xd50] sm:$0xff]  ;;  %v535_v32 = vld [vmem:[%s13575_s1 + $0xce0] sm:$0xff]  ;;  %v536_v33 = vld [vmem:[%s13575_s1 + $0xce8] sm:$0xff] }
  0xb2   :  { %7284 = vmatprep.subr.bf16.mxu0 %v7283_v42  ;;  %v510_v42 = vld [vmem:[%s13575_s1 + $0xc18] sm:$0xff]  ;;  %v567_v34 = vld [vmem:[%s13575_s1 + $0xde0] sm:$0xff]  ;;  %v568_v35 = vld [vmem:[%s13575_s1 + $0xde8] sm:$0xff] }
  0xb3   :  { %7314 = vmatpush3.bf16.msra.mxu1 %v7313_v41  ;;  %v509_v41 = vld [vmem:[%s13575_s1 + $0xc10] sm:$0xff] }
  0xb4   :  { %7316 = vmatprep.subr.bf16.mxu1 %v7315_v46  ;;  %v527_v46 = vld [vmem:[%s13575_s1 + $0xca0] sm:$0xff]  ;;  %v7337_v51 = vpack.c.bf16 %v510_v42, %v509_v41  ;;  %v7387_v42 = vpack.c.bf16 %v568_v35, %v567_v34  ;;  %v625_v34 = vld [vmem:[%s13575_s1 + $0xfb0] sm:$0xff]  ;;  %v626_v35 = vld [vmem:[%s13575_s1 + $0xfb8] sm:$0xff] }
  0xb5   :  { %7286 = vmatpush3.bf16.msra.mxu0 %v7285_v52  ;;  %v54_v52 = vld [vmem:[%s13574_s0 + $0xd8] sm:$0xff]  ;;  %v551_v41 = vld [vmem:[%s13575_s1 + $0xd60] sm:$0xff] }
  0xb6   :  { %7288 = vmatprep.subr.bf16.mxu0 %v7287_v54  ;;  %v7339_v54 = vpack.c.bf16 %v528_v47, %v527_v46  ;;  %v569_v46 = vld [vmem:[%s13575_s1 + $0xdf0] sm:$0xff]  ;;  %v570_v47 = vld [vmem:[%s13575_s1 + $0xdf8] sm:$0xff] }
  0xb7   :  { %7318 = vmatpush3.bf16.msra.mxu1 %v7317_v53  ;;  %v7369_v53 = vpack.c.bf16 %v542_v45, %v541_v43  ;;  %v552_v43 = vld [vmem:[%s13575_s1 + $0xd68] sm:$0xff]  ;;  %v538_v45 = vld [vmem:[%s13575_s1 + $0xcf8] sm:$0xff] }
  0xb8   :  { %7320 = vmatprep.subr.bf16.mxu1 %v7319_v58  ;;  %v7371_v58 = vpack.c.bf16 %v560_v49, %v559_v48  ;;  %v7389_v49 = vpack.c.bf16 %v552_v43, %v551_v41  ;;  %v609_v41 = vld [vmem:[%s13575_s1 + $0xf30] sm:$0xff]  ;;  %v610_v43 = vld [vmem:[%s13575_s1 + $0xf38] sm:$0xff] }
  0xb9   :  { %7290 = vmatpush3.bf16.msra.mxu0 %v7289_v0  ;;  %v7341_v0 = vpack.c.bf16 %v512_v56, %v511_v55  ;;  %v554_v55 = vld [vmem:[%s13575_s1 + $0xd78] sm:$0xff]  ;;  %v587_v56 = vld [vmem:[%s13575_s1 + $0xe80] sm:$0xff] }
  0xba   :  { %7292 = vmatprep.subr.bf16.mxu0 %v7291_v2  ;;  %v7343_v2 = vpack.c.bf16 %v530_v61, %v529_v60 }
  0xbb   :  { %7322 = vmatpush3.bf16.msra.mxu1 %v7321_v1  ;;  %v7373_v1 = vpack.c.bf16 %v544_v59, %v543_v57  ;;  %v588_v57 = vld [vmem:[%s13575_s1 + $0xe88] sm:$0xff] }
  0xbc   :  { %7324 = vmatprep.subr.bf16.mxu1 %v7323_v6  ;;  %v7375_v6 = vpack.c.bf16 %v562_v63, %v561_v62  ;;  %v620_v59 = vld [vmem:[%s13575_s1 + $0xf88] sm:$0xff]  ;;  %v7395_v62 = vpack.c.bf16 %v588_v57, %v587_v56  ;;  %v571_v63 = vld [vmem:[%s13575_s1 + $0xe00] sm:$0xff]  ;;  %v597_v56 = vld [vmem:[%s13575_s1 + $0xed0] sm:$0xff] }
  0xbd   :  { %7294 = vmatpush3.bf16.msra.mxu0 %v7293_v12  ;;  %v7345_v12 = vpack.c.bf16 %v514_v4, %v513_v3  ;;  %v604_v3 = vld [vmem:[%s13575_s1 + $0xf08] sm:$0xff]  ;;  %v589_v4 = vld [vmem:[%s13575_s1 + $0xe90] sm:$0xff]  ;;  %v598_v57 = vld [vmem:[%s13575_s1 + $0xed8] sm:$0xff] }
  0xbe   :  { %7296 = vmatprep.subr.bf16.mxu0 %v7295_v14  ;;  %v7347_v14 = vpack.c.bf16 %v532_v9, %v531_v8  ;;  %v51_v8 = vld [vmem:[%s13574_s0 + $0xc0] sm:$0xff] }
  0xbf   :  { %7326 = vmatpush3.bf16.msra.mxu1 %v7325_v13  ;;  %v7377_v13 = vpack.c.bf16 %v546_v7, %v545_v5  ;;  %v590_v5 = vld [vmem:[%s13575_s1 + $0xe98] sm:$0xff] }
  0xc0   :  { %7328 = vmatprep.subr.bf16.mxu1 %v7327_v18  ;;  %v7379_v18 = vpack.c.bf16 %v564_v11, %v563_v10  ;;  %v622_v7 = vld [vmem:[%s13575_s1 + $0xf98] sm:$0xff]  ;;  %v53_v10 = vld [vmem:[%s13574_s0 + $0xd0] sm:$0xff] }
  0xc1   :  { %7298 = vmatpush3.bf16.msra.mxu0 %v7297_v24  ;;  %v7349_v24 = vpack.c.bf16 %v516_v16, %v515_v15  ;;  %v605_v15 = vld [vmem:[%s13575_s1 + $0xf10] sm:$0xff] }
  0xc2   :  { %7332 = vmatprep.subr.bf16.mxu0 %v7331_v26  ;;  %v7351_v26 = vpack.c.bf16 %v534_v21, %v533_v20  ;;  %v623_v20 = vld [vmem:[%s13575_s1 + $0xfa0] sm:$0xff]  ;;  %v624_v21 = vld [vmem:[%s13575_s1 + $0xfa8] sm:$0xff] }
  0xc3   :  { %7330 = vmatpush3.bf16.msra.mxu1 %v7329_v25  ;;  %v7381_v25 = vpack.c.bf16 %v548_v19, %v547_v17  ;;  %v606_v17 = vld [vmem:[%s13575_s1 + $0xf18] sm:$0xff]  ;;  %v592_v19 = vld [vmem:[%s13575_s1 + $0xea8] sm:$0xff] }
  0xc4   :  { %7364 = vmatprep.subr.bf16.mxu1 %v7363_v30  ;;  %2431 = vmatmul.mubr.f32.vlgmr.msra.gmra.mrb[10].mxu0 %v47_v36  ;;  %v7383_v30 = vpack.c.bf16 %v566_v23, %v565_v22  ;;  %v7353_v36 = vpack.c.bf16 %v518_v28, %v517_v27  ;;  %v56_v22 = vld [vmem:[%s13574_s0 + $0xe8] sm:$0xff]  ;;  %v575_v27 = vld [vmem:[%s13575_s1 + $0xe20] sm:$0xff] }
  0xc5   :  { %7334 = vmatpush3.bf16.msra.mxu0 %v7333_v37  ;;  %2570 = vmatprep.mubr.f32.mxu0 %v52_v50  ;;  %v7385_v37 = vpack.c.bf16 %v550_v31, %v549_v29  ;;  %v576_v28 = vld [vmem:[%s13575_s1 + $0xe28] sm:$0xff]  ;;  %v607_v29 = vld [vmem:[%s13575_s1 + $0xf20] sm:$0xff] }
  0xc6   :  { %2501 = vmatmul.mubr.f32.vlgmr.msra.gmra.mrb[10].mxu1 %v49_v38  ;;  %7336 = vmatprep.subr.bf16.mxu0 %v7335_v40  ;;  %v7355_v38 = vpack.c.bf16 %v536_v33, %v535_v32  ;;  %v520_v40 = vld [vmem:[%s13575_s1 + $0xc68] sm:$0xff]  ;;  %v593_v32 = vld [vmem:[%s13575_s1 + $0xeb0] sm:$0xff]  ;;  %v594_v33 = vld [vmem:[%s13575_s1 + $0xeb8] sm:$0xff] }
  0xc7   :  { %7366 = vmatpush3.bf16.msra.mxu1 %v7365_v39  ;;  %2640 = vmatprep.mubr.f32.mxu1 %v54_v52  ;;  %v519_v39 = vld [vmem:[%s13575_s1 + $0xc60] sm:$0xff]  ;;  %v522_v52 = vld [vmem:[%s13575_s1 + $0xc78] sm:$0xff]  ;;  %v608_v31 = vld [vmem:[%s13575_s1 + $0xf28] sm:$0xff] }
  0xc8   :  { %7368 = vmatprep.subr.bf16.mxu1 %v7367_v44  ;;  %v537_v44 = vld [vmem:[%s13575_s1 + $0xcf0] sm:$0xff]  ;;  %v7357_v48 = vpack.c.bf16 %v520_v40, %v519_v39  ;;  %v578_v40 = vld [vmem:[%s13575_s1 + $0xe38] sm:$0xff] }
  0xc9   :  { %7338 = vmatpush3.bf16.msra.mxu0 %v7337_v51  ;;  %v7359_v50 = vpack.c.bf16 %v538_v45, %v537_v44  ;;  %v521_v51 = vld [vmem:[%s13575_s1 + $0xc70] sm:$0xff]  ;;  %v595_v44 = vld [vmem:[%s13575_s1 + $0xec0] sm:$0xff]  ;;  %v596_v45 = vld [vmem:[%s13575_s1 + $0xec8] sm:$0xff] }
  0xca   :  { %7340 = vmatprep.subr.bf16.mxu0 %v7339_v54  ;;  %v7391_v54 = vpack.c.bf16 %v570_v47, %v569_v46  ;;  %v7361_v60 = vpack.c.bf16 %v522_v52, %v521_v51  ;;  %v577_v39 = vld [vmem:[%s13575_s1 + $0xe30] sm:$0xff]  ;;  %v627_v46 = vld [vmem:[%s13575_s1 + $0xfc0] sm:$0xff]  ;;  %v628_v47 = vld [vmem:[%s13575_s1 + $0xfc8] sm:$0xff] }
  0xcb   :  { %7370 = vmatpush3.bf16.msra.mxu1 %v7369_v53  ;;  %v553_v53 = vld [vmem:[%s13575_s1 + $0xd70] sm:$0xff]  ;;  %v579_v51 = vld [vmem:[%s13575_s1 + $0xe40] sm:$0xff]  ;;  %v580_v52 = vld [vmem:[%s13575_s1 + $0xe48] sm:$0xff] }
  0xcc   :  { %7372 = vmatprep.subr.bf16.mxu1 %v7371_v58  ;;  %v619_v58 = vld [vmem:[%s13575_s1 + $0xf80] sm:$0xff]  ;;  %v7393_v61 = vpack.c.bf16 %v554_v55, %v553_v53  ;;  %v612_v55 = vld [vmem:[%s13575_s1 + $0xf48] sm:$0xff] }
  0xcd   :  { %7342 = vmatpush3.bf16.msra.mxu0 %v7341_v0  ;;  %v572_v0 = vld [vmem:[%s13575_s1 + $0xe08] sm:$0xff]  ;;  %v611_v53 = vld [vmem:[%s13575_s1 + $0xf40] sm:$0xff] }
  0xce   :  { %7344 = vmatprep.subr.bf16.mxu0 %v7343_v2  ;;  %v7427_v2 = vpack.c.bf16 %v620_v59, %v619_v58  ;;  %v7397_v9 = vpack.c.bf16 %v572_v0, %v571_v63  ;;  %v629_v58 = vld [vmem:[%s13575_s1 + $0xfd0] sm:$0xff]  ;;  %v630_v59 = vld [vmem:[%s13575_s1 + $0xfd8] sm:$0xff] }
  0xcf   :  { %7374 = vmatpush3.bf16.msra.mxu1 %v7373_v1  ;;  %v603_v1 = vld [vmem:[%s13575_s1 + $0xf00] sm:$0xff]  ;;  %v581_v63 = vld [vmem:[%s13575_s1 + $0xe50] sm:$0xff]  ;;  %v582_v0 = vld [vmem:[%s13575_s1 + $0xe58] sm:$0xff] }
  0xd0   :  { %7376 = vmatprep.subr.bf16.mxu1 %v7375_v6  ;;  %v621_v6 = vld [vmem:[%s13575_s1 + $0xf90] sm:$0xff]  ;;  %v7429_v11 = vpack.c.bf16 %v604_v3, %v603_v1  ;;  %v614_v3 = vld [vmem:[%s13575_s1 + $0xf58] sm:$0xff] }
  0xd1   :  { %7346 = vmatpush3.bf16.msra.mxu0 %v7345_v12  ;;  %v7399_v12 = vpack.c.bf16 %v590_v5, %v589_v4  ;;  %v7431_v16 = vpack.c.bf16 %v622_v7, %v621_v6  ;;  %v613_v1 = vld [vmem:[%s13575_s1 + $0xf50] sm:$0xff]  ;;  %v599_v4 = vld [vmem:[%s13575_s1 + $0xee0] sm:$0xff]  ;;  %v600_v5 = vld [vmem:[%s13575_s1 + $0xee8] sm:$0xff] }
  0xd2   :  { %7348 = vmatprep.subr.bf16.mxu0 %v7347_v14  ;;  %v574_v14 = vld [vmem:[%s13575_s1 + $0xe18] sm:$0xff]  ;;  %v631_v6 = vld [vmem:[%s13575_s1 + $0xfe0] sm:$0xff]  ;;  %v632_v7 = vld [vmem:[%s13575_s1 + $0xfe8] sm:$0xff] }
  0xd3   :  { %7378 = vmatpush3.bf16.msra.mxu1 %v7377_v13  ;;  %v573_v13 = vld [vmem:[%s13575_s1 + $0xe10] sm:$0xff] }
  0xd4   :  { %7380 = vmatprep.subr.bf16.mxu1 %v7379_v18  ;;  %v591_v18 = vld [vmem:[%s13575_s1 + $0xea0] sm:$0xff]  ;;  %v7401_v23 = vpack.c.bf16 %v574_v14, %v573_v13 }
  0xd5   :  { %7350 = vmatpush3.bf16.msra.mxu0 %v7349_v24  ;;  %v58_v24 = vld [vmem:[%s13574_s0 + $0xf8] sm:$0xff]  ;;  %v615_v13 = vld [vmem:[%s13575_s1 + $0xf60] sm:$0xff] }
  0xd6   :  { %7352 = vmatprep.subr.bf16.mxu0 %v7351_v26  ;;  %v7403_v26 = vpack.c.bf16 %v592_v19, %v591_v18  ;;  %v602_v18 = vld [vmem:[%s13575_s1 + $0xef8] sm:$0xff]  ;;  %v5218_v19 = vld [vmem:[%s13576_s2] ss:$0 sm:$0xff] }
  0xd7   :  { %7382 = vmatpush3.bf16.msra.mxu1 %v7381_v25  ;;  %v7433_v25 = vpack.c.bf16 %v606_v17, %v605_v15  ;;  %v7451_v15 = vpack.c.bf16 %v632_v7, %v631_v6  ;;  %v601_v17 = vld [vmem:[%s13575_s1 + $0xef0] sm:$0xff] }
  0xd8   :  { %7384 = vmatprep.subr.bf16.mxu1 %v7383_v30  ;;  %v7435_v30 = vpack.c.bf16 %v624_v21, %v623_v20 }
  0xd9   :  { %7354 = vmatpush3.bf16.msra.mxu0 %v7353_v36  ;;  %v7405_v36 = vpack.c.bf16 %v576_v28, %v575_v27 }
  0xda   :  { %7356 = vmatprep.subr.bf16.mxu0 %v7355_v38  ;;  %v7407_v38 = vpack.c.bf16 %v594_v33, %v593_v32  ;;  %v617_v32 = vld [vmem:[%s13575_s1 + $0xf70] sm:$0xff] }
  0xdb   :  { %7386 = vmatpush3.bf16.msra.mxu1 %v7385_v37  ;;  %v7437_v37 = vpack.c.bf16 %v608_v31, %v607_v29  ;;  %v7423_v29 = vpack.c.bf16 %v602_v18, %v601_v17  ;;  %v586_v31 = vld [vmem:[%s13575_s1 + $0xe78] sm:$0xff] }
  0xdc   :  { %7388 = vmatprep.subr.bf16.mxu1 %v7387_v42  ;;  %v7439_v42 = vpack.c.bf16 %v626_v35, %v625_v34  ;;  %v618_v35 = vld [vmem:[%s13575_s1 + $0xf78] sm:$0xff] }
  0xdd   :  { %7358 = vmatpush3.bf16.msra.mxu0 %v7357_v48  ;;  %v7409_v48 = vpack.c.bf16 %v578_v40, %v577_v39  ;;  %v684_v39 = vld [vmem:[%s13575_s1 + $0x1188] sm:$0xff] }
  0xde   :  { %7360 = vmatprep.subr.bf16.mxu0 %v7359_v50  ;;  %v7411_v50 = vpack.c.bf16 %v596_v45, %v595_v44  ;;  %v635_v44 = vld [vmem:[%s13575_s1 + $0x1000] sm:$0xff]  ;;  %v636_v45 = vld [vmem:[%s13575_s1 + $0x1008] sm:$0xff] }
  0xdf   :  { %7390 = vmatpush3.bf16.msra.mxu1 %v7389_v49  ;;  %v7441_v49 = vpack.c.bf16 %v610_v43, %v609_v41 }
  0xe0   :  { %7392 = vmatprep.subr.bf16.mxu1 %v7391_v54  ;;  %v7443_v54 = vpack.c.bf16 %v628_v47, %v627_v46  ;;  %v667_v46 = vld [vmem:[%s13575_s1 + $0x1100] sm:$0xff] }
  0xe1   :  { %7362 = vmatpush3.bf16.msra.mxu0 %v7361_v60  ;;  %v7413_v60 = vpack.c.bf16 %v580_v52, %v579_v51  ;;  %v685_v51 = vld [vmem:[%s13575_s1 + $0x1190] sm:$0xff]  ;;  %v686_v52 = vld [vmem:[%s13575_s1 + $0x1198] sm:$0xff] }
  0xe2   :  { %7396 = vmatprep.subr.bf16.mxu0 %v7395_v62  ;;  %v7415_v62 = vpack.c.bf16 %v598_v57, %v597_v56 }
  0xe3   :  { %7394 = vmatpush3.bf16.msra.mxu1 %v7393_v61  ;;  %v7445_v61 = vpack.c.bf16 %v612_v55, %v611_v53  ;;  %v55_v53 = vld [vmem:[%s13574_s0 + $0xe0] sm:$0xff]  ;;  %v57_v55 = vld [vmem:[%s13574_s0 + $0xf0] sm:$0xff] }
  0xe4   :  { %7428 = vmatprep.subr.bf16.mxu1 %v7427_v2  ;;  %2571 = vmatmul.mubr.f32.vlgmr.msra.gmra.mrb[12].mxu0 %v51_v8  ;;  %v7447_v2 = vpack.c.bf16 %v630_v59, %v629_v58  ;;  %v7417_v8 = vpack.c.bf16 %v582_v0, %v581_v63  ;;  %v637_v58 = vld [vmem:[%s13575_s1 + $0x1010] sm:$0xff]  ;;  %v638_v59 = vld [vmem:[%s13575_s1 + $0x1018] sm:$0xff]  ;;  %v655_v63 = vld [vmem:[%s13575_s1 + $0x10a0] sm:$0xff] }
  0xe5   :  { %7398 = vmatpush3.bf16.msra.mxu0 %v7397_v9  ;;  %2710 = vmatprep.mubr.f32.mxu0 %v56_v22  ;;  %v7449_v9 = vpack.c.bf16 %v614_v3, %v613_v1  ;;  %v633_v22 = vld [vmem:[%s13575_s1 + $0xff0] sm:$0xff]  ;;  %v656_v0 = vld [vmem:[%s13575_s1 + $0x10a8] sm:$0xff]  ;;  %v687_v1 = vld [vmem:[%s13575_s1 + $0x11a0] sm:$0xff] }
  0xe6   :  { %2641 = vmatmul.mubr.f32.vlgmr.msra.gmra.mrb[12].mxu1 %v53_v10  ;;  %7400 = vmatprep.subr.bf16.mxu0 %v7399_v12  ;;  %v7419_v10 = vpack.c.bf16 %v600_v5, %v599_v4  ;;  %v584_v12 = vld [vmem:[%s13575_s1 + $0xe68] sm:$0xff]  ;;  %v7465_v4 = vpack.c.bf16 %v638_v59, %v637_v58  ;;  %v62_v5 = vld [vmem:[%s13574_s0 + $0x118] sm:$0xff]  ;;  %v7467_v7 = vpack.c.bf16 %v656_v0, %v655_v63  ;;  %v679_v59 = vld [vmem:[%s13575_s1 + $0x1160] sm:$0xff] }
  0xe7   :  { %7430 = vmatpush3.bf16.msra.mxu1 %v7429_v11  ;;  %2780 = vmatprep.mubr.f32.mxu1 %v58_v24  ;;  %v583_v11 = vld [vmem:[%s13575_s1 + $0xe60] sm:$0xff]  ;;  %v60_v3 = vld [vmem:[%s13574_s0 + $0x108] sm:$0xff]  ;;  %v665_v63 = vld [vmem:[%s13575_s1 + $0x10f0] sm:$0xff] }
  0xe8   :  { %7432 = vmatprep.subr.bf16.mxu1 %v7431_v16  ;;  %v616_v16 = vld [vmem:[%s13575_s1 + $0xf68] sm:$0xff]  ;;  %v666_v0 = vld [vmem:[%s13575_s1 + $0x10f8] sm:$0xff] }
  0xe9   :  { %7402 = vmatpush3.bf16.msra.mxu0 %v7401_v23  ;;  %v634_v23 = vld [vmem:[%s13575_s1 + $0xff8] sm:$0xff]  ;;  %v7453_v28 = vpack.c.bf16 %v616_v16, %v615_v13  ;;  %v657_v13 = vld [vmem:[%s13575_s1 + $0x10b0] sm:$0xff]  ;;  %v648_v58 = vld [vmem:[%s13575_s1 + $0x1068] sm:$0xff] }
  0xea   :  { %7404 = vmatprep.subr.bf16.mxu0 %v7403_v26  ;;  %v7421_v26 = vpack.c.bf16 %v584_v12, %v583_v11  ;;  %v7455_v34 = vpack.c.bf16 %v634_v23, %v633_v22  ;;  %v672_v12 = vld [vmem:[%s13575_s1 + $0x1128] sm:$0xff]  ;;  %v690_v16 = vld [vmem:[%s13575_s1 + $0x11b8] sm:$0xff]  ;;  %v673_v22 = vld [vmem:[%s13575_s1 + $0x1130] sm:$0xff] }
  0xeb   :  { %7434 = vmatpush3.bf16.msra.mxu1 %v7433_v25 }
  0xec   :  { %7436 = vmatprep.subr.bf16.mxu1 %v7435_v30  ;;  %v585_v30 = vld [vmem:[%s13575_s1 + $0xe70] sm:$0xff] }
  0xed   :  { %7406 = vmatpush3.bf16.msra.mxu0 %v7405_v36  ;;  %v651_v36 = vld [vmem:[%s13575_s1 + $0x1080] sm:$0xff]  ;;  %v7425_v41 = vpack.c.bf16 %v586_v31, %v585_v30 }
  0xee   :  { %7408 = vmatprep.subr.bf16.mxu0 %v7407_v38  ;;  %v683_v38 = vld [vmem:[%s13575_s1 + $0x1180] sm:$0xff] }
  0xef   :  { %7438 = vmatpush3.bf16.msra.mxu1 %v7437_v37  ;;  %v652_v37 = vld [vmem:[%s13575_s1 + $0x1088] sm:$0xff]  ;;  %v7491_v47 = vpack.c.bf16 %v684_v39, %v683_v38  ;;  %v662_v38 = vld [vmem:[%s13575_s1 + $0x10d8] sm:$0xff]  ;;  %v693_v39 = vld [vmem:[%s13575_s1 + $0x11d0] sm:$0xff] }
  0xf0   :  { %7440 = vmatprep.subr.bf16.mxu1 %v7439_v42  ;;  %v7457_v42 = vpack.c.bf16 %v618_v35, %v617_v32  ;;  %v7459_v43 = vpack.c.bf16 %v652_v37, %v651_v36  ;;  %v643_v32 = vld [vmem:[%s13575_s1 + $0x1040] sm:$0xff]  ;;  %v676_v36 = vld [vmem:[%s13575_s1 + $0x1148] sm:$0xff]  ;;  %v661_v37 = vld [vmem:[%s13575_s1 + $0x10d0] sm:$0xff] }
  0xf1   :  { %7410 = vmatpush3.bf16.msra.mxu0 %v7409_v48  ;;  %v668_v48 = vld [vmem:[%s13575_s1 + $0x1108] sm:$0xff] }
  0xf2   :  { %7412 = vmatprep.subr.bf16.mxu0 %v7411_v50  ;;  %v654_v50 = vld [vmem:[%s13575_s1 + $0x1098] sm:$0xff]  ;;  %v7493_v56 = vpack.c.bf16 %v668_v48, %v667_v46 }
  0xf3   :  { %7442 = vmatpush3.bf16.msra.mxu1 %v7441_v49  ;;  %v653_v49 = vld [vmem:[%s13575_s1 + $0x1090] sm:$0xff]  ;;  %v646_v46 = vld [vmem:[%s13575_s1 + $0x1058] sm:$0xff] }
  0xf4   :  { %7444 = vmatprep.subr.bf16.mxu1 %v7443_v54  ;;  %v7461_v54 = vpack.c.bf16 %v636_v45, %v635_v44  ;;  %v7463_v57 = vpack.c.bf16 %v654_v50, %v653_v49  ;;  %v7479_v44 = vpack.c.bf16 %v662_v38, %v661_v37  ;;  %v645_v45 = vld [vmem:[%s13575_s1 + $0x1050] sm:$0xff]  ;;  %v678_v49 = vld [vmem:[%s13575_s1 + $0x1158] sm:$0xff]  ;;  %v663_v50 = vld [vmem:[%s13575_s1 + $0x10e0] sm:$0xff] }
  0xf5   :  { %7414 = vmatpush3.bf16.msra.mxu0 %v7413_v60  ;;  %v669_v60 = vld [vmem:[%s13575_s1 + $0x1110] sm:$0xff] }
  0xf6   :  { %7416 = vmatprep.subr.bf16.mxu0 %v7415_v62  ;;  %v670_v62 = vld [vmem:[%s13575_s1 + $0x1118] sm:$0xff]  ;;  %v701_v38 = vld [vmem:[%s13575_s1 + $0x1210] sm:$0xff] }
  0xf7   :  { %7446 = vmatpush3.bf16.msra.mxu1 %v7445_v61  ;;  %v5255_v14 = vpop.f32.mrb[0].mxu0  ;;  %v7495_v61 = vpack.c.bf16 %v686_v52, %v685_v51  ;;  %v7497_v6 = vpack.c.bf16 %v670_v62, %v669_v60  ;;  %v664_v51 = vld [vmem:[%s13575_s1 + $0x10e8] sm:$0xff]  ;;  %v695_v52 = vld [vmem:[%s13575_s1 + $0x11e0] sm:$0xff] }
  0xf8   :  { %7448 = vmatprep.subr.bf16.mxu1 %v7447_v2  ;;  %v5256_v20 = vpop.f32.mrb[1].mxu0  ;;  %v688_v2 = vld [vmem:[%s13575_s1 + $0x11a8] sm:$0xff] }
  0xf9   :  { %v5290_v21 = vpop.f32.mrb[0].mxu1  ;;  %v5257_v24 = vadd.f32 %v5256_v20, %v5255_v14  ;;  %7418 = vmatpush3.bf16.msra.mxu0 %v7417_v8  ;;  %v639_v8 = vld [vmem:[%s13575_s1 + $0x1020] sm:$0xff]  ;;  %v7499_v11 = vpack.c.bf16 %v688_v2, %v687_v1  ;;  %v658_v14 = vld [vmem:[%s13575_s1 + $0x10b8] sm:$0xff]  ;;  %v641_v20 = vld [vmem:[%s13575_s1 + $0x1030] sm:$0xff] }
  0xfa   :  { %v5291_v25 = vpop.f32.mrb[1].mxu1  ;;  %7420 = vmatprep.subr.bf16.mxu0 %v7419_v10  ;;  %v671_v10 = vld [vmem:[%s13575_s1 + $0x1120] sm:$0xff]  ;;  %v680_v62 = vld [vmem:[%s13575_s1 + $0x1168] sm:$0xff] }
  0xfb   :  { %v5292_v27 = vadd.f32 %v5291_v25, %v5290_v21  ;;  %7450 = vmatpush3.bf16.msra.mxu1 %v7449_v9  ;;  %v1733_v33 = vadd.f32 %v5257_v24, %v5218_v19  ;;  %v640_v9 = vld [vmem:[%s13575_s1 + $0x1028] sm:$0xff]  ;;  %v7501_v18 = vpack.c.bf16 %v672_v12, %v671_v10  ;;  %v7471_v19 = vpack.c.bf16 %v658_v14, %v657_v13  ;;  %v642_v21 = vld [vmem:[%s13575_s1 + $0x1038] sm:$0xff]  ;;  %v659_v25 = vld [vmem:[%s13575_s1 + $0x10c0] sm:$0xff] }
  0xfc   :  { %7452 = vmatprep.subr.bf16.mxu1 %v7451_v15  ;;  %v689_v15 = vld [vmem:[%s13575_s1 + $0x11b0] sm:$0xff]  ;;  %v7469_v17 = vpack.c.bf16 %v640_v9, %v639_v8  ;;  %v674_v24 = vld [vmem:[%s13575_s1 + $0x1138] sm:$0xff]  ;;  %v7517_v9 = vpack.c.bf16 %v680_v62, %v679_v59  ;;  %v7487_v10 = vpack.c.bf16 %v666_v0, %v665_v63 }
  0xfd   :  { %v10214_v40 = vadd.f32 %v5292_v27, %v1733_v33  ;;  %7422 = vmatpush3.bf16.msra.mxu0 %v7421_v26  ;;  %v7503_v23 = vpack.c.bf16 %v690_v16, %v689_v15  ;;  %v660_v26 = vld [vmem:[%s13575_s1 + $0x10c8] sm:$0xff]  ;;  %v691_v27 = vld [vmem:[%s13575_s1 + $0x11c0] sm:$0xff]  ;;  %v7505_v30 = vpack.c.bf16 %v674_v24, %v673_v22  ;;  %v650_v12 = vld [vmem:[%s13575_s1 + $0x1078] sm:$0xff] }
  0xfe   :  { %7424 = vmatprep.subr.bf16.mxu0 %v7423_v29  ;;  %v7473_v29 = vpack.c.bf16 %v642_v21, %v641_v20  ;;  %v7475_v31 = vpack.c.bf16 %v660_v26, %v659_v25  ;;  %v644_v33 = vld [vmem:[%s13575_s1 + $0x1048] sm:$0xff]  ;;  %v681_v13 = vld [vmem:[%s13575_s1 + $0x1170] sm:$0xff]  ;;  %v682_v16 = vld [vmem:[%s13575_s1 + $0x1178] sm:$0xff] }
  0xff   :  { %7454 = vmatpush3.bf16.msra.mxu1 %v7453_v28  ;;  %v692_v28 = vld [vmem:[%s13575_s1 + $0x11c8] sm:$0xff]  ;;  %v7521_v22 = vpack.c.bf16 %v682_v16, %v681_v13  ;;  %v699_v24 = vld [vmem:[%s13575_s1 + $0x1200] sm:$0xff]  ;;  %v722_v59 = vld [vmem:[%s13575_s1 + $0x12b8] sm:$0xff] }
 0x100   :  { %7456 = vmatprep.subr.bf16.mxu1 %v7455_v34  ;;  %v675_v34 = vld [vmem:[%s13575_s1 + $0x1140] sm:$0xff]  ;;  %v7507_v35 = vpack.c.bf16 %v692_v28, %v691_v27  ;;  %v700_v25 = vld [vmem:[%s13575_s1 + $0x1208] sm:$0xff] }
 0x101   :  { %7426 = vmatpush3.bf16.msra.mxu0 %v7425_v41  ;;  %v694_v41 = vld [vmem:[%s13575_s1 + $0x11d8] sm:$0xff]  ;;  %v731_v26 = vld [vmem:[%s13575_s1 + $0x1300] sm:$0xff]  ;;  %v732_v28 = vld [vmem:[%s13575_s1 + $0x1308] sm:$0xff] }
 0x102   :  { %7460 = vmatprep.subr.bf16.mxu0 %v7459_v43  ;;  %v7509_v43 = vpack.c.bf16 %v676_v36, %v675_v34  ;;  %v7511_v48 = vpack.c.bf16 %v694_v41, %v693_v39  ;;  %v7525_v34 = vpack.c.bf16 %v700_v25, %v699_v24  ;;  %v7557_v36 = vpack.c.bf16 %v732_v28, %v731_v26  ;;  %v702_v39 = vld [vmem:[%s13575_s1 + $0x1218] sm:$0xff]  ;;  %v733_v41 = vld [vmem:[%s13575_s1 + $0x1310] sm:$0xff]  ;;  %v707_v13 = vld [vmem:[%s13575_s1 + $0x1240] sm:$0xff] }
 0x103   :  { %7458 = vmatpush3.bf16.msra.mxu1 %v7457_v42  ;;  %v7477_v42 = vpack.c.bf16 %v644_v33, %v643_v32  ;;  %v750_v32 = vld [vmem:[%s13575_s1 + $0x1398] sm:$0xff]  ;;  %v59_v33 = vld [vmem:[%s13574_s0 + $0x100] sm:$0xff]  ;;  %v709_v25 = vld [vmem:[%s13575_s1 + $0x1250] sm:$0xff] }
 0x104   :  { %7492 = vmatprep.subr.bf16.mxu1 %v7491_v47  ;;  %2711 = vmatmul.mubr.f32.vlgmr.msra.gmra.mrb[14].mxu0 %v55_v53  ;;  %v677_v47 = vld [vmem:[%s13575_s1 + $0x1150] sm:$0xff]  ;;  %v696_v53 = vld [vmem:[%s13575_s1 + $0x11e8] sm:$0xff]  ;;  %v710_v26 = vld [vmem:[%s13575_s1 + $0x1258] sm:$0xff] }
 0x105   :  { %7462 = vmatpush3.bf16.msra.mxu0 %v7461_v54  ;;  %2850 = vmatprep.mubr.f32.mxu0 %v60_v3  ;;  %v7481_v54 = vpack.c.bf16 %v646_v46, %v645_v45  ;;  %v697_v3 = vld [vmem:[%s13575_s1 + $0x11f0] sm:$0xff]  ;;  %v720_v45 = vld [vmem:[%s13575_s1 + $0x12a8] sm:$0xff]  ;;  %v751_v46 = vld [vmem:[%s13575_s1 + $0x13a0] sm:$0xff] }
 0x106   :  { %2781 = vmatmul.mubr.f32.vlgmr.msra.gmra.mrb[14].mxu1 %v57_v55  ;;  %7464 = vmatprep.subr.bf16.mxu0 %v7463_v57  ;;  %v7513_v55 = vpack.c.bf16 %v678_v49, %v677_v47  ;;  %v647_v57 = vld [vmem:[%s13575_s1 + $0x1060] sm:$0xff]  ;;  %v752_v47 = vld [vmem:[%s13575_s1 + $0x13a8] sm:$0xff]  ;;  %v7529_v49 = vpack.c.bf16 %v702_v39, %v701_v38 }
 0x107   :  { %7494 = vmatpush3.bf16.msra.mxu1 %v7493_v56  ;;  %2920 = vmatprep.mubr.f32.mxu1 %v62_v5  ;;  %v7483_v56 = vpack.c.bf16 %v664_v51, %v663_v50  ;;  %v66_v50 = vld [vmem:[%s13574_s0 + $0x138] sm:$0xff]  ;;  %v712_v38 = vld [vmem:[%s13575_s1 + $0x1268] sm:$0xff]  ;;  %v743_v39 = vld [vmem:[%s13575_s1 + $0x1360] sm:$0xff] }
 0x108   :  { %7496 = vmatprep.subr.bf16.mxu1 %v7495_v61  ;;  %v7515_v61 = vpack.c.bf16 %v696_v53, %v695_v52  ;;  %v703_v53 = vld [vmem:[%s13575_s1 + $0x1220] sm:$0xff] }
 0x109   :  { %7466 = vmatpush3.bf16.msra.mxu0 %v7465_v4  ;;  %v698_v4 = vld [vmem:[%s13575_s1 + $0x11f8] sm:$0xff] }
 0x10a   :  { %7468 = vmatprep.subr.bf16.mxu0 %v7467_v7  ;;  %v7485_v7 = vpack.c.bf16 %v648_v58, %v647_v57  ;;  %v7519_v15 = vpack.c.bf16 %v698_v4, %v697_v3  ;;  %v736_v57 = vld [vmem:[%s13575_s1 + $0x1328] sm:$0xff]  ;;  %v721_v58 = vld [vmem:[%s13575_s1 + $0x12b0] sm:$0xff] }
 0x10b   :  { %7498 = vmatpush3.bf16.msra.mxu1 %v7497_v6  ;;  %v7535_v0 = vpack.c.bf16 %v722_v59, %v721_v58  ;;  %v737_v3 = vld [vmem:[%s13575_s1 + $0x1330] sm:$0xff] }
 0x10c   :  { %7500 = vmatprep.subr.bf16.mxu1 %v7499_v11  ;;  %v649_v11 = vld [vmem:[%s13575_s1 + $0x1070] sm:$0xff] }
 0x10d   :  { %7470 = vmatpush3.bf16.msra.mxu0 %v7469_v17  ;;  %v715_v17 = vld [vmem:[%s13575_s1 + $0x1280] sm:$0xff]  ;;  %v7489_v21 = vpack.c.bf16 %v650_v12, %v649_v11 }
 0x10e   :  { %7472 = vmatprep.subr.bf16.mxu0 %v7471_v19  ;;  %v747_v19 = vld [vmem:[%s13575_s1 + $0x1380] sm:$0xff] }
 0x10f   :  { %7502 = vmatpush3.bf16.msra.mxu1 %v7501_v18  ;;  %v716_v18 = vld [vmem:[%s13575_s1 + $0x1288] sm:$0xff] }
 0x110   :  { %7504 = vmatprep.subr.bf16.mxu1 %v7503_v23  ;;  %v7523_v23 = vpack.c.bf16 %v716_v18, %v715_v17  ;;  %v740_v17 = vld [vmem:[%s13575_s1 + $0x1348] sm:$0xff]  ;;  %v725_v18 = vld [vmem:[%s13575_s1 + $0x12d0] sm:$0xff] }
 0x111   :  { %7474 = vmatpush3.bf16.msra.mxu0 %v7473_v29  ;;  %v717_v29 = vld [vmem:[%s13575_s1 + $0x1290] sm:$0xff] }
 0x112   :  { %7476 = vmatprep.subr.bf16.mxu0 %v7475_v31  ;;  %v749_v31 = vld [vmem:[%s13575_s1 + $0x1390] sm:$0xff] }
 0x113   :  { %7506 = vmatpush3.bf16.msra.mxu1 %v7505_v30  ;;  %v718_v30 = vld [vmem:[%s13575_s1 + $0x1298] sm:$0xff] }
 0x114   :  { %7508 = vmatprep.subr.bf16.mxu1 %v7507_v35  ;;  %v61_v35 = vld [vmem:[%s13574_s0 + $0x110] sm:$0xff]  ;;  %v7527_v37 = vpack.c.bf16 %v718_v30, %v717_v29  ;;  %v742_v29 = vld [vmem:[%s13575_s1 + $0x1358] sm:$0xff]  ;;  %v727_v30 = vld [vmem:[%s13575_s1 + $0x12e0] sm:$0xff] }
 0x115   :  { %7478 = vmatpush3.bf16.msra.mxu0 %v7477_v42  ;;  %v7559_v42 = vpack.c.bf16 %v750_v32, %v749_v31  ;;  %v728_v31 = vld [vmem:[%s13575_s1 + $0x12e8] sm:$0xff]  ;;  %v759_v32 = vld [vmem:[%s13575_s1 + $0x13e0] sm:$0xff] }
 0x116   :  { %7480 = vmatprep.subr.bf16.mxu0 %v7479_v44  ;;  %v719_v44 = vld [vmem:[%s13575_s1 + $0x12a0] sm:$0xff] }
 0x117   :  { %7510 = vmatpush3.bf16.msra.mxu1 %v7509_v43  ;;  %v5325_v60 = vpop.f32.mrb[2].mxu0  ;;  %v734_v43 = vld [vmem:[%s13575_s1 + $0x1318] sm:$0xff]  ;;  %v7531_v52 = vpack.c.bf16 %v720_v45, %v719_v44  ;;  %v729_v44 = vld [vmem:[%s13575_s1 + $0x12f0] sm:$0xff] }
 0x118   :  { %7512 = vmatprep.subr.bf16.mxu1 %v7511_v48  ;;  %v5326_v1 = vpop.f32.mrb[3].mxu0  ;;  %v64_v48 = vld [vmem:[%s13574_s0 + $0x128] sm:$0xff]  ;;  %v7561_v51 = vpack.c.bf16 %v734_v43, %v733_v41  ;;  %v730_v45 = vld [vmem:[%s13575_s1 + $0x12f8] sm:$0xff] }
 0x119   :  { %v5360_v2 = vpop.f32.mrb[2].mxu1  ;;  %v5327_v5 = vadd.f32 %v5326_v1, %v5325_v60  ;;  %7482 = vmatpush3.bf16.msra.mxu0 %v7481_v54  ;;  %v704_v54 = vld [vmem:[%s13575_s1 + $0x1228] sm:$0xff]  ;;  %v753_v60 = vld [vmem:[%s13575_s1 + $0x13b0] sm:$0xff] }
 0x11a   :  { %v5361_v6 = vpop.f32.mrb[3].mxu1  ;;  %7484 = vmatprep.subr.bf16.mxu0 %v7483_v56  ;;  %v7563_v56 = vpack.c.bf16 %v752_v47, %v751_v46  ;;  %v7533_v62 = vpack.c.bf16 %v704_v54, %v703_v53  ;;  %v705_v1 = vld [vmem:[%s13575_s1 + $0x1230] sm:$0xff]  ;;  %v744_v43 = vld [vmem:[%s13575_s1 + $0x1368] sm:$0xff] }
 0x11b   :  { %v5362_v8 = vadd.f32 %v5361_v6, %v5360_v2  ;;  %7514 = vmatpush3.bf16.msra.mxu1 %v7513_v55  ;;  %v1873_v14 = vadd.f32 %v5327_v5, %v10214_v40  ;;  %v748_v40 = vld [vmem:[%s13575_s1 + $0x1388] sm:$0xff]  ;;  %v735_v55 = vld [vmem:[%s13575_s1 + $0x1320] sm:$0xff]  ;;  %v706_v2 = vld [vmem:[%s13575_s1 + $0x1238] sm:$0xff] }
 0x11c   :  { %7516 = vmatprep.subr.bf16.mxu1 %v7515_v61  ;;  %v7555_v27 = vpack.c.bf16 %v748_v40, %v747_v19  ;;  %v754_v61 = vld [vmem:[%s13575_s1 + $0x13b8] sm:$0xff]  ;;  %v7565_v63 = vpack.c.bf16 %v736_v57, %v735_v55  ;;  %v723_v6 = vld [vmem:[%s13575_s1 + $0x12c0] sm:$0xff]  ;;  %v757_v40 = vld [vmem:[%s13575_s1 + $0x13d0] sm:$0xff] }
 0x11d   :  { %v10421_v20 = vadd.f32 %v5362_v8, %v1873_v14  ;;  %7486 = vmatpush3.bf16.msra.mxu0 %v7485_v7  ;;  %v7567_v4 = vpack.c.bf16 %v754_v61, %v753_v60  ;;  %v738_v5 = vld [vmem:[%s13575_s1 + $0x1338] sm:$0xff]  ;;  %v724_v7 = vld [vmem:[%s13575_s1 + $0x12c8] sm:$0xff]  ;;  %v755_v8 = vld [vmem:[%s13575_s1 + $0x13c0] sm:$0xff] }
 0x11e   :  { %7488 = vmatprep.subr.bf16.mxu0 %v7487_v10  ;;  %v7537_v10 = vpack.c.bf16 %v706_v2, %v705_v1  ;;  %v7569_v11 = vpack.c.bf16 %v738_v5, %v737_v3  ;;  %v7539_v12 = vpack.c.bf16 %v724_v7, %v723_v6  ;;  %v708_v14 = vld [vmem:[%s13575_s1 + $0x1248] sm:$0xff]  ;;  %v726_v19 = vld [vmem:[%s13575_s1 + $0x12d8] sm:$0xff] }
 0x11f   :  { %7518 = vmatpush3.bf16.msra.mxu1 %v7517_v9  ;;  %v756_v9 = vld [vmem:[%s13575_s1 + $0x13c8] sm:$0xff]  ;;  %v7543_v24 = vpack.c.bf16 %v726_v19, %v725_v18 }
 0x120   :  { %7520 = vmatprep.subr.bf16.mxu1 %v7519_v15  ;;  %v739_v15 = vld [vmem:[%s13575_s1 + $0x1340] sm:$0xff]  ;;  %v7571_v16 = vpack.c.bf16 %v756_v9, %v755_v8 }
 0x121   :  { %7490 = vmatpush3.bf16.msra.mxu0 %v7489_v21  ;;  %v758_v21 = vld [vmem:[%s13575_s1 + $0x13d8] sm:$0xff] }
 0x122   :  { %7524 = vmatprep.subr.bf16.mxu0 %v7523_v23  ;;  %v7573_v23 = vpack.c.bf16 %v740_v17, %v739_v15  ;;  %v7575_v28 = vpack.c.bf16 %v758_v21, %v757_v40 }
 0x123   :  { %7522 = vmatpush3.bf16.msra.mxu1 %v7521_v22  ;;  %v7541_v22 = vpack.c.bf16 %v708_v14, %v707_v13 }
 0x124   :  { %7556 = vmatprep.subr.bf16.mxu1 %v7555_v27  ;;  %2851 = vmatmul.mubr.f32.vlgmr.msra.gmra.mrb[16].mxu0 %v59_v33  ;;  %v741_v27 = vld [vmem:[%s13575_s1 + $0x1350] sm:$0xff]  ;;  %v760_v33 = vld [vmem:[%s13575_s1 + $0x13e8] sm:$0xff] }
 0x125   :  { %7526 = vmatpush3.bf16.msra.mxu0 %v7525_v34  ;;  %2990 = vmatprep.mubr.f32.mxu0 %v64_v48  ;;  %v7545_v34 = vpack.c.bf16 %v710_v26, %v709_v25  ;;  %v761_v48 = vld [vmem:[%s13575_s1 + $0x13f0] sm:$0xff] }
 0x126   :  { %2921 = vmatmul.mubr.f32.vlgmr.msra.gmra.mrb[16].mxu1 %v61_v35  ;;  %7528 = vmatprep.subr.bf16.mxu0 %v7527_v37  ;;  %v7577_v35 = vpack.c.bf16 %v742_v29, %v741_v27  ;;  %v711_v37 = vld [vmem:[%s13575_s1 + $0x1260] sm:$0xff] }
 0x127   :  { %7558 = vmatpush3.bf16.msra.mxu1 %v7557_v36  ;;  %3060 = vmatprep.mubr.f32.mxu1 %v66_v50  ;;  %v7547_v36 = vpack.c.bf16 %v728_v31, %v727_v30 }
 0x128   :  { %7560 = vmatprep.subr.bf16.mxu1 %v7559_v42  ;;  %v7579_v42 = vpack.c.bf16 %v760_v33, %v759_v32 }
 0x129   :  { %7530 = vmatpush3.bf16.msra.mxu0 %v7529_v49  ;;  %v762_v49 = vld [vmem:[%s13575_s1 + $0x13f8] sm:$0xff] }
 0x12a   :  { %7532 = vmatprep.subr.bf16.mxu0 %v7531_v52 }
 0x12b   :  { %7562 = vmatpush3.bf16.msra.mxu1 %v7561_v51 }
 0x12c   :  { %7564 = vmatprep.subr.bf16.mxu1 %v7563_v56 }
 0x12d   :  { %7534 = vmatpush3.bf16.msra.mxu0 %v7533_v62 }
 0x12e   :  { %7536 = vmatprep.subr.bf16.mxu0 %v7535_v0 }
 0x12f   :  { %7566 = vmatpush3.bf16.msra.mxu1 %v7565_v63 }
 0x130   :  { %7568 = vmatprep.subr.bf16.mxu1 %v7567_v4 }
 0x131   :  { %7538 = vmatpush3.bf16.msra.mxu0 %v7537_v10 }
 0x132   :  { %7540 = vmatprep.subr.bf16.mxu0 %v7539_v12 }
 0x133   :  { %7570 = vmatpush3.bf16.msra.mxu1 %v7569_v11 }
 0x134   :  { %7572 = vmatprep.subr.bf16.mxu1 %v7571_v16 }
 0x135   :  { %7542 = vmatpush3.bf16.msra.mxu0 %v7541_v22 }
 0x136   :  { %7544 = vmatprep.subr.bf16.mxu0 %v7543_v24 }
 0x137   :  { %7574 = vmatpush3.bf16.msra.mxu1 %v7573_v23  ;;  %v5395_v41 = vpop.f32.mrb[4].mxu0 }
 0x138   :  { %7576 = vmatprep.subr.bf16.mxu1 %v7575_v28  ;;  %v5396_v46 = vpop.f32.mrb[5].mxu0 }
 0x139   :  { %v5430_v47 = vpop.f32.mrb[4].mxu1 }
 0x13a   :  { %12 = vsyncpa [#allocation3], 0  ;;  %v5397_v50 = vadd.f32 %v5396_v46, %v5395_v41  ;;  %7546 = vmatpush3.bf16.msra.mxu0 %v7545_v34  ;;  %v5431_v51 = vpop.f32.mrb[5].mxu1  ;;  %v7549_v52 = vpack.c.bf16 %v712_v38, %v711_v37  ;;  %v7581_v54 = vpack.c.bf16 %v744_v43, %v743_v39  ;;  %v7551_v55 = vpack.c.bf16 %v730_v45, %v729_v44  ;;  %v713_v56 = vld [vmem:[%s13575_s1 + $0x1270] sm:$0xff]  ;;  %v714_v57 = vld [vmem:[%s13575_s1 + $0x1278] sm:$0xff] }
 0x13b   :  { %v5432_v53 = vadd.f32 %v5431_v51, %v5430_v47  ;;  %7578 = vmatpush3.bf16.msra.mxu1 %v7577_v35  ;;  %7548 = vmatprep.subr.bf16.mxu0 %v7547_v36  ;;  %v745_v58 = vld [vmem:[%s13575_s1 + $0x1370] sm:$0xff]  ;;  %v7583_v60 = vpack.c.bf16 %v762_v49, %v761_v48  ;;  %v746_v61 = vld [vmem:[%s13575_s1 + $0x1378] sm:$0xff]  ;;  %v779_v62 = vld [vmem:[%s13575_s1 + $0x1480] sm:$0xff]  ;;  %v7553_v2 = vpack.c.bf16 %v714_v57, %v713_v56  ;;  %vm8530_vm0 = vmmov 0  }
 0x13c   :  { %v2013_v59 = vadd.f32 %v5397_v50, %v10421_v20  ;;  %7580 = vmatprep.subr.bf16.mxu1 %v7579_v42  ;;  %v780_v63 = vld [vmem:[%s13575_s1 + $0x1488] sm:$0xff]  ;;  %v811_v0 = vld [vmem:[%s13575_s1 + $0x1580] sm:$0xff]  ;;  %v7585_v3 = vpack.c.bf16 %v746_v61, %v745_v58  ;;  %v781_v10 = vld [vmem:[%s13575_s1 + $0x1490] sm:$0xff]  ;;  %vm5042_vm1 = vcmask 523264   ;;  %vm5128_vm2 = vcmask 261120  }
 0x13d   :  { %v812_v20 = vld [vmem:[%s13575_s1 + $0x1588] sm:$0xff]  ;;  %v7587_v4 = vpack.c.bf16 %v780_v63, %v779_v62  ;;  %v763_v5 = vld [vmem:[%s13575_s1 + $0x1400] sm:$0xff]  ;;  %v782_v11 = vld [vmem:[%s13575_s1 + $0x1498] sm:$0xff]  ;;  %vm5202_vm3 = vcmask 48128  }
 0x13e   :  { %v10628_v1 = vadd.f32 %v5432_v53, %v2013_v59  ;;  %7550 = vmatpush3.bf16.msra.mxu0 %v7549_v52  ;;  %v764_v6 = vld [vmem:[%s13575_s1 + $0x1408] sm:$0xff]  ;;  %v795_v7 = vld [vmem:[%s13575_s1 + $0x1500] sm:$0xff]  ;;  %v7619_v8 = vpack.c.bf16 %v812_v20, %v811_v0  ;;  %v813_v12 = vld [vmem:[%s13575_s1 + $0x1590] sm:$0xff]  ;;  %v7591_v18 = vpack.c.bf16 %v782_v11, %v781_v10 }
 0x13f   :  { %7582 = vmatpush3.bf16.msra.mxu1 %v7581_v54  ;;  %7552 = vmatprep.subr.bf16.mxu0 %v7551_v55  ;;  %v796_v9 = vld [vmem:[%s13575_s1 + $0x1508] sm:$0xff]  ;;  %v814_v13 = vld [vmem:[%s13575_s1 + $0x1598] sm:$0xff]  ;;  %v63_v14 = vld [vmem:[%s13574_s0 + $0x120] sm:$0xff]  ;;  %v7589_v15 = vpack.c.bf16 %v764_v6, %v763_v5 }
 0x140   :  { %7584 = vmatprep.subr.bf16.mxu1 %v7583_v60  ;;  %v65_v16 = vld [vmem:[%s13574_s0 + $0x130] sm:$0xff]  ;;  %v7621_v17 = vpack.c.bf16 %v796_v9, %v795_v7  ;;  %v766_v40 = vld [vmem:[%s13575_s1 + $0x1418] sm:$0xff]  ;;  %v7623_v22 = vpack.c.bf16 %v814_v13, %v813_v12  ;;  %v783_v24 = vld [vmem:[%s13575_s1 + $0x14a0] sm:$0xff] }
 0x141   :  { %v765_v19 = vld [vmem:[%s13575_s1 + $0x1410] sm:$0xff]  ;;  %v798_v23 = vld [vmem:[%s13575_s1 + $0x1518] sm:$0xff]  ;;  %v784_v25 = vld [vmem:[%s13575_s1 + $0x14a8] sm:$0xff] }
 0x142   :  { %7554 = vmatpush3.bf16.msra.mxu0 %v7553_v2  ;;  %v797_v21 = vld [vmem:[%s13575_s1 + $0x1510] sm:$0xff]  ;;  %v815_v26 = vld [vmem:[%s13575_s1 + $0x15a0] sm:$0xff]  ;;  %v816_v27 = vld [vmem:[%s13575_s1 + $0x15a8] sm:$0xff]  ;;  %v7593_v29 = vpack.c.bf16 %v766_v40, %v765_v19  ;;  %v7595_v32 = vpack.c.bf16 %v784_v25, %v783_v24 }
 0x143   :  { %7586 = vmatpush3.bf16.msra.mxu1 %v7585_v3  ;;  %7588 = vmatprep.subr.bf16.mxu0 %v7587_v4  ;;  %v68_v28 = vld [vmem:[%s13574_s0 + $0x148] sm:$0xff]  ;;  %v70_v30 = vld [vmem:[%s13574_s0 + $0x158] sm:$0xff]  ;;  %v7625_v31 = vpack.c.bf16 %v798_v23, %v797_v21  ;;  %v767_v33 = vld [vmem:[%s13575_s1 + $0x1420] sm:$0xff]  ;;  %v7627_v36 = vpack.c.bf16 %v816_v27, %v815_v26 }
 0x144   :  { %7620 = vmatprep.subr.bf16.mxu1 %v7619_v8  ;;  %v768_v34 = vld [vmem:[%s13575_s1 + $0x1428] sm:$0xff]  ;;  %v799_v35 = vld [vmem:[%s13575_s1 + $0x1520] sm:$0xff]  ;;  %v785_v38 = vld [vmem:[%s13575_s1 + $0x14b0] sm:$0xff] }
 0x145   :  { %2991 = vmatmul.mubr.f32.vlgmr.msra.gmra.mrb[18].mxu0 %v63_v14  ;;  %v800_v37 = vld [vmem:[%s13575_s1 + $0x1528] sm:$0xff]  ;;  %v786_v39 = vld [vmem:[%s13575_s1 + $0x14b8] sm:$0xff]  ;;  %v817_v41 = vld [vmem:[%s13575_s1 + $0x15b0] sm:$0xff]  ;;  %v7597_v43 = vpack.c.bf16 %v768_v34, %v767_v33 }
 0x146   :  { %7590 = vmatpush3.bf16.msra.mxu0 %v7589_v15  ;;  %3061 = vmatmul.mubr.f32.vlgmr.msra.gmra.mrb[18].mxu1 %v65_v16  ;;  %v818_v42 = vld [vmem:[%s13575_s1 + $0x15b8] sm:$0xff]  ;;  %v7629_v44 = vpack.c.bf16 %v800_v37, %v799_v35  ;;  %v7599_v45 = vpack.c.bf16 %v786_v39, %v785_v38  ;;  %v769_v46 = vld [vmem:[%s13575_s1 + $0x1430] sm:$0xff]  ;;  %v787_v51 = vld [vmem:[%s13575_s1 + $0x14c0] sm:$0xff] }
 0x147   :  { %7622 = vmatpush3.bf16.msra.mxu1 %v7621_v17  ;;  %7592 = vmatprep.subr.bf16.mxu0 %v7591_v18  ;;  %v770_v47 = vld [vmem:[%s13575_s1 + $0x1438] sm:$0xff]  ;;  %v801_v48 = vld [vmem:[%s13575_s1 + $0x1530] sm:$0xff]  ;;  %v7631_v49 = vpack.c.bf16 %v818_v42, %v817_v41  ;;  %v788_v52 = vld [vmem:[%s13575_s1 + $0x14c8] sm:$0xff] }
 0x148   :  { %7624 = vmatprep.subr.bf16.mxu1 %v7623_v22  ;;  %3130 = vmatprep.mubr.f32.mxu0 %v68_v28  ;;  %v802_v50 = vld [vmem:[%s13575_s1 + $0x1538] sm:$0xff]  ;;  %v819_v53 = vld [vmem:[%s13575_s1 + $0x15c0] sm:$0xff]  ;;  %v820_v54 = vld [vmem:[%s13575_s1 + $0x15c8] sm:$0xff]  ;;  %v7601_v55 = vpack.c.bf16 %v770_v47, %v769_v46  ;;  %v7603_v57 = vpack.c.bf16 %v788_v52, %v787_v51 }
 0x149   :  { %3200 = vmatprep.mubr.f32.mxu1 %v70_v30  ;;  %v7633_v56 = vpack.c.bf16 %v802_v50, %v801_v48  ;;  %v771_v58 = vld [vmem:[%s13575_s1 + $0x1440] sm:$0xff]  ;;  %v772_v59 = vld [vmem:[%s13575_s1 + $0x1448] sm:$0xff]  ;;  %v7635_v61 = vpack.c.bf16 %v820_v54, %v819_v53  ;;  %v789_v63 = vld [vmem:[%s13575_s1 + $0x14d0] sm:$0xff] }
 0x14a   :  { %7594 = vmatpush3.bf16.msra.mxu0 %v7593_v29  ;;  %v803_v60 = vld [vmem:[%s13575_s1 + $0x1540] sm:$0xff]  ;;  %v804_v62 = vld [vmem:[%s13575_s1 + $0x1548] sm:$0xff]  ;;  %v790_v0 = vld [vmem:[%s13575_s1 + $0x14d8] sm:$0xff]  ;;  %v7605_v3 = vpack.c.bf16 %v772_v59, %v771_v58 }
 0x14b   :  { %7626 = vmatpush3.bf16.msra.mxu1 %v7625_v31  ;;  %7596 = vmatprep.subr.bf16.mxu0 %v7595_v32  ;;  %v821_v20 = vld [vmem:[%s13575_s1 + $0x15d0] sm:$0xff]  ;;  %v822_v2 = vld [vmem:[%s13575_s1 + $0x15d8] sm:$0xff]  ;;  %v7637_v4 = vpack.c.bf16 %v804_v62, %v803_v60  ;;  %v7607_v5 = vpack.c.bf16 %v790_v0, %v789_v63  ;;  %v791_v11 = vld [vmem:[%s13575_s1 + $0x14e0] sm:$0xff] }
 0x14c   :  { %7628 = vmatprep.subr.bf16.mxu1 %v7627_v36  ;;  %v773_v6 = vld [vmem:[%s13575_s1 + $0x1450] sm:$0xff]  ;;  %v774_v7 = vld [vmem:[%s13575_s1 + $0x1458] sm:$0xff]  ;;  %v7639_v9 = vpack.c.bf16 %v822_v2, %v821_v20  ;;  %v792_v12 = vld [vmem:[%s13575_s1 + $0x14e8] sm:$0xff] }
 0x14d   :  { %v805_v8 = vld [vmem:[%s13575_s1 + $0x1550] sm:$0xff]  ;;  %v806_v10 = vld [vmem:[%s13575_s1 + $0x1558] sm:$0xff]  ;;  %v823_v13 = vld [vmem:[%s13575_s1 + $0x15e0] sm:$0xff]  ;;  %v7609_v15 = vpack.c.bf16 %v774_v7, %v773_v6  ;;  %v7611_v17 = vpack.c.bf16 %v792_v12, %v791_v11 }
 0x14e   :  { %7598 = vmatpush3.bf16.msra.mxu0 %v7597_v43  ;;  %v824_v14 = vld [vmem:[%s13575_s1 + $0x15e8] sm:$0xff]  ;;  %v7641_v16 = vpack.c.bf16 %v806_v10, %v805_v8  ;;  %v775_v18 = vld [vmem:[%s13575_s1 + $0x1460] sm:$0xff]  ;;  %v793_v24 = vld [vmem:[%s13575_s1 + $0x14f0] sm:$0xff] }
 0x14f   :  { %7630 = vmatpush3.bf16.msra.mxu1 %v7629_v44  ;;  %7600 = vmatprep.subr.bf16.mxu0 %v7599_v45  ;;  %v776_v19 = vld [vmem:[%s13575_s1 + $0x1468] sm:$0xff]  ;;  %v807_v40 = vld [vmem:[%s13575_s1 + $0x1560] sm:$0xff]  ;;  %v7643_v22 = vpack.c.bf16 %v824_v14, %v823_v13  ;;  %v794_v25 = vld [vmem:[%s13575_s1 + $0x14f8] sm:$0xff] }
 0x150   :  { %7632 = vmatprep.subr.bf16.mxu1 %v7631_v49  ;;  %v808_v23 = vld [vmem:[%s13575_s1 + $0x1568] sm:$0xff]  ;;  %v825_v28 = vld [vmem:[%s13575_s1 + $0x15f0] sm:$0xff]  ;;  %v826_v29 = vld [vmem:[%s13575_s1 + $0x15f8] sm:$0xff]  ;;  %v7613_v32 = vpack.c.bf16 %v776_v19, %v775_v18  ;;  %v7615_v35 = vpack.c.bf16 %v794_v25, %v793_v24 }
 0x151   :  { %v7645_v34 = vpack.c.bf16 %v808_v23, %v807_v40  ;;  %v777_v36 = vld [vmem:[%s13575_s1 + $0x1470] sm:$0xff]  ;;  %v778_v37 = vld [vmem:[%s13575_s1 + $0x1478] sm:$0xff]  ;;  %v7647_v41 = vpack.c.bf16 %v826_v29, %v825_v28  ;;  %v843_v43 = vld [vmem:[%s13575_s1 + $0x1680] sm:$0xff] }
 0x152   :  { %7602 = vmatpush3.bf16.msra.mxu0 %v7601_v55  ;;  %v809_v38 = vld [vmem:[%s13575_s1 + $0x1570] sm:$0xff]  ;;  %v810_v42 = vld [vmem:[%s13575_s1 + $0x1578] sm:$0xff]  ;;  %v844_v44 = vld [vmem:[%s13575_s1 + $0x1688] sm:$0xff]  ;;  %v7617_v47 = vpack.c.bf16 %v778_v37, %v777_v36 }
 0x153   :  { %7634 = vmatpush3.bf16.msra.mxu1 %v7633_v56  ;;  %7604 = vmatprep.subr.bf16.mxu0 %v7603_v57  ;;  %v875_v45 = vld [vmem:[%s13575_s1 + $0x1780] sm:$0xff]  ;;  %v7649_v48 = vpack.c.bf16 %v810_v42, %v809_v38  ;;  %v7651_v49 = vpack.c.bf16 %v844_v44, %v843_v43  ;;  %v828_v51 = vld [vmem:[%s13575_s1 + $0x1608] sm:$0xff]  ;;  %v845_v55 = vld [vmem:[%s13575_s1 + $0x1690] sm:$0xff] }
 0x154   :  { %7636 = vmatprep.subr.bf16.mxu1 %v7635_v61  ;;  %v827_v50 = vld [vmem:[%s13575_s1 + $0x1600] sm:$0xff]  ;;  %v860_v54 = vld [vmem:[%s13575_s1 + $0x1708] sm:$0xff]  ;;  %v846_v56 = vld [vmem:[%s13575_s1 + $0x1698] sm:$0xff] }
 0x155   :  { %v859_v52 = vld [vmem:[%s13575_s1 + $0x1700] sm:$0xff]  ;;  %v877_v57 = vld [vmem:[%s13575_s1 + $0x1790] sm:$0xff]  ;;  %v878_v58 = vld [vmem:[%s13575_s1 + $0x1798] sm:$0xff]  ;;  %v7653_v60 = vpack.c.bf16 %v828_v51, %v827_v50  ;;  %v7655_v63 = vpack.c.bf16 %v846_v56, %v845_v55 }
 0x156   :  { %7606 = vmatpush3.bf16.msra.mxu0 %v7605_v3  ;;  %v67_v59 = vld [vmem:[%s13574_s0 + $0x140] sm:$0xff]  ;;  %v69_v61 = vld [vmem:[%s13574_s0 + $0x150] sm:$0xff]  ;;  %v7685_v62 = vpack.c.bf16 %v860_v54, %v859_v52  ;;  %v830_v20 = vld [vmem:[%s13575_s1 + $0x1618] sm:$0xff]  ;;  %v7687_v3 = vpack.c.bf16 %v878_v58, %v877_v57 }
 0x157   :  { %7638 = vmatpush3.bf16.msra.mxu1 %v7637_v4  ;;  %7608 = vmatprep.subr.bf16.mxu0 %v7607_v5  ;;  %v5465_v21 = vpop.f32.mrb[6].mxu0  ;;  %v829_v0 = vld [vmem:[%s13575_s1 + $0x1610] sm:$0xff]  ;;  %v862_v4 = vld [vmem:[%s13575_s1 + $0x1718] sm:$0xff]  ;;  %v847_v5 = vld [vmem:[%s13575_s1 + $0x16a0] sm:$0xff] }
 0x158   :  { %7640 = vmatprep.subr.bf16.mxu1 %v7639_v9  ;;  %v5466_v26 = vpop.f32.mrb[7].mxu0  ;;  %v861_v2 = vld [vmem:[%s13575_s1 + $0x1710] sm:$0xff]  ;;  %v848_v6 = vld [vmem:[%s13575_s1 + $0x16a8] sm:$0xff]  ;;  %v879_v7 = vld [vmem:[%s13575_s1 + $0x17a0] sm:$0xff]  ;;  %v7657_v10 = vpack.c.bf16 %v830_v20, %v829_v0 }
 0x159   :  { %v5500_v27 = vpop.f32.mrb[6].mxu1  ;;  %v5467_v30 = vadd.f32 %v5466_v26, %v5465_v21  ;;  %v880_v8 = vld [vmem:[%s13575_s1 + $0x17a8] sm:$0xff]  ;;  %v74_v11 = vld [vmem:[%s13574_s0 + $0x178] sm:$0xff]  ;;  %v7689_v12 = vpack.c.bf16 %v862_v4, %v861_v2  ;;  %v7659_v13 = vpack.c.bf16 %v848_v6, %v847_v5  ;;  %v831_v14 = vld [vmem:[%s13575_s1 + $0x1620] sm:$0xff] }
 0x15a   :  { %7610 = vmatpush3.bf16.msra.mxu0 %v7609_v15  ;;  %v5501_v31 = vpop.f32.mrb[7].mxu1  ;;  %v72_v9 = vld [vmem:[%s13574_s0 + $0x168] sm:$0xff]  ;;  %v849_v19 = vld [vmem:[%s13575_s1 + $0x16b0] sm:$0xff]  ;;  %v850_v40 = vld [vmem:[%s13575_s1 + $0x16b8] sm:$0xff] }
 0x15b   :  { %v5502_v33 = vadd.f32 %v5501_v31, %v5500_v27  ;;  %7642 = vmatpush3.bf16.msra.mxu1 %v7641_v16  ;;  %7612 = vmatprep.subr.bf16.mxu0 %v7611_v17  ;;  %v2153_v39 = vadd.f32 %v5467_v30, %v10628_v1  ;;  %v876_v1 = vld [vmem:[%s13575_s1 + $0x1788] sm:$0xff]  ;;  %v863_v16 = vld [vmem:[%s13575_s1 + $0x1720] sm:$0xff]  ;;  %v7691_v17 = vpack.c.bf16 %v880_v8, %v879_v7  ;;  %v881_v21 = vld [vmem:[%s13575_s1 + $0x17b0] sm:$0xff] }
 0x15c   :  { %7644 = vmatprep.subr.bf16.mxu1 %v7643_v22  ;;  %v7683_v53 = vpack.c.bf16 %v876_v1, %v875_v45  ;;  %v832_v15 = vld [vmem:[%s13575_s1 + $0x1628] sm:$0xff]  ;;  %v882_v22 = vld [vmem:[%s13575_s1 + $0x17b8] sm:$0xff]  ;;  %v7663_v25 = vpack.c.bf16 %v850_v40, %v849_v19  ;;  %v833_v26 = vld [vmem:[%s13575_s1 + $0x1630] sm:$0xff] }
 0x15d   :  { %v10835_v46 = vadd.f32 %v5502_v33, %v2153_v39  ;;  %v864_v18 = vld [vmem:[%s13575_s1 + $0x1728] sm:$0xff]  ;;  %v7661_v23 = vpack.c.bf16 %v832_v15, %v831_v14  ;;  %v834_v27 = vld [vmem:[%s13575_s1 + $0x1638] sm:$0xff]  ;;  %v865_v28 = vld [vmem:[%s13575_s1 + $0x1730] sm:$0xff]  ;;  %v7695_v29 = vpack.c.bf16 %v882_v22, %v881_v21 }
 0x15e   :  { %7614 = vmatpush3.bf16.msra.mxu0 %v7613_v32  ;;  %v7693_v24 = vpack.c.bf16 %v864_v18, %v863_v16  ;;  %v866_v30 = vld [vmem:[%s13575_s1 + $0x1738] sm:$0xff]  ;;  %v851_v31 = vld [vmem:[%s13575_s1 + $0x16c0] sm:$0xff]  ;;  %v852_v32 = vld [vmem:[%s13575_s1 + $0x16c8] sm:$0xff] }
 0x15f   :  { %7646 = vmatpush3.bf16.msra.mxu1 %v7645_v34  ;;  %7616 = vmatprep.subr.bf16.mxu0 %v7615_v35  ;;  %v883_v33 = vld [vmem:[%s13575_s1 + $0x17c0] sm:$0xff]  ;;  %v884_v34 = vld [vmem:[%s13575_s1 + $0x17c8] sm:$0xff]  ;;  %v7665_v35 = vpack.c.bf16 %v834_v27, %v833_v26  ;;  %v7697_v36 = vpack.c.bf16 %v866_v30, %v865_v28  ;;  %v7667_v37 = vpack.c.bf16 %v852_v32, %v851_v31  ;;  %v853_v44 = vld [vmem:[%s13575_s1 + $0x16d0] sm:$0xff] }
 0x160   :  { %7648 = vmatprep.subr.bf16.mxu1 %v7647_v41  ;;  %v835_v38 = vld [vmem:[%s13575_s1 + $0x1640] sm:$0xff]  ;;  %v836_v39 = vld [vmem:[%s13575_s1 + $0x1648] sm:$0xff]  ;;  %v7699_v42 = vpack.c.bf16 %v884_v34, %v883_v33  ;;  %v854_v45 = vld [vmem:[%s13575_s1 + $0x16d8] sm:$0xff] }
 0x161   :  { %v867_v41 = vld [vmem:[%s13575_s1 + $0x1740] sm:$0xff]  ;;  %v868_v43 = vld [vmem:[%s13575_s1 + $0x1748] sm:$0xff]  ;;  %v885_v1 = vld [vmem:[%s13575_s1 + $0x17d0] sm:$0xff]  ;;  %v7671_v50 = vpack.c.bf16 %v854_v45, %v853_v44 }
 0x162   :  { %7618 = vmatpush3.bf16.msra.mxu0 %v7617_v47  ;;  %v886_v47 = vld [vmem:[%s13575_s1 + $0x17d8] sm:$0xff]  ;;  %v837_v51 = vld [vmem:[%s13575_s1 + $0x1650] sm:$0xff]  ;;  %v855_v56 = vld [vmem:[%s13575_s1 + $0x16e0] sm:$0xff] }
 0x163   :  { %7650 = vmatpush3.bf16.msra.mxu1 %v7649_v48  ;;  %7652 = vmatprep.subr.bf16.mxu0 %v7651_v49  ;;  %v7669_v48 = vpack.c.bf16 %v836_v39, %v835_v38  ;;  %v7701_v49 = vpack.c.bf16 %v868_v43, %v867_v41  ;;  %v838_v52 = vld [vmem:[%s13575_s1 + $0x1658] sm:$0xff]  ;;  %v7703_v54 = vpack.c.bf16 %v886_v47, %v885_v1  ;;  %v856_v57 = vld [vmem:[%s13575_s1 + $0x16e8] sm:$0xff]  ;;  %v887_v58 = vld [vmem:[%s13575_s1 + $0x17e0] sm:$0xff] }
 0x164   :  { %7684 = vmatprep.subr.bf16.mxu1 %v7683_v53  ;;  %v869_v53 = vld [vmem:[%s13575_s1 + $0x1750] sm:$0xff]  ;;  %v870_v55 = vld [vmem:[%s13575_s1 + $0x1758] sm:$0xff]  ;;  %v840_v0 = vld [vmem:[%s13575_s1 + $0x1668] sm:$0xff] }
 0x165   :  { %3131 = vmatmul.mubr.f32.vlgmr.msra.gmra.mrb[20].mxu0 %v67_v59  ;;  %v888_v59 = vld [vmem:[%s13575_s1 + $0x17e8] sm:$0xff]  ;;  %v871_v20 = vld [vmem:[%s13575_s1 + $0x1760] sm:$0xff]  ;;  %v857_v5 = vld [vmem:[%s13575_s1 + $0x16f0] sm:$0xff] }
 0x166   :  { %7654 = vmatpush3.bf16.msra.mxu0 %v7653_v60  ;;  %3201 = vmatmul.mubr.f32.vlgmr.msra.gmra.mrb[20].mxu1 %v69_v61  ;;  %v7673_v60 = vpack.c.bf16 %v838_v52, %v837_v51  ;;  %v7705_v61 = vpack.c.bf16 %v870_v55, %v869_v53  ;;  %v872_v4 = vld [vmem:[%s13575_s1 + $0x1768] sm:$0xff]  ;;  %v858_v6 = vld [vmem:[%s13575_s1 + $0x16f8] sm:$0xff]  ;;  %v873_v19 = vld [vmem:[%s13575_s1 + $0x1770] sm:$0xff] }
 0x167   :  { %7686 = vmatpush3.bf16.msra.mxu1 %v7685_v62  ;;  %7656 = vmatprep.subr.bf16.mxu0 %v7655_v63  ;;  %v7675_v62 = vpack.c.bf16 %v856_v57, %v855_v56  ;;  %v839_v63 = vld [vmem:[%s13575_s1 + $0x1660] sm:$0xff]  ;;  %v7709_v15 = vpack.c.bf16 %v872_v4, %v871_v20  ;;  %v7679_v16 = vpack.c.bf16 %v858_v6, %v857_v5  ;;  %v842_v18 = vld [vmem:[%s13575_s1 + $0x1678] sm:$0xff]  ;;  %v892_v31 = vld [vmem:[%s13575_s1 + $0x1808] sm:$0xff] }
 0x168   :  { %7688 = vmatprep.subr.bf16.mxu1 %v7687_v3  ;;  %3270 = vmatprep.mubr.f32.mxu0 %v72_v9  ;;  %v7707_v3 = vpack.c.bf16 %v888_v59, %v887_v58  ;;  %v889_v9 = vld [vmem:[%s13575_s1 + $0x17f0] sm:$0xff]  ;;  %v874_v22 = vld [vmem:[%s13575_s1 + $0x1778] sm:$0xff]  ;;  %v891_v30 = vld [vmem:[%s13575_s1 + $0x1800] sm:$0xff] }
 0x169   :  { %3340 = vmatprep.mubr.f32.mxu1 %v74_v11  ;;  %v7713_v28 = vpack.c.bf16 %v874_v22, %v873_v19  ;;  %v923_v32 = vld [vmem:[%s13575_s1 + $0x1900] sm:$0xff]  ;;  %v924_v34 = vld [vmem:[%s13575_s1 + $0x1908] sm:$0xff]  ;;  %v942_v38 = vld [vmem:[%s13575_s1 + $0x1998] sm:$0xff]  ;;  %v7717_v41 = vpack.c.bf16 %v892_v31, %v891_v30 }
 0x16a   :  { %7658 = vmatpush3.bf16.msra.mxu0 %v7657_v10  ;;  %v890_v10 = vld [vmem:[%s13575_s1 + $0x17f8] sm:$0xff]  ;;  %v71_v39 = vld [vmem:[%s13574_s0 + $0x160] sm:$0xff]  ;;  %v7749_v43 = vpack.c.bf16 %v924_v34, %v923_v32  ;;  %v893_v45 = vld [vmem:[%s13575_s1 + $0x1810] sm:$0xff] }
 0x16b   :  { %7690 = vmatpush3.bf16.msra.mxu1 %v7689_v12  ;;  %7660 = vmatprep.subr.bf16.mxu0 %v7659_v13  ;;  %v7677_v13 = vpack.c.bf16 %v840_v0, %v839_v63  ;;  %v7711_v21 = vpack.c.bf16 %v890_v10, %v889_v9  ;;  %v894_v1 = vld [vmem:[%s13575_s1 + $0x1818] sm:$0xff]  ;;  %v925_v47 = vld [vmem:[%s13575_s1 + $0x1910] sm:$0xff]  ;;  %v912_v51 = vld [vmem:[%s13575_s1 + $0x18a8] sm:$0xff] }
 0x16c   :  { %7692 = vmatprep.subr.bf16.mxu1 %v7691_v17  ;;  %v841_v17 = vld [vmem:[%s13575_s1 + $0x1670] sm:$0xff]  ;;  %v943_v52 = vld [vmem:[%s13575_s1 + $0x19a0] sm:$0xff]  ;;  %v944_v53 = vld [vmem:[%s13575_s1 + $0x19a8] sm:$0xff]  ;;  %v7721_v55 = vpack.c.bf16 %v894_v1, %v893_v45 }
 0x16d   :  { %v7681_v27 = vpack.c.bf16 %v842_v18, %v841_v17  ;;  %v78_v56 = vld [vmem:[%s13574_s0 + $0x198] sm:$0xff]  ;;  %v895_v59 = vld [vmem:[%s13575_s1 + $0x1820] sm:$0xff]  ;;  %v928_v63 = vld [vmem:[%s13575_s1 + $0x1928] sm:$0xff] }
 0x16e   :  { %7662 = vmatpush3.bf16.msra.mxu0 %v7661_v23  ;;  %v907_v23 = vld [vmem:[%s13575_s1 + $0x1880] sm:$0xff]  ;;  %v913_v0 = vld [vmem:[%s13575_s1 + $0x18b0] sm:$0xff]  ;;  %v914_v20 = vld [vmem:[%s13575_s1 + $0x18b8] sm:$0xff] }
 0x16f   :  { %7694 = vmatpush3.bf16.msra.mxu1 %v7693_v24  ;;  %7664 = vmatprep.subr.bf16.mxu0 %v7663_v25  ;;  %v908_v24 = vld [vmem:[%s13575_s1 + $0x1888] sm:$0xff]  ;;  %v939_v25 = vld [vmem:[%s13575_s1 + $0x1980] sm:$0xff]  ;;  %v7727_v6 = vpack.c.bf16 %v914_v20, %v913_v0  ;;  %v929_v9 = vld [vmem:[%s13575_s1 + $0x1930] sm:$0xff] }
 0x170   :  { %7696 = vmatprep.subr.bf16.mxu1 %v7695_v29  ;;  %v7715_v29 = vpack.c.bf16 %v908_v24, %v907_v23  ;;  %v899_v19 = vld [vmem:[%s13575_s1 + $0x1840] sm:$0xff]  ;;  %v932_v23 = vld [vmem:[%s13575_s1 + $0x1948] sm:$0xff]  ;;  %v917_v24 = vld [vmem:[%s13575_s1 + $0x18d0] sm:$0xff] }
 0x171   :  { %v901_v31 = vld [vmem:[%s13575_s1 + $0x1850] sm:$0xff]  ;;  %v902_v32 = vld [vmem:[%s13575_s1 + $0x1858] sm:$0xff]  ;;  %v904_v45 = vld [vmem:[%s13575_s1 + $0x1868] sm:$0xff] }
 0x172   :  { %7666 = vmatpush3.bf16.msra.mxu0 %v7665_v35  ;;  %v909_v35 = vld [vmem:[%s13575_s1 + $0x1890] sm:$0xff]  ;;  %v935_v1 = vld [vmem:[%s13575_s1 + $0x1960] sm:$0xff] }
 0x173   :  { %7698 = vmatpush3.bf16.msra.mxu1 %v7697_v36  ;;  %7668 = vmatprep.subr.bf16.mxu0 %v7667_v37  ;;  %v910_v36 = vld [vmem:[%s13575_s1 + $0x1898] sm:$0xff]  ;;  %v941_v37 = vld [vmem:[%s13575_s1 + $0x1990] sm:$0xff] }
 0x174   :  { %7700 = vmatprep.subr.bf16.mxu1 %v7699_v42  ;;  %v73_v42 = vld [vmem:[%s13574_s0 + $0x170] sm:$0xff]  ;;  %v7719_v44 = vpack.c.bf16 %v910_v36, %v909_v35  ;;  %v934_v35 = vld [vmem:[%s13575_s1 + $0x1958] sm:$0xff]  ;;  %v919_v36 = vld [vmem:[%s13575_s1 + $0x18e0] sm:$0xff] }
 0x175   :  { %v937_v0 = vld [vmem:[%s13575_s1 + $0x1970] sm:$0xff] }
 0x176   :  { %7670 = vmatpush3.bf16.msra.mxu0 %v7669_v48  ;;  %v7751_v48 = vpack.c.bf16 %v942_v38, %v941_v37  ;;  %v920_v37 = vld [vmem:[%s13575_s1 + $0x18e8] sm:$0xff]  ;;  %v951_v38 = vld [vmem:[%s13575_s1 + $0x19e0] sm:$0xff] }
 0x177   :  { %7702 = vmatpush3.bf16.msra.mxu1 %v7701_v49  ;;  %7672 = vmatprep.subr.bf16.mxu0 %v7671_v50  ;;  %v5535_v2 = vpop.f32.mrb[8].mxu0  ;;  %v926_v49 = vld [vmem:[%s13575_s1 + $0x1918] sm:$0xff]  ;;  %v911_v50 = vld [vmem:[%s13575_s1 + $0x18a0] sm:$0xff] }
 0x178   :  { %7704 = vmatprep.subr.bf16.mxu1 %v7703_v54  ;;  %v5536_v7 = vpop.f32.mrb[9].mxu0  ;;  %v76_v54 = vld [vmem:[%s13574_s0 + $0x188] sm:$0xff]  ;;  %v7753_v57 = vpack.c.bf16 %v926_v49, %v925_v47  ;;  %v7723_v58 = vpack.c.bf16 %v912_v51, %v911_v50  ;;  %v921_v50 = vld [vmem:[%s13575_s1 + $0x18f0] sm:$0xff]  ;;  %v922_v51 = vld [vmem:[%s13575_s1 + $0x18f8] sm:$0xff] }
 0x179   :  { %v5570_v8 = vpop.f32.mrb[8].mxu1  ;;  %v5537_v11 = vadd.f32 %v5536_v7, %v5535_v2  ;;  %v945_v2 = vld [vmem:[%s13575_s1 + $0x19b0] sm:$0xff]  ;;  %v936_v49 = vld [vmem:[%s13575_s1 + $0x1968] sm:$0xff] }
 0x17a   :  { %7674 = vmatpush3.bf16.msra.mxu0 %v7673_v60  ;;  %v5571_v12 = vpop.f32.mrb[9].mxu1  ;;  %v896_v60 = vld [vmem:[%s13575_s1 + $0x1828] sm:$0xff]  ;;  %v897_v7 = vld [vmem:[%s13575_s1 + $0x1830] sm:$0xff] }
 0x17b   :  { %v5572_v14 = vadd.f32 %v5571_v12, %v5570_v8  ;;  %7706 = vmatpush3.bf16.msra.mxu1 %v7705_v61  ;;  %7676 = vmatprep.subr.bf16.mxu0 %v7675_v62  ;;  %v2293_v40 = vadd.f32 %v5537_v11, %v10835_v46  ;;  %v940_v46 = vld [vmem:[%s13575_s1 + $0x1988] sm:$0xff]  ;;  %v927_v61 = vld [vmem:[%s13575_s1 + $0x1920] sm:$0xff]  ;;  %v7755_v62 = vpack.c.bf16 %v944_v53, %v943_v52  ;;  %v898_v8 = vld [vmem:[%s13575_s1 + $0x1838] sm:$0xff] }
 0x17c   :  { %7708 = vmatprep.subr.bf16.mxu1 %v7707_v3  ;;  %v7747_v33 = vpack.c.bf16 %v940_v46, %v939_v25  ;;  %v946_v3 = vld [vmem:[%s13575_s1 + $0x19b8] sm:$0xff]  ;;  %v7725_v4 = vpack.c.bf16 %v896_v60, %v895_v59  ;;  %v7757_v5 = vpack.c.bf16 %v928_v63, %v927_v61  ;;  %v915_v12 = vld [vmem:[%s13575_s1 + $0x18c0] sm:$0xff]  ;;  %v949_v46 = vld [vmem:[%s13575_s1 + $0x19d0] sm:$0xff]  ;;  %v7773_v60 = vpack.c.bf16 %v936_v49, %v935_v1 }
 0x17d   :  { %v11042_v26 = vadd.f32 %v5572_v14, %v2293_v40  ;;  %v7759_v10 = vpack.c.bf16 %v946_v3, %v945_v2  ;;  %v930_v11 = vld [vmem:[%s13575_s1 + $0x1938] sm:$0xff]  ;;  %v947_v14 = vld [vmem:[%s13575_s1 + $0x19c0] sm:$0xff]  ;;  %v900_v40 = vld [vmem:[%s13575_s1 + $0x1848] sm:$0xff]  ;;  %v7743_v61 = vpack.c.bf16 %v922_v51, %v921_v50 }
 0x17e   :  { %7678 = vmatpush3.bf16.msra.mxu0 %v7677_v13  ;;  %v916_v13 = vld [vmem:[%s13575_s1 + $0x18c8] sm:$0xff]  ;;  %v7761_v17 = vpack.c.bf16 %v930_v11, %v929_v9  ;;  %v918_v25 = vld [vmem:[%s13575_s1 + $0x18d8] sm:$0xff]  ;;  %v955_v11 = vld [vmem:[%s13575_s1 + $0x1a00] sm:$0xff] }
 0x17f   :  { %7710 = vmatpush3.bf16.msra.mxu1 %v7709_v15  ;;  %7680 = vmatprep.subr.bf16.mxu0 %v7679_v16  ;;  %v948_v15 = vld [vmem:[%s13575_s1 + $0x19c8] sm:$0xff]  ;;  %v7729_v16 = vpack.c.bf16 %v898_v8, %v897_v7  ;;  %v7731_v18 = vpack.c.bf16 %v916_v13, %v915_v12  ;;  %v7735_v30 = vpack.c.bf16 %v918_v25, %v917_v24  ;;  %v906_v63 = vld [vmem:[%s13575_s1 + $0x1878] sm:$0xff]  ;;  %v987_v13 = vld [vmem:[%s13575_s1 + $0x1b00] sm:$0xff] }
 0x180   :  { %7712 = vmatprep.subr.bf16.mxu1 %v7711_v21  ;;  %v931_v21 = vld [vmem:[%s13575_s1 + $0x1940] sm:$0xff]  ;;  %v7763_v22 = vpack.c.bf16 %v948_v15, %v947_v14  ;;  %v938_v3 = vld [vmem:[%s13575_s1 + $0x1978] sm:$0xff]  ;;  %v956_v12 = vld [vmem:[%s13575_s1 + $0x1a08] sm:$0xff] }
 0x181   :  { %v7777_v9 = vpack.c.bf16 %v938_v3, %v937_v0  ;;  %v988_v15 = vld [vmem:[%s13575_s1 + $0x1b08] sm:$0xff]  ;;  %v957_v25 = vld [vmem:[%s13575_s1 + $0x1a10] sm:$0xff]  ;;  %v978_v1 = vld [vmem:[%s13575_s1 + $0x1ab8] sm:$0xff] }
 0x182   :  { %7682 = vmatpush3.bf16.msra.mxu0 %v7681_v27  ;;  %v950_v27 = vld [vmem:[%s13575_s1 + $0x19d8] sm:$0xff]  ;;  %v963_v0 = vld [vmem:[%s13575_s1 + $0x1a40] sm:$0xff] }
 0x183   :  { %7714 = vmatpush3.bf16.msra.mxu1 %v7713_v28  ;;  %7716 = vmatprep.subr.bf16.mxu0 %v7715_v29  ;;  %v7733_v28 = vpack.c.bf16 %v900_v40, %v899_v19  ;;  %v7765_v29 = vpack.c.bf16 %v932_v23, %v931_v21  ;;  %v7767_v34 = vpack.c.bf16 %v950_v27, %v949_v46  ;;  %v1006_v19 = vld [vmem:[%s13575_s1 + $0x1b98] sm:$0xff]  ;;  %v75_v40 = vld [vmem:[%s13574_s0 + $0x180] sm:$0xff]  ;;  %v989_v27 = vld [vmem:[%s13575_s1 + $0x1b10] sm:$0xff] }
 0x184   :  { %7748 = vmatprep.subr.bf16.mxu1 %v7747_v33  ;;  %v933_v33 = vld [vmem:[%s13575_s1 + $0x1950] sm:$0xff]  ;;  %v7781_v21 = vpack.c.bf16 %v956_v12, %v955_v11  ;;  %v7813_v23 = vpack.c.bf16 %v988_v15, %v987_v13  ;;  %v958_v46 = vld [vmem:[%s13575_s1 + $0x1a18] sm:$0xff] }
 0x185   :  { %3271 = vmatmul.mubr.f32.vlgmr.msra.gmra.mrb[22].mxu0 %v71_v39  ;;  %v952_v39 = vld [vmem:[%s13575_s1 + $0x19e8] sm:$0xff]  ;;  %v965_v12 = vld [vmem:[%s13575_s1 + $0x1a50] sm:$0xff]  ;;  %v966_v13 = vld [vmem:[%s13575_s1 + $0x1a58] sm:$0xff] }
 0x186   :  { %7718 = vmatpush3.bf16.msra.mxu0 %v7717_v41  ;;  %3341 = vmatmul.mubr.f32.vlgmr.msra.gmra.mrb[22].mxu1 %v73_v42  ;;  %v7737_v41 = vpack.c.bf16 %v902_v32, %v901_v31  ;;  %v7769_v42 = vpack.c.bf16 %v934_v35, %v933_v33  ;;  %v976_v31 = vld [vmem:[%s13575_s1 + $0x1aa8] sm:$0xff]  ;;  %v1007_v32 = vld [vmem:[%s13575_s1 + $0x1ba0] sm:$0xff]  ;;  %v7785_v35 = vpack.c.bf16 %v958_v46, %v957_v25 }
 0x187   :  { %7750 = vmatpush3.bf16.msra.mxu1 %v7749_v43  ;;  %7720 = vmatprep.subr.bf16.mxu0 %v7719_v44  ;;  %v7739_v43 = vpack.c.bf16 %v920_v37, %v919_v36  ;;  %v903_v44 = vld [vmem:[%s13575_s1 + $0x1860] sm:$0xff]  ;;  %v1008_v33 = vld [vmem:[%s13575_s1 + $0x1ba8] sm:$0xff]  ;;  %v82_v36 = vld [vmem:[%s13574_s0 + $0x1b8] sm:$0xff] }
 0x188   :  { %7752 = vmatprep.subr.bf16.mxu1 %v7751_v48  ;;  %3410 = vmatprep.mubr.f32.mxu0 %v76_v54  ;;  %v7771_v48 = vpack.c.bf16 %v952_v39, %v951_v38  ;;  %v953_v54 = vld [vmem:[%s13575_s1 + $0x19f0] sm:$0xff]  ;;  %v959_v39 = vld [vmem:[%s13575_s1 + $0x1a20] sm:$0xff]  ;;  %v968_v25 = vld [vmem:[%s13575_s1 + $0x1a68] sm:$0xff] }
 0x189   :  { %3480 = vmatprep.mubr.f32.mxu1 %v78_v56  ;;  %v999_v46 = vld [vmem:[%s13575_s1 + $0x1b60] sm:$0xff] }
 0x18a   :  { %7722 = vmatpush3.bf16.msra.mxu0 %v7721_v55  ;;  %v954_v55 = vld [vmem:[%s13575_s1 + $0x19f8] sm:$0xff] }
 0x18b   :  { %7754 = vmatpush3.bf16.msra.mxu1 %v7753_v57  ;;  %7724 = vmatprep.subr.bf16.mxu0 %v7723_v58  ;;  %v7741_v58 = vpack.c.bf16 %v904_v45, %v903_v44  ;;  %v7775_v2 = vpack.c.bf16 %v954_v55, %v953_v54  ;;  %v992_v44 = vld [vmem:[%s13575_s1 + $0x1b28] sm:$0xff]  ;;  %v977_v45 = vld [vmem:[%s13575_s1 + $0x1ab0] sm:$0xff] }
 0x18c   :  { %7756 = vmatprep.subr.bf16.mxu1 %v7755_v62  ;;  %v905_v62 = vld [vmem:[%s13575_s1 + $0x1870] sm:$0xff]  ;;  %v7791_v51 = vpack.c.bf16 %v978_v1, %v977_v45 }
 0x18d   :  { %v7745_v8 = vpack.c.bf16 %v906_v63, %v905_v62  ;;  %v993_v54 = vld [vmem:[%s13575_s1 + $0x1b30] sm:$0xff] }
 0x18e   :  { %7726 = vmatpush3.bf16.msra.mxu0 %v7725_v4  ;;  %v971_v4 = vld [vmem:[%s13575_s1 + $0x1a80] sm:$0xff]  ;;  %v1001_v45 = vld [vmem:[%s13575_s1 + $0x1b70] sm:$0xff] }
 0x18f   :  { %7758 = vmatpush3.bf16.msra.mxu1 %v7757_v5  ;;  %7728 = vmatprep.subr.bf16.mxu0 %v7727_v6  ;;  %v972_v5 = vld [vmem:[%s13575_s1 + $0x1a88] sm:$0xff]  ;;  %v1003_v6 = vld [vmem:[%s13575_s1 + $0x1b80] sm:$0xff] }
 0x190   :  { %7760 = vmatprep.subr.bf16.mxu1 %v7759_v10  ;;  %v7779_v10 = vpack.c.bf16 %v972_v5, %v971_v4  ;;  %v996_v4 = vld [vmem:[%s13575_s1 + $0x1b48] sm:$0xff]  ;;  %v981_v5 = vld [vmem:[%s13575_s1 + $0x1ad0] sm:$0xff] }
 0x192   :  { %7730 = vmatpush3.bf16.msra.mxu0 %v7729_v16  ;;  %v973_v16 = vld [vmem:[%s13575_s1 + $0x1a90] sm:$0xff] }
 0x193   :  { %7762 = vmatpush3.bf16.msra.mxu1 %v7761_v17  ;;  %7732 = vmatprep.subr.bf16.mxu0 %v7731_v18  ;;  %v974_v17 = vld [vmem:[%s13575_s1 + $0x1a98] sm:$0xff]  ;;  %v1005_v18 = vld [vmem:[%s13575_s1 + $0x1b90] sm:$0xff] }
 0x194   :  { %7764 = vmatprep.subr.bf16.mxu1 %v7763_v22  ;;  %v77_v22 = vld [vmem:[%s13574_s0 + $0x190] sm:$0xff]  ;;  %v7783_v24 = vpack.c.bf16 %v974_v17, %v973_v16  ;;  %v998_v16 = vld [vmem:[%s13575_s1 + $0x1b58] sm:$0xff]  ;;  %v983_v17 = vld [vmem:[%s13575_s1 + $0x1ae0] sm:$0xff] }
 0x196   :  { %7734 = vmatpush3.bf16.msra.mxu0 %v7733_v28  ;;  %v7815_v28 = vpack.c.bf16 %v1006_v19, %v1005_v18  ;;  %v984_v18 = vld [vmem:[%s13575_s1 + $0x1ae8] sm:$0xff]  ;;  %v1015_v19 = vld [vmem:[%s13575_s1 + $0x1be0] sm:$0xff] }
 0x197   :  { %7766 = vmatpush3.bf16.msra.mxu1 %v7765_v29  ;;  %7736 = vmatprep.subr.bf16.mxu0 %v7735_v30  ;;  %v5605_v47 = vpop.f32.mrb[10].mxu0  ;;  %v990_v29 = vld [vmem:[%s13575_s1 + $0x1b18] sm:$0xff]  ;;  %v975_v30 = vld [vmem:[%s13575_s1 + $0x1aa0] sm:$0xff] }
 0x198   :  { %7768 = vmatprep.subr.bf16.mxu1 %v7767_v34  ;;  %v5606_v52 = vpop.f32.mrb[11].mxu0  ;;  %v80_v34 = vld [vmem:[%s13574_s0 + $0x1a8] sm:$0xff]  ;;  %v7817_v37 = vpack.c.bf16 %v990_v29, %v989_v27  ;;  %v7787_v38 = vpack.c.bf16 %v976_v31, %v975_v30  ;;  %v985_v30 = vld [vmem:[%s13575_s1 + $0x1af0] sm:$0xff]  ;;  %v986_v31 = vld [vmem:[%s13575_s1 + $0x1af8] sm:$0xff] }
 0x199   :  { %v5640_v53 = vpop.f32.mrb[10].mxu1  ;;  %v5607_v56 = vadd.f32 %v5606_v52, %v5605_v47  ;;  %v1009_v47 = vld [vmem:[%s13575_s1 + $0x1bb0] sm:$0xff]  ;;  %v1000_v29 = vld [vmem:[%s13575_s1 + $0x1b68] sm:$0xff] }
 0x19a   :  { %7738 = vmatpush3.bf16.msra.mxu0 %v7737_v41  ;;  %v5641_v57 = vpop.f32.mrb[11].mxu1  ;;  %v960_v41 = vld [vmem:[%s13575_s1 + $0x1a28] sm:$0xff]  ;;  %v961_v52 = vld [vmem:[%s13575_s1 + $0x1a30] sm:$0xff] }
 0x19b   :  { %v5642_v59 = vadd.f32 %v5641_v57, %v5640_v53  ;;  %7770 = vmatpush3.bf16.msra.mxu1 %v7769_v42  ;;  %7740 = vmatprep.subr.bf16.mxu0 %v7739_v43  ;;  %v2433_v20 = vadd.f32 %v5607_v56, %v11042_v26  ;;  %v1004_v26 = vld [vmem:[%s13575_s1 + $0x1b88] sm:$0xff]  ;;  %v991_v42 = vld [vmem:[%s13575_s1 + $0x1b20] sm:$0xff]  ;;  %v7819_v43 = vpack.c.bf16 %v1008_v33, %v1007_v32  ;;  %v962_v53 = vld [vmem:[%s13575_s1 + $0x1a38] sm:$0xff] }
 0x19c   :  { %7772 = vmatprep.subr.bf16.mxu1 %v7771_v48  ;;  %v7811_v14 = vpack.c.bf16 %v1004_v26, %v1003_v6  ;;  %v1010_v48 = vld [vmem:[%s13575_s1 + $0x1bb8] sm:$0xff]  ;;  %v7789_v49 = vpack.c.bf16 %v960_v41, %v959_v39  ;;  %v7821_v50 = vpack.c.bf16 %v992_v44, %v991_v42  ;;  %v979_v57 = vld [vmem:[%s13575_s1 + $0x1ac0] sm:$0xff]  ;;  %v1013_v26 = vld [vmem:[%s13575_s1 + $0x1bd0] sm:$0xff]  ;;  %v7837_v41 = vpack.c.bf16 %v1000_v29, %v999_v46 }
 0x19d   :  { %v11249_v7 = vadd.f32 %v5642_v59, %v2433_v20  ;;  %v7823_v55 = vpack.c.bf16 %v1010_v48, %v1009_v47  ;;  %v994_v56 = vld [vmem:[%s13575_s1 + $0x1b38] sm:$0xff]  ;;  %v1011_v59 = vld [vmem:[%s13575_s1 + $0x1bc0] sm:$0xff]  ;;  %v964_v20 = vld [vmem:[%s13575_s1 + $0x1a48] sm:$0xff]  ;;  %v7807_v42 = vpack.c.bf16 %v986_v31, %v985_v30 }
 0x19e   :  { %7742 = vmatpush3.bf16.msra.mxu0 %v7741_v58  ;;  %v980_v58 = vld [vmem:[%s13575_s1 + $0x1ac8] sm:$0xff]  ;;  %v7825_v62 = vpack.c.bf16 %v994_v56, %v993_v54  ;;  %v982_v6 = vld [vmem:[%s13575_s1 + $0x1ad8] sm:$0xff]  ;;  %v1019_v56 = vld [vmem:[%s13575_s1 + $0x1c00] sm:$0xff] }
 0x19f   :  { %7774 = vmatpush3.bf16.msra.mxu1 %v7773_v60  ;;  %7744 = vmatprep.subr.bf16.mxu0 %v7743_v61  ;;  %v1012_v60 = vld [vmem:[%s13575_s1 + $0x1bc8] sm:$0xff]  ;;  %v7793_v61 = vpack.c.bf16 %v962_v53, %v961_v52  ;;  %v7795_v63 = vpack.c.bf16 %v980_v58, %v979_v57  ;;  %v7799_v11 = vpack.c.bf16 %v982_v6, %v981_v5  ;;  %v970_v44 = vld [vmem:[%s13575_s1 + $0x1a78] sm:$0xff]  ;;  %v1051_v58 = vld [vmem:[%s13575_s1 + $0x1d00] sm:$0xff] }
 0x1a0   :  { %7776 = vmatprep.subr.bf16.mxu1 %v7775_v2  ;;  %v995_v2 = vld [vmem:[%s13575_s1 + $0x1b40] sm:$0xff]  ;;  %v7827_v3 = vpack.c.bf16 %v1012_v60, %v1011_v59  ;;  %v1002_v48 = vld [vmem:[%s13575_s1 + $0x1b78] sm:$0xff]  ;;  %v1020_v57 = vld [vmem:[%s13575_s1 + $0x1c08] sm:$0xff] }
 0x1a1   :  { %v7841_v54 = vpack.c.bf16 %v1002_v48, %v1001_v45  ;;  %v1052_v60 = vld [vmem:[%s13575_s1 + $0x1d08] sm:$0xff]  ;;  %v1021_v6 = vld [vmem:[%s13575_s1 + $0x1c10] sm:$0xff]  ;;  %v1042_v46 = vld [vmem:[%s13575_s1 + $0x1cb8] sm:$0xff] }
 0x1a2   :  { %7746 = vmatpush3.bf16.msra.mxu0 %v7745_v8  ;;  %v1014_v8 = vld [vmem:[%s13575_s1 + $0x1bd8] sm:$0xff]  ;;  %v1027_v45 = vld [vmem:[%s13575_s1 + $0x1c40] sm:$0xff] }
 0x1a3   :  { %7778 = vmatpush3.bf16.msra.mxu1 %v7777_v9  ;;  %7780 = vmatprep.subr.bf16.mxu0 %v7779_v10  ;;  %v7797_v9 = vpack.c.bf16 %v964_v20, %v963_v0  ;;  %v7829_v10 = vpack.c.bf16 %v996_v4, %v995_v2  ;;  %v7831_v15 = vpack.c.bf16 %v1014_v8, %v1013_v26  ;;  %v1070_v0 = vld [vmem:[%s13575_s1 + $0x1d98] sm:$0xff]  ;;  %v79_v20 = vld [vmem:[%s13574_s0 + $0x1a0] sm:$0xff]  ;;  %v1053_v8 = vld [vmem:[%s13575_s1 + $0x1d10] sm:$0xff] }
 0x1a4   :  { %7812 = vmatprep.subr.bf16.mxu1 %v7811_v14  ;;  %v997_v14 = vld [vmem:[%s13575_s1 + $0x1b50] sm:$0xff]  ;;  %v7845_v2 = vpack.c.bf16 %v1020_v57, %v1019_v56  ;;  %v7877_v4 = vpack.c.bf16 %v1052_v60, %v1051_v58  ;;  %v1022_v26 = vld [vmem:[%s13575_s1 + $0x1c18] sm:$0xff] }
 0x1a5   :  { %3411 = vmatmul.mubr.f32.vlgmr.msra.gmra.mrb[24].mxu0 %v75_v40  ;;  %v1016_v40 = vld [vmem:[%s13575_s1 + $0x1be8] sm:$0xff]  ;;  %v1029_v57 = vld [vmem:[%s13575_s1 + $0x1c50] sm:$0xff]  ;;  %v1030_v58 = vld [vmem:[%s13575_s1 + $0x1c58] sm:$0xff] }
 0x1a6   :  { %7782 = vmatpush3.bf16.msra.mxu0 %v7781_v21  ;;  %3481 = vmatmul.mubr.f32.vlgmr.msra.gmra.mrb[24].mxu1 %v77_v22  ;;  %v7801_v21 = vpack.c.bf16 %v966_v13, %v965_v12  ;;  %v7833_v22 = vpack.c.bf16 %v998_v16, %v997_v14  ;;  %v1040_v12 = vld [vmem:[%s13575_s1 + $0x1ca8] sm:$0xff]  ;;  %v1071_v13 = vld [vmem:[%s13575_s1 + $0x1da0] sm:$0xff]  ;;  %v7849_v16 = vpack.c.bf16 %v1022_v26, %v1021_v6 }
 0x1a7   :  { %7814 = vmatpush3.bf16.msra.mxu1 %v7813_v23  ;;  %7784 = vmatprep.subr.bf16.mxu0 %v7783_v24  ;;  %v7803_v23 = vpack.c.bf16 %v984_v18, %v983_v17  ;;  %v967_v24 = vld [vmem:[%s13575_s1 + $0x1a60] sm:$0xff]  ;;  %v1072_v14 = vld [vmem:[%s13575_s1 + $0x1da8] sm:$0xff]  ;;  %v86_v17 = vld [vmem:[%s13574_s0 + $0x1d8] sm:$0xff] }
 0x1a8   :  { %7816 = vmatprep.subr.bf16.mxu1 %v7815_v28  ;;  %3550 = vmatprep.mubr.f32.mxu0 %v80_v34  ;;  %v7835_v28 = vpack.c.bf16 %v1016_v40, %v1015_v19  ;;  %v1017_v34 = vld [vmem:[%s13575_s1 + $0x1bf0] sm:$0xff]  ;;  %v1023_v40 = vld [vmem:[%s13575_s1 + $0x1c20] sm:$0xff]  ;;  %v1032_v6 = vld [vmem:[%s13575_s1 + $0x1c68] sm:$0xff] }
 0x1a9   :  { %3620 = vmatprep.mubr.f32.mxu1 %v82_v36  ;;  %v1063_v26 = vld [vmem:[%s13575_s1 + $0x1d60] sm:$0xff] }
 0x1aa   :  { %7786 = vmatpush3.bf16.msra.mxu0 %v7785_v35  ;;  %v1018_v35 = vld [vmem:[%s13575_s1 + $0x1bf8] sm:$0xff] }
 0x1ab   :  { %7818 = vmatpush3.bf16.msra.mxu1 %v7817_v37  ;;  %7788 = vmatprep.subr.bf16.mxu0 %v7787_v38  ;;  %v7805_v38 = vpack.c.bf16 %v968_v25, %v967_v24  ;;  %v7839_v47 = vpack.c.bf16 %v1018_v35, %v1017_v34  ;;  %v1056_v24 = vld [vmem:[%s13575_s1 + $0x1d28] sm:$0xff]  ;;  %v1041_v25 = vld [vmem:[%s13575_s1 + $0x1cb0] sm:$0xff] }
 0x1ac   :  { %7820 = vmatprep.subr.bf16.mxu1 %v7819_v43  ;;  %v969_v43 = vld [vmem:[%s13575_s1 + $0x1a70] sm:$0xff]  ;;  %v7855_v31 = vpack.c.bf16 %v1042_v46, %v1041_v25 }
 0x1ad   :  { %v7809_v53 = vpack.c.bf16 %v970_v44, %v969_v43  ;;  %v1057_v34 = vld [vmem:[%s13575_s1 + $0x1d30] sm:$0xff] }
 0x1ae   :  { %7790 = vmatpush3.bf16.msra.mxu0 %v7789_v49  ;;  %v1035_v49 = vld [vmem:[%s13575_s1 + $0x1c80] sm:$0xff]  ;;  %v1065_v25 = vld [vmem:[%s13575_s1 + $0x1d70] sm:$0xff] }
 0x1af   :  { %7822 = vmatpush3.bf16.msra.mxu1 %v7821_v50  ;;  %7792 = vmatprep.subr.bf16.mxu0 %v7791_v51  ;;  %v1036_v50 = vld [vmem:[%s13575_s1 + $0x1c88] sm:$0xff]  ;;  %v1067_v51 = vld [vmem:[%s13575_s1 + $0x1d80] sm:$0xff] }
 0x1b0   :  { %7824 = vmatprep.subr.bf16.mxu1 %v7823_v55  ;;  %v7843_v55 = vpack.c.bf16 %v1036_v50, %v1035_v49  ;;  %v1060_v49 = vld [vmem:[%s13575_s1 + $0x1d48] sm:$0xff]  ;;  %v1045_v50 = vld [vmem:[%s13575_s1 + $0x1cd0] sm:$0xff] }
 0x1b2   :  { %7794 = vmatpush3.bf16.msra.mxu0 %v7793_v61  ;;  %v1037_v61 = vld [vmem:[%s13575_s1 + $0x1c90] sm:$0xff] }
 0x1b3   :  { %7826 = vmatpush3.bf16.msra.mxu1 %v7825_v62  ;;  %7796 = vmatprep.subr.bf16.mxu0 %v7795_v63  ;;  %v1038_v62 = vld [vmem:[%s13575_s1 + $0x1c98] sm:$0xff]  ;;  %v1069_v63 = vld [vmem:[%s13575_s1 + $0x1d90] sm:$0xff] }
 0x1b4   :  { %7828 = vmatprep.subr.bf16.mxu1 %v7827_v3  ;;  %v81_v3 = vld [vmem:[%s13574_s0 + $0x1b0] sm:$0xff]  ;;  %v7847_v5 = vpack.c.bf16 %v1038_v62, %v1037_v61  ;;  %v1062_v61 = vld [vmem:[%s13575_s1 + $0x1d58] sm:$0xff]  ;;  %v1047_v62 = vld [vmem:[%s13575_s1 + $0x1ce0] sm:$0xff] }
 0x1b6   :  { %7798 = vmatpush3.bf16.msra.mxu0 %v7797_v9  ;;  %v7879_v9 = vpack.c.bf16 %v1070_v0, %v1069_v63  ;;  %v1048_v63 = vld [vmem:[%s13575_s1 + $0x1ce8] sm:$0xff]  ;;  %v1079_v0 = vld [vmem:[%s13575_s1 + $0x1de0] sm:$0xff] }
 0x1b7   :  { %7830 = vmatpush3.bf16.msra.mxu1 %v7829_v10  ;;  %7800 = vmatprep.subr.bf16.mxu0 %v7799_v11  ;;  %v5675_v27 = vpop.f32.mrb[12].mxu0  ;;  %v1054_v10 = vld [vmem:[%s13575_s1 + $0x1d18] sm:$0xff]  ;;  %v1039_v11 = vld [vmem:[%s13575_s1 + $0x1ca0] sm:$0xff] }
 0x1b8   :  { %7832 = vmatprep.subr.bf16.mxu1 %v7831_v15  ;;  %v5676_v32 = vpop.f32.mrb[13].mxu0  ;;  %v84_v15 = vld [vmem:[%s13574_s0 + $0x1c8] sm:$0xff]  ;;  %v7881_v18 = vpack.c.bf16 %v1054_v10, %v1053_v8  ;;  %v7851_v19 = vpack.c.bf16 %v1040_v12, %v1039_v11  ;;  %v1049_v11 = vld [vmem:[%s13575_s1 + $0x1cf0] sm:$0xff]  ;;  %v1050_v12 = vld [vmem:[%s13575_s1 + $0x1cf8] sm:$0xff] }
 0x1b9   :  { %v5710_v33 = vpop.f32.mrb[12].mxu1  ;;  %v5677_v36 = vadd.f32 %v5676_v32, %v5675_v27  ;;  %v1073_v27 = vld [vmem:[%s13575_s1 + $0x1db0] sm:$0xff]  ;;  %v1064_v10 = vld [vmem:[%s13575_s1 + $0x1d68] sm:$0xff] }
 0x1ba   :  { %7802 = vmatpush3.bf16.msra.mxu0 %v7801_v21  ;;  %v5711_v37 = vpop.f32.mrb[13].mxu1  ;;  %v1024_v21 = vld [vmem:[%s13575_s1 + $0x1c28] sm:$0xff]  ;;  %v1025_v32 = vld [vmem:[%s13575_s1 + $0x1c30] sm:$0xff] }
 0x1bb   :  { %v5712_v39 = vadd.f32 %v5711_v37, %v5710_v33  ;;  %7834 = vmatpush3.bf16.msra.mxu1 %v7833_v22  ;;  %7804 = vmatprep.subr.bf16.mxu0 %v7803_v23  ;;  %v2573_v1 = vadd.f32 %v5677_v36, %v11249_v7  ;;  %v1068_v7 = vld [vmem:[%s13575_s1 + $0x1d88] sm:$0xff]  ;;  %v1055_v22 = vld [vmem:[%s13575_s1 + $0x1d20] sm:$0xff]  ;;  %v7883_v23 = vpack.c.bf16 %v1072_v14, %v1071_v13  ;;  %v1026_v33 = vld [vmem:[%s13575_s1 + $0x1c38] sm:$0xff] }
 0x1bc   :  { %7836 = vmatprep.subr.bf16.mxu1 %v7835_v28  ;;  %v7875_v59 = vpack.c.bf16 %v1068_v7, %v1067_v51  ;;  %v1074_v28 = vld [vmem:[%s13575_s1 + $0x1db8] sm:$0xff]  ;;  %v7853_v29 = vpack.c.bf16 %v1024_v21, %v1023_v40  ;;  %v7885_v30 = vpack.c.bf16 %v1056_v24, %v1055_v22  ;;  %v1043_v37 = vld [vmem:[%s13575_s1 + $0x1cc0] sm:$0xff]  ;;  %v1077_v7 = vld [vmem:[%s13575_s1 + $0x1dd0] sm:$0xff]  ;;  %v7901_v21 = vpack.c.bf16 %v1064_v10, %v1063_v26 }
 0x1bd   :  { %v11456_v52 = vadd.f32 %v5712_v39, %v2573_v1  ;;  %v7887_v35 = vpack.c.bf16 %v1074_v28, %v1073_v27  ;;  %v1058_v36 = vld [vmem:[%s13575_s1 + $0x1d38] sm:$0xff]  ;;  %v1075_v39 = vld [vmem:[%s13575_s1 + $0x1dc0] sm:$0xff]  ;;  %v1028_v1 = vld [vmem:[%s13575_s1 + $0x1c48] sm:$0xff]  ;;  %v7871_v22 = vpack.c.bf16 %v1050_v12, %v1049_v11 }
 0x1be   :  { %7806 = vmatpush3.bf16.msra.mxu0 %v7805_v38  ;;  %v1044_v38 = vld [vmem:[%s13575_s1 + $0x1cc8] sm:$0xff]  ;;  %v7889_v43 = vpack.c.bf16 %v1058_v36, %v1057_v34  ;;  %v1046_v51 = vld [vmem:[%s13575_s1 + $0x1cd8] sm:$0xff]  ;;  %v1083_v36 = vld [vmem:[%s13575_s1 + $0x1e00] sm:$0xff] }
 0x1bf   :  { %7838 = vmatpush3.bf16.msra.mxu1 %v7837_v41  ;;  %7808 = vmatprep.subr.bf16.mxu0 %v7807_v42  ;;  %v1076_v41 = vld [vmem:[%s13575_s1 + $0x1dc8] sm:$0xff]  ;;  %v7857_v42 = vpack.c.bf16 %v1026_v33, %v1025_v32  ;;  %v7859_v44 = vpack.c.bf16 %v1044_v38, %v1043_v37  ;;  %v7863_v56 = vpack.c.bf16 %v1046_v51, %v1045_v50  ;;  %v1034_v24 = vld [vmem:[%s13575_s1 + $0x1c78] sm:$0xff]  ;;  %v1115_v38 = vld [vmem:[%s13575_s1 + $0x1f00] sm:$0xff] }
 0x1c0   :  { %7840 = vmatprep.subr.bf16.mxu1 %v7839_v47  ;;  %v1059_v47 = vld [vmem:[%s13575_s1 + $0x1d40] sm:$0xff]  ;;  %v7891_v48 = vpack.c.bf16 %v1076_v41, %v1075_v39  ;;  %v1066_v28 = vld [vmem:[%s13575_s1 + $0x1d78] sm:$0xff]  ;;  %v1084_v37 = vld [vmem:[%s13575_s1 + $0x1e08] sm:$0xff] }
 0x1c1   :  { %v7905_v34 = vpack.c.bf16 %v1066_v28, %v1065_v25  ;;  %v1116_v41 = vld [vmem:[%s13575_s1 + $0x1f08] sm:$0xff]  ;;  %v1085_v51 = vld [vmem:[%s13575_s1 + $0x1e10] sm:$0xff]  ;;  %v1106_v26 = vld [vmem:[%s13575_s1 + $0x1eb8] sm:$0xff] }
 0x1c2   :  { %7810 = vmatpush3.bf16.msra.mxu0 %v7809_v53  ;;  %v1078_v53 = vld [vmem:[%s13575_s1 + $0x1dd8] sm:$0xff]  ;;  %v1091_v25 = vld [vmem:[%s13575_s1 + $0x1e40] sm:$0xff] }
 0x1c3   :  { %7842 = vmatpush3.bf16.msra.mxu1 %v7841_v54  ;;  %7844 = vmatprep.subr.bf16.mxu0 %v7843_v55  ;;  %v7861_v54 = vpack.c.bf16 %v1028_v1, %v1027_v45  ;;  %v7893_v55 = vpack.c.bf16 %v1060_v49, %v1059_v47  ;;  %v7895_v60 = vpack.c.bf16 %v1078_v53, %v1077_v7  ;;  %v1134_v45 = vld [vmem:[%s13575_s1 + $0x1f98] sm:$0xff]  ;;  %v83_v1 = vld [vmem:[%s13574_s0 + $0x1c0] sm:$0xff]  ;;  %v1117_v53 = vld [vmem:[%s13575_s1 + $0x1f10] sm:$0xff] }
 0x1c4   :  { %7876 = vmatprep.subr.bf16.mxu1 %v7875_v59  ;;  %v1061_v59 = vld [vmem:[%s13575_s1 + $0x1d50] sm:$0xff]  ;;  %v7909_v47 = vpack.c.bf16 %v1084_v37, %v1083_v36  ;;  %v7941_v49 = vpack.c.bf16 %v1116_v41, %v1115_v38  ;;  %v1086_v7 = vld [vmem:[%s13575_s1 + $0x1e18] sm:$0xff] }
 0x1c5   :  { %3551 = vmatmul.mubr.f32.vlgmr.msra.gmra.mrb[26].mxu0 %v79_v20  ;;  %v1080_v20 = vld [vmem:[%s13575_s1 + $0x1de8] sm:$0xff]  ;;  %v1093_v37 = vld [vmem:[%s13575_s1 + $0x1e50] sm:$0xff]  ;;  %v1094_v38 = vld [vmem:[%s13575_s1 + $0x1e58] sm:$0xff] }
 0x1c6   :  { %7846 = vmatpush3.bf16.msra.mxu0 %v7845_v2  ;;  %3621 = vmatmul.mubr.f32.vlgmr.msra.gmra.mrb[26].mxu1 %v81_v3  ;;  %v7865_v2 = vpack.c.bf16 %v1030_v58, %v1029_v57  ;;  %v7897_v3 = vpack.c.bf16 %v1062_v61, %v1061_v59  ;;  %v1104_v57 = vld [vmem:[%s13575_s1 + $0x1ea8] sm:$0xff]  ;;  %v1135_v58 = vld [vmem:[%s13575_s1 + $0x1fa0] sm:$0xff]  ;;  %v7913_v61 = vpack.c.bf16 %v1086_v7, %v1085_v51 }
 0x1c7   :  { %7878 = vmatpush3.bf16.msra.mxu1 %v7877_v4  ;;  %7848 = vmatprep.subr.bf16.mxu0 %v7847_v5  ;;  %v7867_v4 = vpack.c.bf16 %v1048_v63, %v1047_v62  ;;  %v1031_v5 = vld [vmem:[%s13575_s1 + $0x1c60] sm:$0xff]  ;;  %v1136_v59 = vld [vmem:[%s13575_s1 + $0x1fa8] sm:$0xff]  ;;  %v90_v62 = vld [vmem:[%s13574_s0 + $0x1f8] sm:$0xff] }
 0x1c8   :  { %7880 = vmatprep.subr.bf16.mxu1 %v7879_v9  ;;  %3690 = vmatprep.mubr.f32.mxu0 %v84_v15  ;;  %v7899_v9 = vpack.c.bf16 %v1080_v20, %v1079_v0  ;;  %v1081_v15 = vld [vmem:[%s13575_s1 + $0x1df0] sm:$0xff]  ;;  %v1087_v20 = vld [vmem:[%s13575_s1 + $0x1e20] sm:$0xff]  ;;  %v1096_v51 = vld [vmem:[%s13575_s1 + $0x1e68] sm:$0xff] }
 0x1c9   :  { %3760 = vmatprep.mubr.f32.mxu1 %v86_v17  ;;  %v1127_v7 = vld [vmem:[%s13575_s1 + $0x1f60] sm:$0xff] }
 0x1ca   :  { %7850 = vmatpush3.bf16.msra.mxu0 %v7849_v16  ;;  %v1082_v16 = vld [vmem:[%s13575_s1 + $0x1df8] sm:$0xff] }
 0x1cb   :  { %7882 = vmatpush3.bf16.msra.mxu1 %v7881_v18  ;;  %7852 = vmatprep.subr.bf16.mxu0 %v7851_v19  ;;  %v7869_v19 = vpack.c.bf16 %v1032_v6, %v1031_v5  ;;  %v7903_v27 = vpack.c.bf16 %v1082_v16, %v1081_v15  ;;  %v1120_v5 = vld [vmem:[%s13575_s1 + $0x1f28] sm:$0xff]  ;;  %v1105_v6 = vld [vmem:[%s13575_s1 + $0x1eb0] sm:$0xff] }
 0x1cc   :  { %7884 = vmatprep.subr.bf16.mxu1 %v7883_v23  ;;  %v1033_v23 = vld [vmem:[%s13575_s1 + $0x1c70] sm:$0xff]  ;;  %v7919_v12 = vpack.c.bf16 %v1106_v26, %v1105_v6 }
 0x1cd   :  { %v7873_v33 = vpack.c.bf16 %v1034_v24, %v1033_v23  ;;  %v1121_v15 = vld [vmem:[%s13575_s1 + $0x1f30] sm:$0xff] }
 0x1ce   :  { %7854 = vmatpush3.bf16.msra.mxu0 %v7853_v29  ;;  %v1099_v29 = vld [vmem:[%s13575_s1 + $0x1e80] sm:$0xff]  ;;  %v1129_v6 = vld [vmem:[%s13575_s1 + $0x1f70] sm:$0xff] }
 0x1cf   :  { %7886 = vmatpush3.bf16.msra.mxu1 %v7885_v30  ;;  %7856 = vmatprep.subr.bf16.mxu0 %v7855_v31  ;;  %v1100_v30 = vld [vmem:[%s13575_s1 + $0x1e88] sm:$0xff]  ;;  %v1131_v31 = vld [vmem:[%s13575_s1 + $0x1f80] sm:$0xff] }
 0x1d0   :  { %7888 = vmatprep.subr.bf16.mxu1 %v7887_v35  ;;  %v7907_v35 = vpack.c.bf16 %v1100_v30, %v1099_v29  ;;  %v1124_v29 = vld [vmem:[%s13575_s1 + $0x1f48] sm:$0xff]  ;;  %v1109_v30 = vld [vmem:[%s13575_s1 + $0x1ed0] sm:$0xff] }
 0x1d2   :  { %7858 = vmatpush3.bf16.msra.mxu0 %v7857_v42  ;;  %v1101_v42 = vld [vmem:[%s13575_s1 + $0x1e90] sm:$0xff] }
 0x1d3   :  { %7890 = vmatpush3.bf16.msra.mxu1 %v7889_v43  ;;  %7860 = vmatprep.subr.bf16.mxu0 %v7859_v44  ;;  %v1102_v43 = vld [vmem:[%s13575_s1 + $0x1e98] sm:$0xff]  ;;  %v1133_v44 = vld [vmem:[%s13575_s1 + $0x1f90] sm:$0xff] }
 0x1d4   :  { %7892 = vmatprep.subr.bf16.mxu1 %v7891_v48  ;;  %v85_v48 = vld [vmem:[%s13574_s0 + $0x1d0] sm:$0xff]  ;;  %v7911_v50 = vpack.c.bf16 %v1102_v43, %v1101_v42  ;;  %v1126_v42 = vld [vmem:[%s13575_s1 + $0x1f58] sm:$0xff]  ;;  %v1111_v43 = vld [vmem:[%s13575_s1 + $0x1ee0] sm:$0xff] }
 0x1d6   :  { %7862 = vmatpush3.bf16.msra.mxu0 %v7861_v54  ;;  %v7943_v54 = vpack.c.bf16 %v1134_v45, %v1133_v44  ;;  %v1112_v44 = vld [vmem:[%s13575_s1 + $0x1ee8] sm:$0xff]  ;;  %v1143_v45 = vld [vmem:[%s13575_s1 + $0x1fe0] sm:$0xff] }
 0x1d7   :  { %7894 = vmatpush3.bf16.msra.mxu1 %v7893_v55  ;;  %7864 = vmatprep.subr.bf16.mxu0 %v7863_v56  ;;  %v5745_v8 = vpop.f32.mrb[14].mxu0  ;;  %v1118_v55 = vld [vmem:[%s13575_s1 + $0x1f18] sm:$0xff]  ;;  %v1103_v56 = vld [vmem:[%s13575_s1 + $0x1ea0] sm:$0xff] }
 0x1d8   :  { %7896 = vmatprep.subr.bf16.mxu1 %v7895_v60  ;;  %v5746_v13 = vpop.f32.mrb[15].mxu0  ;;  %v88_v60 = vld [vmem:[%s13574_s0 + $0x1e8] sm:$0xff]  ;;  %v7945_v63 = vpack.c.bf16 %v1118_v55, %v1117_v53  ;;  %v7915_v0 = vpack.c.bf16 %v1104_v57, %v1103_v56  ;;  %v1113_v56 = vld [vmem:[%s13575_s1 + $0x1ef0] sm:$0xff]  ;;  %v1114_v57 = vld [vmem:[%s13575_s1 + $0x1ef8] sm:$0xff] }
 0x1d9   :  { %v5780_v14 = vpop.f32.mrb[14].mxu1  ;;  %v5747_v17 = vadd.f32 %v5746_v13, %v5745_v8  ;;  %v1137_v8 = vld [vmem:[%s13575_s1 + $0x1fb0] sm:$0xff]  ;;  %v1128_v55 = vld [vmem:[%s13575_s1 + $0x1f68] sm:$0xff] }
 0x1da   :  { %7866 = vmatpush3.bf16.msra.mxu0 %v7865_v2  ;;  %v5781_v18 = vpop.f32.mrb[15].mxu1  ;;  %v1088_v2 = vld [vmem:[%s13575_s1 + $0x1e28] sm:$0xff]  ;;  %v1089_v13 = vld [vmem:[%s13575_s1 + $0x1e30] sm:$0xff] }
 0x1db   :  { %v5782_v40 = vadd.f32 %v5781_v18, %v5780_v14  ;;  %7898 = vmatpush3.bf16.msra.mxu1 %v7897_v3  ;;  %7868 = vmatprep.subr.bf16.mxu0 %v7867_v4  ;;  %v2713_v46 = vadd.f32 %v5747_v17, %v11456_v52  ;;  %v1132_v52 = vld [vmem:[%s13575_s1 + $0x1f88] sm:$0xff]  ;;  %v1119_v3 = vld [vmem:[%s13575_s1 + $0x1f20] sm:$0xff]  ;;  %v7947_v4 = vpack.c.bf16 %v1136_v59, %v1135_v58  ;;  %v1090_v14 = vld [vmem:[%s13575_s1 + $0x1e38] sm:$0xff] }
 0x1dc   :  { %7900 = vmatprep.subr.bf16.mxu1 %v7899_v9  ;;  %v7939_v39 = vpack.c.bf16 %v1132_v52, %v1131_v31  ;;  %v1138_v9 = vld [vmem:[%s13575_s1 + $0x1fb8] sm:$0xff]  ;;  %v7917_v10 = vpack.c.bf16 %v1088_v2, %v1087_v20  ;;  %v7949_v11 = vpack.c.bf16 %v1120_v5, %v1119_v3  ;;  %v1107_v18 = vld [vmem:[%s13575_s1 + $0x1ec0] sm:$0xff]  ;;  %v1141_v52 = vld [vmem:[%s13575_s1 + $0x1fd0] sm:$0xff]  ;;  %v7965_v2 = vpack.c.bf16 %v1128_v55, %v1127_v7 }
 0x1dd   :  { %v11663_v32 = vadd.f32 %v5782_v40, %v2713_v46  ;;  %v7951_v16 = vpack.c.bf16 %v1138_v9, %v1137_v8  ;;  %v1122_v17 = vld [vmem:[%s13575_s1 + $0x1f38] sm:$0xff]  ;;  %v1139_v40 = vld [vmem:[%s13575_s1 + $0x1fc0] sm:$0xff]  ;;  %v1092_v46 = vld [vmem:[%s13575_s1 + $0x1e48] sm:$0xff]  ;;  %v7935_v3 = vpack.c.bf16 %v1114_v57, %v1113_v56 }
 0x1de   :  { %7870 = vmatpush3.bf16.msra.mxu0 %v7869_v19  ;;  %v1108_v19 = vld [vmem:[%s13575_s1 + $0x1ec8] sm:$0xff]  ;;  %v7953_v23 = vpack.c.bf16 %v1122_v17, %v1121_v15  ;;  %v1110_v31 = vld [vmem:[%s13575_s1 + $0x1ed8] sm:$0xff]  ;;  %v1147_v17 = vld [vmem:[%s13575_s1 + $0x2000] sm:$0xff] }
 0x1df   :  { %7902 = vmatpush3.bf16.msra.mxu1 %v7901_v21  ;;  %7872 = vmatprep.subr.bf16.mxu0 %v7871_v22  ;;  %v1140_v21 = vld [vmem:[%s13575_s1 + $0x1fc8] sm:$0xff]  ;;  %v7921_v22 = vpack.c.bf16 %v1090_v14, %v1089_v13  ;;  %v7923_v24 = vpack.c.bf16 %v1108_v19, %v1107_v18  ;;  %v7927_v36 = vpack.c.bf16 %v1110_v31, %v1109_v30  ;;  %v1098_v5 = vld [vmem:[%s13575_s1 + $0x1e78] sm:$0xff]  ;;  %v1179_v19 = vld [vmem:[%s13575_s1 + $0x2100] sm:$0xff] }
 0x1e0   :  { %7904 = vmatprep.subr.bf16.mxu1 %v7903_v27  ;;  %v1123_v27 = vld [vmem:[%s13575_s1 + $0x1f40] sm:$0xff]  ;;  %v7955_v28 = vpack.c.bf16 %v1140_v21, %v1139_v40  ;;  %v1130_v9 = vld [vmem:[%s13575_s1 + $0x1f78] sm:$0xff]  ;;  %v1148_v18 = vld [vmem:[%s13575_s1 + $0x2008] sm:$0xff] }
 0x1e1   :  { %v7969_v15 = vpack.c.bf16 %v1130_v9, %v1129_v6  ;;  %v1180_v21 = vld [vmem:[%s13575_s1 + $0x2108] sm:$0xff]  ;;  %v1149_v31 = vld [vmem:[%s13575_s1 + $0x2010] sm:$0xff]  ;;  %v1170_v7 = vld [vmem:[%s13575_s1 + $0x20b8] sm:$0xff] }
 0x1e2   :  { %7874 = vmatpush3.bf16.msra.mxu0 %v7873_v33  ;;  %v1142_v33 = vld [vmem:[%s13575_s1 + $0x1fd8] sm:$0xff]  ;;  %v1155_v6 = vld [vmem:[%s13575_s1 + $0x2040] sm:$0xff] }
 0x1e3   :  { %7906 = vmatpush3.bf16.msra.mxu1 %v7905_v34  ;;  %7908 = vmatprep.subr.bf16.mxu0 %v7907_v35  ;;  %v7925_v34 = vpack.c.bf16 %v1092_v46, %v1091_v25  ;;  %v7957_v35 = vpack.c.bf16 %v1124_v29, %v1123_v27  ;;  %v7959_v41 = vpack.c.bf16 %v1142_v33, %v1141_v52  ;;  %v1198_v25 = vld [vmem:[%s13575_s1 + $0x2198] sm:$0xff]  ;;  %v87_v46 = vld [vmem:[%s13574_s0 + $0x1e0] sm:$0xff]  ;;  %v1181_v33 = vld [vmem:[%s13575_s1 + $0x2110] sm:$0xff] }
 0x1e4   :  { %7940 = vmatprep.subr.bf16.mxu1 %v7939_v39  ;;  %v1125_v39 = vld [vmem:[%s13575_s1 + $0x1f50] sm:$0xff]  ;;  %v7973_v27 = vpack.c.bf16 %v1148_v18, %v1147_v17  ;;  %v8005_v29 = vpack.c.bf16 %v1180_v21, %v1179_v19  ;;  %v1150_v52 = vld [vmem:[%s13575_s1 + $0x2018] sm:$0xff] }
 0x1e5   :  { %3691 = vmatmul.mubr.f32.vlgmr.msra.gmra.mrb[28].mxu0 %v83_v1  ;;  %v1144_v1 = vld [vmem:[%s13575_s1 + $0x1fe8] sm:$0xff]  ;;  %v1157_v18 = vld [vmem:[%s13575_s1 + $0x2050] sm:$0xff]  ;;  %v1158_v19 = vld [vmem:[%s13575_s1 + $0x2058] sm:$0xff] }
 0x1e6   :  { %7910 = vmatpush3.bf16.msra.mxu0 %v7909_v47  ;;  %3761 = vmatmul.mubr.f32.vlgmr.msra.gmra.mrb[28].mxu1 %v85_v48  ;;  %v7929_v47 = vpack.c.bf16 %v1094_v38, %v1093_v37  ;;  %v7961_v48 = vpack.c.bf16 %v1126_v42, %v1125_v39  ;;  %v1168_v37 = vld [vmem:[%s13575_s1 + $0x20a8] sm:$0xff]  ;;  %v1199_v38 = vld [vmem:[%s13575_s1 + $0x21a0] sm:$0xff]  ;;  %v7977_v42 = vpack.c.bf16 %v1150_v52, %v1149_v31 }
 0x1e7   :  { %7942 = vmatpush3.bf16.msra.mxu1 %v7941_v49  ;;  %7912 = vmatprep.subr.bf16.mxu0 %v7911_v50  ;;  %v7931_v49 = vpack.c.bf16 %v1112_v44, %v1111_v43  ;;  %v1095_v50 = vld [vmem:[%s13575_s1 + $0x1e60] sm:$0xff]  ;;  %v1200_v39 = vld [vmem:[%s13575_s1 + $0x21a8] sm:$0xff]  ;;  %v94_v43 = vld [vmem:[%s13574_s0 + $0x218] sm:$0xff] }
 0x1e8   :  { %7944 = vmatprep.subr.bf16.mxu1 %v7943_v54  ;;  %3830 = vmatprep.mubr.f32.mxu0 %v88_v60  ;;  %v7963_v54 = vpack.c.bf16 %v1144_v1, %v1143_v45  ;;  %v1145_v60 = vld [vmem:[%s13575_s1 + $0x1ff0] sm:$0xff]  ;;  %v1151_v1 = vld [vmem:[%s13575_s1 + $0x2020] sm:$0xff]  ;;  %v1160_v31 = vld [vmem:[%s13575_s1 + $0x2068] sm:$0xff] }
 0x1e9   :  { %3900 = vmatprep.mubr.f32.mxu1 %v90_v62  ;;  %v1191_v52 = vld [vmem:[%s13575_s1 + $0x2160] sm:$0xff] }
 0x1ea   :  { %7914 = vmatpush3.bf16.msra.mxu0 %v7913_v61  ;;  %v1146_v61 = vld [vmem:[%s13575_s1 + $0x1ff8] sm:$0xff] }
 0x1eb   :  { %7946 = vmatpush3.bf16.msra.mxu1 %v7945_v63  ;;  %7916 = vmatprep.subr.bf16.mxu0 %v7915_v0  ;;  %v7933_v0 = vpack.c.bf16 %v1096_v51, %v1095_v50  ;;  %v7967_v8 = vpack.c.bf16 %v1146_v61, %v1145_v60  ;;  %v1184_v50 = vld [vmem:[%s13575_s1 + $0x2128] sm:$0xff]  ;;  %v1169_v51 = vld [vmem:[%s13575_s1 + $0x20b0] sm:$0xff] }
 0x1ec   :  { %7948 = vmatprep.subr.bf16.mxu1 %v7947_v4  ;;  %v1097_v4 = vld [vmem:[%s13575_s1 + $0x1e70] sm:$0xff]  ;;  %v7983_v57 = vpack.c.bf16 %v1170_v7, %v1169_v51 }
 0x1ed   :  { %v7937_v14 = vpack.c.bf16 %v1098_v5, %v1097_v4  ;;  %v1185_v60 = vld [vmem:[%s13575_s1 + $0x2130] sm:$0xff] }
 0x1ee   :  { %7918 = vmatpush3.bf16.msra.mxu0 %v7917_v10  ;;  %v1163_v10 = vld [vmem:[%s13575_s1 + $0x2080] sm:$0xff]  ;;  %v1193_v51 = vld [vmem:[%s13575_s1 + $0x2170] sm:$0xff] }
 0x1ef   :  { %7950 = vmatpush3.bf16.msra.mxu1 %v7949_v11  ;;  %7920 = vmatprep.subr.bf16.mxu0 %v7919_v12  ;;  %v1164_v11 = vld [vmem:[%s13575_s1 + $0x2088] sm:$0xff]  ;;  %v1195_v12 = vld [vmem:[%s13575_s1 + $0x2180] sm:$0xff] }
 0x1f0   :  { %7952 = vmatprep.subr.bf16.mxu1 %v7951_v16  ;;  %v7971_v16 = vpack.c.bf16 %v1164_v11, %v1163_v10  ;;  %v1188_v10 = vld [vmem:[%s13575_s1 + $0x2148] sm:$0xff]  ;;  %v1173_v11 = vld [vmem:[%s13575_s1 + $0x20d0] sm:$0xff] }
 0x1f2   :  { %7922 = vmatpush3.bf16.msra.mxu0 %v7921_v22  ;;  %v1165_v22 = vld [vmem:[%s13575_s1 + $0x2090] sm:$0xff] }
 0x1f3   :  { %7954 = vmatpush3.bf16.msra.mxu1 %v7953_v23  ;;  %7924 = vmatprep.subr.bf16.mxu0 %v7923_v24  ;;  %v1166_v23 = vld [vmem:[%s13575_s1 + $0x2098] sm:$0xff]  ;;  %v1197_v24 = vld [vmem:[%s13575_s1 + $0x2190] sm:$0xff] }
 0x1f4   :  { %7956 = vmatprep.subr.bf16.mxu1 %v7955_v28  ;;  %v89_v28 = vld [vmem:[%s13574_s0 + $0x1f0] sm:$0xff]  ;;  %v7975_v30 = vpack.c.bf16 %v1166_v23, %v1165_v22  ;;  %v1190_v22 = vld [vmem:[%s13575_s1 + $0x2158] sm:$0xff]  ;;  %v1175_v23 = vld [vmem:[%s13575_s1 + $0x20e0] sm:$0xff] }
 0x1f6   :  { %7926 = vmatpush3.bf16.msra.mxu0 %v7925_v34  ;;  %v8007_v34 = vpack.c.bf16 %v1198_v25, %v1197_v24  ;;  %v1176_v24 = vld [vmem:[%s13575_s1 + $0x20e8] sm:$0xff]  ;;  %v1207_v25 = vld [vmem:[%s13575_s1 + $0x21e0] sm:$0xff] }
 0x1f7   :  { %7958 = vmatpush3.bf16.msra.mxu1 %v7957_v35  ;;  %7928 = vmatprep.subr.bf16.mxu0 %v7927_v36  ;;  %v5815_v53 = vpop.f32.mrb[16].mxu0  ;;  %v1182_v35 = vld [vmem:[%s13575_s1 + $0x2118] sm:$0xff]  ;;  %v1167_v36 = vld [vmem:[%s13575_s1 + $0x20a0] sm:$0xff] }
 0x1f8   :  { %7960 = vmatprep.subr.bf16.mxu1 %v7959_v41  ;;  %v5816_v58 = vpop.f32.mrb[17].mxu0  ;;  %v92_v41 = vld [vmem:[%s13574_s0 + $0x208] sm:$0xff]  ;;  %v8009_v44 = vpack.c.bf16 %v1182_v35, %v1181_v33  ;;  %v7979_v45 = vpack.c.bf16 %v1168_v37, %v1167_v36  ;;  %v1177_v36 = vld [vmem:[%s13575_s1 + $0x20f0] sm:$0xff]  ;;  %v1178_v37 = vld [vmem:[%s13575_s1 + $0x20f8] sm:$0xff] }
 0x1f9   :  { %v5850_v59 = vpop.f32.mrb[16].mxu1  ;;  %v5817_v62 = vadd.f32 %v5816_v58, %v5815_v53  ;;  %v1201_v53 = vld [vmem:[%s13575_s1 + $0x21b0] sm:$0xff]  ;;  %v1192_v35 = vld [vmem:[%s13575_s1 + $0x2168] sm:$0xff] }
 0x1fa   :  { %7930 = vmatpush3.bf16.msra.mxu0 %v7929_v47  ;;  %v5851_v63 = vpop.f32.mrb[17].mxu1  ;;  %v1152_v47 = vld [vmem:[%s13575_s1 + $0x2028] sm:$0xff]  ;;  %v1153_v58 = vld [vmem:[%s13575_s1 + $0x2030] sm:$0xff] }
 0x1fb   :  { %v5852_v20 = vadd.f32 %v5851_v63, %v5850_v59  ;;  %7962 = vmatpush3.bf16.msra.mxu1 %v7961_v48  ;;  %7932 = vmatprep.subr.bf16.mxu0 %v7931_v49  ;;  %v2853_v26 = vadd.f32 %v5817_v62, %v11663_v32  ;;  %v1196_v32 = vld [vmem:[%s13575_s1 + $0x2188] sm:$0xff]  ;;  %v1183_v48 = vld [vmem:[%s13575_s1 + $0x2120] sm:$0xff]  ;;  %v8011_v49 = vpack.c.bf16 %v1200_v39, %v1199_v38  ;;  %v1154_v59 = vld [vmem:[%s13575_s1 + $0x2038] sm:$0xff] }
 0x1fc   :  { %7964 = vmatprep.subr.bf16.mxu1 %v7963_v54  ;;  %v8003_v40 = vpack.c.bf16 %v1196_v32, %v1195_v12  ;;  %v1202_v54 = vld [vmem:[%s13575_s1 + $0x21b8] sm:$0xff]  ;;  %v7981_v55 = vpack.c.bf16 %v1152_v47, %v1151_v1  ;;  %v8013_v56 = vpack.c.bf16 %v1184_v50, %v1183_v48  ;;  %v1171_v63 = vld [vmem:[%s13575_s1 + $0x20c0] sm:$0xff]  ;;  %v1205_v32 = vld [vmem:[%s13575_s1 + $0x21d0] sm:$0xff]  ;;  %v8029_v47 = vpack.c.bf16 %v1192_v35, %v1191_v52 }
 0x1fd   :  { %v11870_v13 = vadd.f32 %v5852_v20, %v2853_v26  ;;  %v8015_v61 = vpack.c.bf16 %v1202_v54, %v1201_v53  ;;  %v1186_v62 = vld [vmem:[%s13575_s1 + $0x2138] sm:$0xff]  ;;  %v1203_v20 = vld [vmem:[%s13575_s1 + $0x21c0] sm:$0xff]  ;;  %v1156_v26 = vld [vmem:[%s13575_s1 + $0x2048] sm:$0xff]  ;;  %v7999_v48 = vpack.c.bf16 %v1178_v37, %v1177_v36 }
 0x1fe   :  { %7934 = vmatpush3.bf16.msra.mxu0 %v7933_v0  ;;  %v1172_v0 = vld [vmem:[%s13575_s1 + $0x20c8] sm:$0xff]  ;;  %v8017_v4 = vpack.c.bf16 %v1186_v62, %v1185_v60  ;;  %v1174_v12 = vld [vmem:[%s13575_s1 + $0x20d8] sm:$0xff]  ;;  %v1211_v62 = vld [vmem:[%s13575_s1 + $0x2200] sm:$0xff] }
 0x1ff   :  { %7966 = vmatpush3.bf16.msra.mxu1 %v7965_v2  ;;  %7936 = vmatprep.subr.bf16.mxu0 %v7935_v3  ;;  %v1204_v2 = vld [vmem:[%s13575_s1 + $0x21c8] sm:$0xff]  ;;  %v7985_v3 = vpack.c.bf16 %v1154_v59, %v1153_v58  ;;  %v7987_v5 = vpack.c.bf16 %v1172_v0, %v1171_v63  ;;  %v7991_v17 = vpack.c.bf16 %v1174_v12, %v1173_v11  ;;  %v1162_v50 = vld [vmem:[%s13575_s1 + $0x2078] sm:$0xff]  ;;  %v1243_v0 = vld [vmem:[%s13575_s1 + $0x2300] sm:$0xff] }
 0x200   :  { %7968 = vmatprep.subr.bf16.mxu1 %v7967_v8  ;;  %v1187_v8 = vld [vmem:[%s13575_s1 + $0x2140] sm:$0xff]  ;;  %v8019_v9 = vpack.c.bf16 %v1204_v2, %v1203_v20  ;;  %v1194_v54 = vld [vmem:[%s13575_s1 + $0x2178] sm:$0xff]  ;;  %v1212_v63 = vld [vmem:[%s13575_s1 + $0x2208] sm:$0xff] }
 0x201   :  { %v8033_v60 = vpack.c.bf16 %v1194_v54, %v1193_v51  ;;  %v1244_v2 = vld [vmem:[%s13575_s1 + $0x2308] sm:$0xff]  ;;  %v1213_v12 = vld [vmem:[%s13575_s1 + $0x2210] sm:$0xff]  ;;  %v1234_v52 = vld [vmem:[%s13575_s1 + $0x22b8] sm:$0xff] }
 0x202   :  { %7938 = vmatpush3.bf16.msra.mxu0 %v7937_v14  ;;  %v1206_v14 = vld [vmem:[%s13575_s1 + $0x21d8] sm:$0xff]  ;;  %v1219_v51 = vld [vmem:[%s13575_s1 + $0x2240] sm:$0xff] }
 0x203   :  { %7970 = vmatpush3.bf16.msra.mxu1 %v7969_v15  ;;  %7972 = vmatprep.subr.bf16.mxu0 %v7971_v16  ;;  %v7989_v15 = vpack.c.bf16 %v1156_v26, %v1155_v6  ;;  %v8021_v16 = vpack.c.bf16 %v1188_v10, %v1187_v8  ;;  %v8023_v21 = vpack.c.bf16 %v1206_v14, %v1205_v32  ;;  %v1262_v6 = vld [vmem:[%s13575_s1 + $0x2398] sm:$0xff]  ;;  %v91_v26 = vld [vmem:[%s13574_s0 + $0x200] sm:$0xff]  ;;  %v1245_v14 = vld [vmem:[%s13575_s1 + $0x2310] sm:$0xff] }
 0x204   :  { %8004 = vmatprep.subr.bf16.mxu1 %v8003_v40  ;;  %v1189_v40 = vld [vmem:[%s13575_s1 + $0x2150] sm:$0xff]  ;;  %v8037_v8 = vpack.c.bf16 %v1212_v63, %v1211_v62  ;;  %v8069_v10 = vpack.c.bf16 %v1244_v2, %v1243_v0  ;;  %v1214_v32 = vld [vmem:[%s13575_s1 + $0x2218] sm:$0xff] }
 0x205   :  { %3831 = vmatmul.mubr.f32.vlgmr.msra.gmra.mrb[30].mxu0 %v87_v46  ;;  %v1208_v46 = vld [vmem:[%s13575_s1 + $0x21e8] sm:$0xff]  ;;  %v1221_v63 = vld [vmem:[%s13575_s1 + $0x2250] sm:$0xff]  ;;  %v1222_v0 = vld [vmem:[%s13575_s1 + $0x2258] sm:$0xff] }
 0x206   :  { %7974 = vmatpush3.bf16.msra.mxu0 %v7973_v27  ;;  %3901 = vmatmul.mubr.f32.vlgmr.msra.gmra.mrb[30].mxu1 %v89_v28  ;;  %v7993_v27 = vpack.c.bf16 %v1158_v19, %v1157_v18  ;;  %v8025_v28 = vpack.c.bf16 %v1190_v22, %v1189_v40  ;;  %v1232_v18 = vld [vmem:[%s13575_s1 + $0x22a8] sm:$0xff]  ;;  %v1263_v19 = vld [vmem:[%s13575_s1 + $0x23a0] sm:$0xff]  ;;  %v8041_v22 = vpack.c.bf16 %v1214_v32, %v1213_v12 }
 0x207   :  { %8006 = vmatpush3.bf16.msra.mxu1 %v8005_v29  ;;  %7976 = vmatprep.subr.bf16.mxu0 %v7975_v30  ;;  %v7995_v29 = vpack.c.bf16 %v1176_v24, %v1175_v23  ;;  %v1159_v30 = vld [vmem:[%s13575_s1 + $0x2060] sm:$0xff]  ;;  %v1264_v40 = vld [vmem:[%s13575_s1 + $0x23a8] sm:$0xff]  ;;  %v98_v23 = vld [vmem:[%s13574_s0 + $0x238] sm:$0xff] }
 0x208   :  { %8008 = vmatprep.subr.bf16.mxu1 %v8007_v34  ;;  %3970 = vmatprep.mubr.f32.mxu0 %v92_v41  ;;  %v8027_v34 = vpack.c.bf16 %v1208_v46, %v1207_v25  ;;  %v1209_v41 = vld [vmem:[%s13575_s1 + $0x21f0] sm:$0xff]  ;;  %v1215_v46 = vld [vmem:[%s13575_s1 + $0x2220] sm:$0xff]  ;;  %v1224_v12 = vld [vmem:[%s13575_s1 + $0x2268] sm:$0xff] }
 0x209   :  { %4040 = vmatprep.mubr.f32.mxu1 %v94_v43  ;;  %v1255_v32 = vld [vmem:[%s13575_s1 + $0x2360] sm:$0xff] }
 0x20a   :  { %7978 = vmatpush3.bf16.msra.mxu0 %v7977_v42  ;;  %v1210_v42 = vld [vmem:[%s13575_s1 + $0x21f8] sm:$0xff] }
 0x20b   :  { %8010 = vmatpush3.bf16.msra.mxu1 %v8009_v44  ;;  %7980 = vmatprep.subr.bf16.mxu0 %v7979_v45  ;;  %v7997_v45 = vpack.c.bf16 %v1160_v31, %v1159_v30  ;;  %v8031_v53 = vpack.c.bf16 %v1210_v42, %v1209_v41  ;;  %v1248_v30 = vld [vmem:[%s13575_s1 + $0x2328] sm:$0xff]  ;;  %v1233_v31 = vld [vmem:[%s13575_s1 + $0x22b0] sm:$0xff] }
 0x20c   :  { %8012 = vmatprep.subr.bf16.mxu1 %v8011_v49  ;;  %v1161_v49 = vld [vmem:[%s13575_s1 + $0x2070] sm:$0xff]  ;;  %v8047_v37 = vpack.c.bf16 %v1234_v52, %v1233_v31 }
 0x20d   :  { %v8001_v59 = vpack.c.bf16 %v1162_v50, %v1161_v49  ;;  %v1249_v41 = vld [vmem:[%s13575_s1 + $0x2330] sm:$0xff] }
 0x20e   :  { %7982 = vmatpush3.bf16.msra.mxu0 %v7981_v55  ;;  %v1227_v55 = vld [vmem:[%s13575_s1 + $0x2280] sm:$0xff]  ;;  %v1257_v31 = vld [vmem:[%s13575_s1 + $0x2370] sm:$0xff] }
 0x20f   :  { %8014 = vmatpush3.bf16.msra.mxu1 %v8013_v56  ;;  %7984 = vmatprep.subr.bf16.mxu0 %v7983_v57  ;;  %v1228_v56 = vld [vmem:[%s13575_s1 + $0x2288] sm:$0xff]  ;;  %v1259_v57 = vld [vmem:[%s13575_s1 + $0x2380] sm:$0xff] }
 0x210   :  { %8016 = vmatprep.subr.bf16.mxu1 %v8015_v61  ;;  %v8035_v61 = vpack.c.bf16 %v1228_v56, %v1227_v55  ;;  %v1252_v55 = vld [vmem:[%s13575_s1 + $0x2348] sm:$0xff]  ;;  %v1237_v56 = vld [vmem:[%s13575_s1 + $0x22d0] sm:$0xff] }
 0x212   :  { %7986 = vmatpush3.bf16.msra.mxu0 %v7985_v3  ;;  %v1229_v3 = vld [vmem:[%s13575_s1 + $0x2290] sm:$0xff] }
 0x213   :  { %8018 = vmatpush3.bf16.msra.mxu1 %v8017_v4  ;;  %7988 = vmatprep.subr.bf16.mxu0 %v7987_v5  ;;  %v1230_v4 = vld [vmem:[%s13575_s1 + $0x2298] sm:$0xff]  ;;  %v1261_v5 = vld [vmem:[%s13575_s1 + $0x2390] sm:$0xff] }
 0x214   :  { %8020 = vmatprep.subr.bf16.mxu1 %v8019_v9  ;;  %v93_v9 = vld [vmem:[%s13574_s0 + $0x210] sm:$0xff]  ;;  %v8039_v11 = vpack.c.bf16 %v1230_v4, %v1229_v3  ;;  %v1254_v3 = vld [vmem:[%s13575_s1 + $0x2358] sm:$0xff]  ;;  %v1239_v4 = vld [vmem:[%s13575_s1 + $0x22e0] sm:$0xff] }
 0x216   :  { %7990 = vmatpush3.bf16.msra.mxu0 %v7989_v15  ;;  %v8071_v15 = vpack.c.bf16 %v1262_v6, %v1261_v5  ;;  %v1240_v5 = vld [vmem:[%s13575_s1 + $0x22e8] sm:$0xff]  ;;  %v1271_v6 = vld [vmem:[%s13575_s1 + $0x23e0] sm:$0xff] }
 0x217   :  { %8022 = vmatpush3.bf16.msra.mxu1 %v8021_v16  ;;  %7992 = vmatprep.subr.bf16.mxu0 %v7991_v17  ;;  %v1246_v16 = vld [vmem:[%s13575_s1 + $0x2318] sm:$0xff]  ;;  %v1231_v17 = vld [vmem:[%s13575_s1 + $0x22a0] sm:$0xff] }
 0x218   :  { %v5885_v33 = vpop.f32.mrb[18].mxu0  ;;  %8024 = vmatprep.subr.bf16.mxu1 %v8023_v21  ;;  %v96_v21 = vld [vmem:[%s13574_s0 + $0x228] sm:$0xff]  ;;  %v8073_v24 = vpack.c.bf16 %v1246_v16, %v1245_v14  ;;  %v8043_v25 = vpack.c.bf16 %v1232_v18, %v1231_v17  ;;  %v1241_v17 = vld [vmem:[%s13575_s1 + $0x22f0] sm:$0xff]  ;;  %v1242_v18 = vld [vmem:[%s13575_s1 + $0x22f8] sm:$0xff] }
 0x219   :  { %v5886_v38 = vpop.f32.mrb[19].mxu0  ;;  %v5920_v39 = vpop.f32.mrb[18].mxu1  ;;  %v1256_v16 = vld [vmem:[%s13575_s1 + $0x2368] sm:$0xff] }
 0x21a   :  { %v5887_v43 = vadd.f32 %v5886_v38, %v5885_v33  ;;  %7994 = vmatpush3.bf16.msra.mxu0 %v7993_v27  ;;  %v5921_v44 = vpop.f32.mrb[19].mxu1  ;;  %v1216_v27 = vld [vmem:[%s13575_s1 + $0x2228] sm:$0xff]  ;;  %v1265_v33 = vld [vmem:[%s13575_s1 + $0x23b0] sm:$0xff] }
 0x21b   :  { %v5922_v1 = vadd.f32 %v5921_v44, %v5920_v39  ;;  %8026 = vmatpush3.bf16.msra.mxu1 %v8025_v28  ;;  %7996 = vmatprep.subr.bf16.mxu0 %v7995_v29  ;;  %v1247_v28 = vld [vmem:[%s13575_s1 + $0x2320] sm:$0xff]  ;;  %v8075_v29 = vpack.c.bf16 %v1264_v40, %v1263_v19  ;;  %v8045_v35 = vpack.c.bf16 %v1216_v27, %v1215_v46  ;;  %v1217_v38 = vld [vmem:[%s13575_s1 + $0x2230] sm:$0xff]  ;;  %v1218_v39 = vld [vmem:[%s13575_s1 + $0x2238] sm:$0xff] }
 0x21c   :  { %v2993_v7 = vadd.f32 %v5887_v43, %v11870_v13  ;;  %8028 = vmatprep.subr.bf16.mxu1 %v8027_v34  ;;  %v1260_v13 = vld [vmem:[%s13575_s1 + $0x2388] sm:$0xff]  ;;  %v1266_v34 = vld [vmem:[%s13575_s1 + $0x23b8] sm:$0xff]  ;;  %v8077_v36 = vpack.c.bf16 %v1248_v30, %v1247_v28  ;;  %v1235_v44 = vld [vmem:[%s13575_s1 + $0x22c0] sm:$0xff]  ;;  %v8093_v27 = vpack.c.bf16 %v1256_v16, %v1255_v32  ;;  %v8063_v28 = vpack.c.bf16 %v1242_v18, %v1241_v17 }
 0x21d   :  { %v8067_v20 = vpack.c.bf16 %v1260_v13, %v1259_v57  ;;  %v8079_v42 = vpack.c.bf16 %v1266_v34, %v1265_v33  ;;  %v1250_v43 = vld [vmem:[%s13575_s1 + $0x2338] sm:$0xff]  ;;  %v1269_v13 = vld [vmem:[%s13575_s1 + $0x23d0] sm:$0xff] }
 0x21e   :  { %v12077_v58 = vadd.f32 %v5922_v1, %v2993_v7  ;;  %7998 = vmatpush3.bf16.msra.mxu0 %v7997_v45  ;;  %v1236_v45 = vld [vmem:[%s13575_s1 + $0x22c8] sm:$0xff]  ;;  %v1267_v1 = vld [vmem:[%s13575_s1 + $0x23c0] sm:$0xff]  ;;  %v8081_v49 = vpack.c.bf16 %v1250_v43, %v1249_v41  ;;  %v1238_v57 = vld [vmem:[%s13575_s1 + $0x22d8] sm:$0xff] }
 0x21f   :  { %8030 = vmatpush3.bf16.msra.mxu1 %v8029_v47  ;;  %8000 = vmatprep.subr.bf16.mxu0 %v7999_v48  ;;  %v1268_v47 = vld [vmem:[%s13575_s1 + $0x23c8] sm:$0xff]  ;;  %v8049_v48 = vpack.c.bf16 %v1218_v39, %v1217_v38  ;;  %v8051_v50 = vpack.c.bf16 %v1236_v45, %v1235_v44  ;;  %v8055_v62 = vpack.c.bf16 %v1238_v57, %v1237_v56  ;;  %v1226_v30 = vld [vmem:[%s13575_s1 + $0x2278] sm:$0xff]  ;;  %v1275_v43 = vld [vmem:[%s13575_s1 + $0x2400] sm:$0xff] }
 0x220   :  { %8032 = vmatprep.subr.bf16.mxu1 %v8031_v53  ;;  %v1220_v7 = vld [vmem:[%s13575_s1 + $0x2248] sm:$0xff]  ;;  %v1251_v53 = vld [vmem:[%s13575_s1 + $0x2340] sm:$0xff]  ;;  %v8083_v54 = vpack.c.bf16 %v1268_v47, %v1267_v1  ;;  %v1258_v34 = vld [vmem:[%s13575_s1 + $0x2378] sm:$0xff] }
 0x221   :  { %v8097_v41 = vpack.c.bf16 %v1258_v34, %v1257_v31  ;;  %v1276_v44 = vld [vmem:[%s13575_s1 + $0x2408] sm:$0xff]  ;;  %v1307_v45 = vld [vmem:[%s13575_s1 + $0x2500] sm:$0xff]  ;;  %v1277_v57 = vld [vmem:[%s13575_s1 + $0x2410] sm:$0xff] }
 0x222   :  { %8002 = vmatpush3.bf16.msra.mxu0 %v8001_v59  ;;  %v1270_v59 = vld [vmem:[%s13575_s1 + $0x23d8] sm:$0xff]  ;;  %v1308_v47 = vld [vmem:[%s13575_s1 + $0x2508] sm:$0xff]  ;;  %v1283_v31 = vld [vmem:[%s13575_s1 + $0x2440] sm:$0xff] }
 0x223   :  { %8034 = vmatpush3.bf16.msra.mxu1 %v8033_v60  ;;  %8036 = vmatprep.subr.bf16.mxu0 %v8035_v61  ;;  %v8053_v60 = vpack.c.bf16 %v1220_v7, %v1219_v51  ;;  %v8085_v61 = vpack.c.bf16 %v1252_v55, %v1251_v53  ;;  %v8087_v2 = vpack.c.bf16 %v1270_v59, %v1269_v13  ;;  %v1326_v51 = vld [vmem:[%s13575_s1 + $0x2598] sm:$0xff]  ;;  %v95_v7 = vld [vmem:[%s13574_s0 + $0x220] sm:$0xff]  ;;  %v1309_v59 = vld [vmem:[%s13575_s1 + $0x2510] sm:$0xff] }
 0x224   :  { %8068 = vmatprep.subr.bf16.mxu1 %v8067_v20  ;;  %v1253_v20 = vld [vmem:[%s13575_s1 + $0x2350] sm:$0xff]  ;;  %v8101_v53 = vpack.c.bf16 %v1276_v44, %v1275_v43  ;;  %v8133_v55 = vpack.c.bf16 %v1308_v47, %v1307_v45  ;;  %v1278_v13 = vld [vmem:[%s13575_s1 + $0x2418] sm:$0xff] }
 0x225   :  { %3971 = vmatmul.mubr.f32.vlgmr.msra.gmra.mrb[32].mxu0 %v91_v26  ;;  %v1272_v26 = vld [vmem:[%s13575_s1 + $0x23e8] sm:$0xff]  ;;  %v1298_v32 = vld [vmem:[%s13575_s1 + $0x24b8] sm:$0xff]  ;;  %v1285_v44 = vld [vmem:[%s13575_s1 + $0x2450] sm:$0xff] }
 0x226   :  { %8038 = vmatpush3.bf16.msra.mxu0 %v8037_v8  ;;  %4041 = vmatmul.mubr.f32.vlgmr.msra.gmra.mrb[32].mxu1 %v93_v9  ;;  %v8057_v8 = vpack.c.bf16 %v1222_v0, %v1221_v63  ;;  %v8089_v9 = vpack.c.bf16 %v1254_v3, %v1253_v20  ;;  %v1296_v63 = vld [vmem:[%s13575_s1 + $0x24a8] sm:$0xff]  ;;  %v1327_v0 = vld [vmem:[%s13575_s1 + $0x25a0] sm:$0xff]  ;;  %v8105_v3 = vpack.c.bf16 %v1278_v13, %v1277_v57  ;;  %v1286_v45 = vld [vmem:[%s13575_s1 + $0x2458] sm:$0xff] }
 0x227   :  { %8070 = vmatpush3.bf16.msra.mxu1 %v8069_v10  ;;  %8040 = vmatprep.subr.bf16.mxu0 %v8039_v11  ;;  %v8059_v10 = vpack.c.bf16 %v1240_v5, %v1239_v4  ;;  %v1223_v11 = vld [vmem:[%s13575_s1 + $0x2260] sm:$0xff]  ;;  %v1328_v20 = vld [vmem:[%s13575_s1 + $0x25a8] sm:$0xff]  ;;  %v102_v4 = vld [vmem:[%s13574_s0 + $0x258] sm:$0xff] }
 0x228   :  { %8072 = vmatprep.subr.bf16.mxu1 %v8071_v15  ;;  %4110 = vmatprep.mubr.f32.mxu0 %v96_v21  ;;  %v8091_v15 = vpack.c.bf16 %v1272_v26, %v1271_v6  ;;  %v1273_v21 = vld [vmem:[%s13575_s1 + $0x23f0] sm:$0xff]  ;;  %v1279_v26 = vld [vmem:[%s13575_s1 + $0x2420] sm:$0xff]  ;;  %v1288_v57 = vld [vmem:[%s13575_s1 + $0x2468] sm:$0xff] }
 0x229   :  { %4180 = vmatprep.mubr.f32.mxu1 %v98_v23  ;;  %v1319_v13 = vld [vmem:[%s13575_s1 + $0x2560] sm:$0xff] }
 0x22a   :  { %8042 = vmatpush3.bf16.msra.mxu0 %v8041_v22  ;;  %v1274_v22 = vld [vmem:[%s13575_s1 + $0x23f8] sm:$0xff] }
 0x22b   :  { %8074 = vmatpush3.bf16.msra.mxu1 %v8073_v24  ;;  %8044 = vmatprep.subr.bf16.mxu0 %v8043_v25  ;;  %v8061_v25 = vpack.c.bf16 %v1224_v12, %v1223_v11  ;;  %v8095_v33 = vpack.c.bf16 %v1274_v22, %v1273_v21  ;;  %v1312_v11 = vld [vmem:[%s13575_s1 + $0x2528] sm:$0xff]  ;;  %v1297_v12 = vld [vmem:[%s13575_s1 + $0x24b0] sm:$0xff] }
 0x22c   :  { %8076 = vmatprep.subr.bf16.mxu1 %v8075_v29  ;;  %v1225_v29 = vld [vmem:[%s13575_s1 + $0x2270] sm:$0xff]  ;;  %v8111_v18 = vpack.c.bf16 %v1298_v32, %v1297_v12 }
 0x22d   :  { %v8065_v39 = vpack.c.bf16 %v1226_v30, %v1225_v29  ;;  %v1313_v21 = vld [vmem:[%s13575_s1 + $0x2530] sm:$0xff] }
 0x22e   :  { %8046 = vmatpush3.bf16.msra.mxu0 %v8045_v35  ;;  %v1291_v35 = vld [vmem:[%s13575_s1 + $0x2480] sm:$0xff]  ;;  %v1321_v12 = vld [vmem:[%s13575_s1 + $0x2570] sm:$0xff] }
 0x22f   :  { %8078 = vmatpush3.bf16.msra.mxu1 %v8077_v36  ;;  %8048 = vmatprep.subr.bf16.mxu0 %v8047_v37  ;;  %v1292_v36 = vld [vmem:[%s13575_s1 + $0x2488] sm:$0xff]  ;;  %v1323_v37 = vld [vmem:[%s13575_s1 + $0x2580] sm:$0xff] }
 0x230   :  { %8080 = vmatprep.subr.bf16.mxu1 %v8079_v42  ;;  %v8099_v42 = vpack.c.bf16 %v1292_v36, %v1291_v35  ;;  %v1316_v35 = vld [vmem:[%s13575_s1 + $0x2548] sm:$0xff]  ;;  %v1301_v36 = vld [vmem:[%s13575_s1 + $0x24d0] sm:$0xff] }
 0x232   :  { %8050 = vmatpush3.bf16.msra.mxu0 %v8049_v48  ;;  %v1293_v48 = vld [vmem:[%s13575_s1 + $0x2490] sm:$0xff] }
 0x233   :  { %8082 = vmatpush3.bf16.msra.mxu1 %v8081_v49  ;;  %8052 = vmatprep.subr.bf16.mxu0 %v8051_v50  ;;  %v1294_v49 = vld [vmem:[%s13575_s1 + $0x2498] sm:$0xff]  ;;  %v1325_v50 = vld [vmem:[%s13575_s1 + $0x2590] sm:$0xff] }
 0x234   :  { %8084 = vmatprep.subr.bf16.mxu1 %v8083_v54  ;;  %v97_v54 = vld [vmem:[%s13574_s0 + $0x230] sm:$0xff]  ;;  %v8103_v56 = vpack.c.bf16 %v1294_v49, %v1293_v48  ;;  %v1318_v48 = vld [vmem:[%s13575_s1 + $0x2558] sm:$0xff]  ;;  %v1303_v49 = vld [vmem:[%s13575_s1 + $0x24e0] sm:$0xff] }
 0x236   :  { %8054 = vmatpush3.bf16.msra.mxu0 %v8053_v60  ;;  %v8135_v60 = vpack.c.bf16 %v1326_v51, %v1325_v50  ;;  %v1304_v50 = vld [vmem:[%s13575_s1 + $0x24e8] sm:$0xff]  ;;  %v1335_v51 = vld [vmem:[%s13575_s1 + $0x25e0] sm:$0xff] }
 0x237   :  { %8086 = vmatpush3.bf16.msra.mxu1 %v8085_v61  ;;  %8056 = vmatprep.subr.bf16.mxu0 %v8055_v62  ;;  %v1310_v61 = vld [vmem:[%s13575_s1 + $0x2518] sm:$0xff]  ;;  %v1295_v62 = vld [vmem:[%s13575_s1 + $0x24a0] sm:$0xff] }
 0x238   :  { %v5955_v14 = vpop.f32.mrb[20].mxu0  ;;  %8088 = vmatprep.subr.bf16.mxu1 %v8087_v2  ;;  %v100_v2 = vld [vmem:[%s13574_s0 + $0x248] sm:$0xff]  ;;  %v8137_v5 = vpack.c.bf16 %v1310_v61, %v1309_v59  ;;  %v8107_v6 = vpack.c.bf16 %v1296_v63, %v1295_v62  ;;  %v1305_v62 = vld [vmem:[%s13575_s1 + $0x24f0] sm:$0xff]  ;;  %v1306_v63 = vld [vmem:[%s13575_s1 + $0x24f8] sm:$0xff] }
 0x239   :  { %v5956_v19 = vpop.f32.mrb[21].mxu0  ;;  %v5990_v40 = vpop.f32.mrb[20].mxu1  ;;  %v1320_v61 = vld [vmem:[%s13575_s1 + $0x2568] sm:$0xff] }
 0x23a   :  { %v5957_v23 = vadd.f32 %v5956_v19, %v5955_v14  ;;  %8058 = vmatpush3.bf16.msra.mxu0 %v8057_v8  ;;  %v5991_v24 = vpop.f32.mrb[21].mxu1  ;;  %v1280_v8 = vld [vmem:[%s13575_s1 + $0x2428] sm:$0xff]  ;;  %v1329_v14 = vld [vmem:[%s13575_s1 + $0x25b0] sm:$0xff] }
 0x23b   :  { %v5992_v46 = vadd.f32 %v5991_v24, %v5990_v40  ;;  %8090 = vmatpush3.bf16.msra.mxu1 %v8089_v9  ;;  %8060 = vmatprep.subr.bf16.mxu0 %v8059_v10  ;;  %v1311_v9 = vld [vmem:[%s13575_s1 + $0x2520] sm:$0xff]  ;;  %v8139_v10 = vpack.c.bf16 %v1328_v20, %v1327_v0  ;;  %v8109_v16 = vpack.c.bf16 %v1280_v8, %v1279_v26  ;;  %v1281_v19 = vld [vmem:[%s13575_s1 + $0x2430] sm:$0xff]  ;;  %v1282_v40 = vld [vmem:[%s13575_s1 + $0x2438] sm:$0xff] }
 0x23c   :  { %v3133_v52 = vadd.f32 %v5957_v23, %v12077_v58  ;;  %8092 = vmatprep.subr.bf16.mxu1 %v8091_v15  ;;  %v1324_v58 = vld [vmem:[%s13575_s1 + $0x2588] sm:$0xff]  ;;  %v1330_v15 = vld [vmem:[%s13575_s1 + $0x25b8] sm:$0xff]  ;;  %v8141_v17 = vpack.c.bf16 %v1312_v11, %v1311_v9  ;;  %v1299_v24 = vld [vmem:[%s13575_s1 + $0x24c0] sm:$0xff]  ;;  %v8157_v8 = vpack.c.bf16 %v1320_v61, %v1319_v13  ;;  %v8127_v9 = vpack.c.bf16 %v1306_v63, %v1305_v62 }
 0x23d   :  { %v8131_v1 = vpack.c.bf16 %v1324_v58, %v1323_v37  ;;  %v8143_v22 = vpack.c.bf16 %v1330_v15, %v1329_v14  ;;  %v1314_v23 = vld [vmem:[%s13575_s1 + $0x2538] sm:$0xff]  ;;  %v1333_v58 = vld [vmem:[%s13575_s1 + $0x25d0] sm:$0xff] }
 0x23e   :  { %v12284_v38 = vadd.f32 %v5992_v46, %v3133_v52  ;;  %8062 = vmatpush3.bf16.msra.mxu0 %v8061_v25  ;;  %v1300_v25 = vld [vmem:[%s13575_s1 + $0x24c8] sm:$0xff]  ;;  %v1331_v46 = vld [vmem:[%s13575_s1 + $0x25c0] sm:$0xff]  ;;  %v8145_v29 = vpack.c.bf16 %v1314_v23, %v1313_v21  ;;  %v1302_v37 = vld [vmem:[%s13575_s1 + $0x24d8] sm:$0xff] }
 0x23f   :  { %8094 = vmatpush3.bf16.msra.mxu1 %v8093_v27  ;;  %8064 = vmatprep.subr.bf16.mxu0 %v8063_v28  ;;  %v1332_v27 = vld [vmem:[%s13575_s1 + $0x25c8] sm:$0xff]  ;;  %v8113_v28 = vpack.c.bf16 %v1282_v40, %v1281_v19  ;;  %v8115_v30 = vpack.c.bf16 %v1300_v25, %v1299_v24  ;;  %v8119_v43 = vpack.c.bf16 %v1302_v37, %v1301_v36  ;;  %v1290_v11 = vld [vmem:[%s13575_s1 + $0x2478] sm:$0xff]  ;;  %v1339_v23 = vld [vmem:[%s13575_s1 + $0x2600] sm:$0xff] }
 0x240   :  { %8096 = vmatprep.subr.bf16.mxu1 %v8095_v33  ;;  %v1284_v52 = vld [vmem:[%s13575_s1 + $0x2448] sm:$0xff]  ;;  %v1315_v33 = vld [vmem:[%s13575_s1 + $0x2540] sm:$0xff]  ;;  %v8147_v34 = vpack.c.bf16 %v1332_v27, %v1331_v46  ;;  %v1322_v15 = vld [vmem:[%s13575_s1 + $0x2578] sm:$0xff] }
 0x241   :  { %v8161_v21 = vpack.c.bf16 %v1322_v15, %v1321_v12  ;;  %v1340_v24 = vld [vmem:[%s13575_s1 + $0x2608] sm:$0xff]  ;;  %v1371_v25 = vld [vmem:[%s13575_s1 + $0x2700] sm:$0xff]  ;;  %v1341_v37 = vld [vmem:[%s13575_s1 + $0x2610] sm:$0xff] }
 0x242   :  { %8066 = vmatpush3.bf16.msra.mxu0 %v8065_v39  ;;  %v1334_v39 = vld [vmem:[%s13575_s1 + $0x25d8] sm:$0xff]  ;;  %v1372_v27 = vld [vmem:[%s13575_s1 + $0x2708] sm:$0xff]  ;;  %v1347_v12 = vld [vmem:[%s13575_s1 + $0x2640] sm:$0xff] }
 0x243   :  { %8098 = vmatpush3.bf16.msra.mxu1 %v8097_v41  ;;  %8100 = vmatprep.subr.bf16.mxu0 %v8099_v42  ;;  %v8117_v41 = vpack.c.bf16 %v1284_v52, %v1283_v31  ;;  %v8149_v42 = vpack.c.bf16 %v1316_v35, %v1315_v33  ;;  %v8151_v47 = vpack.c.bf16 %v1334_v39, %v1333_v58  ;;  %v1390_v31 = vld [vmem:[%s13575_s1 + $0x2798] sm:$0xff]  ;;  %v99_v52 = vld [vmem:[%s13574_s0 + $0x240] sm:$0xff]  ;;  %v1373_v39 = vld [vmem:[%s13575_s1 + $0x2710] sm:$0xff] }
 0x244   :  { %8132 = vmatprep.subr.bf16.mxu1 %v8131_v1  ;;  %v1317_v1 = vld [vmem:[%s13575_s1 + $0x2550] sm:$0xff]  ;;  %v8165_v33 = vpack.c.bf16 %v1340_v24, %v1339_v23  ;;  %v8197_v35 = vpack.c.bf16 %v1372_v27, %v1371_v25  ;;  %v1342_v58 = vld [vmem:[%s13575_s1 + $0x2618] sm:$0xff] }
 0x245   :  { %4111 = vmatmul.mubr.f32.vlgmr.msra.gmra.mrb[34].mxu0 %v95_v7  ;;  %v1336_v7 = vld [vmem:[%s13575_s1 + $0x25e8] sm:$0xff]  ;;  %v1362_v13 = vld [vmem:[%s13575_s1 + $0x26b8] sm:$0xff]  ;;  %v1349_v24 = vld [vmem:[%s13575_s1 + $0x2650] sm:$0xff] }
 0x246   :  { %8102 = vmatpush3.bf16.msra.mxu0 %v8101_v53  ;;  %4181 = vmatmul.mubr.f32.vlgmr.msra.gmra.mrb[34].mxu1 %v97_v54  ;;  %v8121_v53 = vpack.c.bf16 %v1286_v45, %v1285_v44  ;;  %v8153_v54 = vpack.c.bf16 %v1318_v48, %v1317_v1  ;;  %v1360_v44 = vld [vmem:[%s13575_s1 + $0x26a8] sm:$0xff]  ;;  %v1391_v45 = vld [vmem:[%s13575_s1 + $0x27a0] sm:$0xff]  ;;  %v8169_v48 = vpack.c.bf16 %v1342_v58, %v1341_v37  ;;  %v1350_v25 = vld [vmem:[%s13575_s1 + $0x2658] sm:$0xff] }
 0x247   :  { %8134 = vmatpush3.bf16.msra.mxu1 %v8133_v55  ;;  %8104 = vmatprep.subr.bf16.mxu0 %v8103_v56  ;;  %v8123_v55 = vpack.c.bf16 %v1304_v50, %v1303_v49  ;;  %v1287_v56 = vld [vmem:[%s13575_s1 + $0x2460] sm:$0xff]  ;;  %v1392_v1 = vld [vmem:[%s13575_s1 + $0x27a8] sm:$0xff]  ;;  %v106_v49 = vld [vmem:[%s13574_s0 + $0x278] sm:$0xff] }
 0x248   :  { %8136 = vmatprep.subr.bf16.mxu1 %v8135_v60  ;;  %4250 = vmatprep.mubr.f32.mxu0 %v100_v2  ;;  %v8155_v60 = vpack.c.bf16 %v1336_v7, %v1335_v51  ;;  %v1337_v2 = vld [vmem:[%s13575_s1 + $0x25f0] sm:$0xff]  ;;  %v1343_v7 = vld [vmem:[%s13575_s1 + $0x2620] sm:$0xff]  ;;  %v1352_v37 = vld [vmem:[%s13575_s1 + $0x2668] sm:$0xff] }
 0x249   :  { %4320 = vmatprep.mubr.f32.mxu1 %v102_v4  ;;  %v1383_v58 = vld [vmem:[%s13575_s1 + $0x2760] sm:$0xff] }
 0x24a   :  { %8106 = vmatpush3.bf16.msra.mxu0 %v8105_v3  ;;  %v1338_v3 = vld [vmem:[%s13575_s1 + $0x25f8] sm:$0xff] }
 0x24b   :  { %8138 = vmatpush3.bf16.msra.mxu1 %v8137_v5  ;;  %8108 = vmatprep.subr.bf16.mxu0 %v8107_v6  ;;  %v8125_v6 = vpack.c.bf16 %v1288_v57, %v1287_v56  ;;  %v8159_v14 = vpack.c.bf16 %v1338_v3, %v1337_v2  ;;  %v1376_v56 = vld [vmem:[%s13575_s1 + $0x2728] sm:$0xff]  ;;  %v1361_v57 = vld [vmem:[%s13575_s1 + $0x26b0] sm:$0xff] }
 0x24c   :  { %8140 = vmatprep.subr.bf16.mxu1 %v8139_v10  ;;  %v1289_v10 = vld [vmem:[%s13575_s1 + $0x2470] sm:$0xff]  ;;  %v8175_v63 = vpack.c.bf16 %v1362_v13, %v1361_v57 }
 0x24d   :  { %v8129_v40 = vpack.c.bf16 %v1290_v11, %v1289_v10  ;;  %v1377_v2 = vld [vmem:[%s13575_s1 + $0x2730] sm:$0xff] }
 0x24e   :  { %8110 = vmatpush3.bf16.msra.mxu0 %v8109_v16  ;;  %v1355_v16 = vld [vmem:[%s13575_s1 + $0x2680] sm:$0xff]  ;;  %v1385_v57 = vld [vmem:[%s13575_s1 + $0x2770] sm:$0xff] }
 0x24f   :  { %8142 = vmatpush3.bf16.msra.mxu1 %v8141_v17  ;;  %8112 = vmatprep.subr.bf16.mxu0 %v8111_v18  ;;  %v1356_v17 = vld [vmem:[%s13575_s1 + $0x2688] sm:$0xff]  ;;  %v1387_v18 = vld [vmem:[%s13575_s1 + $0x2780] sm:$0xff] }
 0x250   :  { %8144 = vmatprep.subr.bf16.mxu1 %v8143_v22  ;;  %v8163_v22 = vpack.c.bf16 %v1356_v17, %v1355_v16  ;;  %v1380_v16 = vld [vmem:[%s13575_s1 + $0x2748] sm:$0xff]  ;;  %v1365_v17 = vld [vmem:[%s13575_s1 + $0x26d0] sm:$0xff] }
 0x252   :  { %8114 = vmatpush3.bf16.msra.mxu0 %v8113_v28  ;;  %v1357_v28 = vld [vmem:[%s13575_s1 + $0x2690] sm:$0xff] }
 0x253   :  { %8146 = vmatpush3.bf16.msra.mxu1 %v8145_v29  ;;  %8116 = vmatprep.subr.bf16.mxu0 %v8115_v30  ;;  %v1358_v29 = vld [vmem:[%s13575_s1 + $0x2698] sm:$0xff]  ;;  %v1389_v30 = vld [vmem:[%s13575_s1 + $0x2790] sm:$0xff] }
 0x254   :  { %8148 = vmatprep.subr.bf16.mxu1 %v8147_v34  ;;  %v101_v34 = vld [vmem:[%s13574_s0 + $0x250] sm:$0xff]  ;;  %v8167_v36 = vpack.c.bf16 %v1358_v29, %v1357_v28  ;;  %v1382_v28 = vld [vmem:[%s13575_s1 + $0x2758] sm:$0xff]  ;;  %v1367_v29 = vld [vmem:[%s13575_s1 + $0x26e0] sm:$0xff] }
 0x256   :  { %8118 = vmatpush3.bf16.msra.mxu0 %v8117_v41  ;;  %v8199_v41 = vpack.c.bf16 %v1390_v31, %v1389_v30  ;;  %v1368_v30 = vld [vmem:[%s13575_s1 + $0x26e8] sm:$0xff]  ;;  %v1399_v31 = vld [vmem:[%s13575_s1 + $0x27e0] sm:$0xff] }
 0x257   :  { %8150 = vmatpush3.bf16.msra.mxu1 %v8149_v42  ;;  %8120 = vmatprep.subr.bf16.mxu0 %v8119_v43  ;;  %v1374_v42 = vld [vmem:[%s13575_s1 + $0x2718] sm:$0xff]  ;;  %v1359_v43 = vld [vmem:[%s13575_s1 + $0x26a0] sm:$0xff] }
 0x258   :  { %v6025_v59 = vpop.f32.mrb[22].mxu0  ;;  %8152 = vmatprep.subr.bf16.mxu1 %v8151_v47  ;;  %v104_v47 = vld [vmem:[%s13574_s0 + $0x268] sm:$0xff]  ;;  %v8201_v50 = vpack.c.bf16 %v1374_v42, %v1373_v39  ;;  %v8171_v51 = vpack.c.bf16 %v1360_v44, %v1359_v43  ;;  %v1369_v43 = vld [vmem:[%s13575_s1 + $0x26f0] sm:$0xff]  ;;  %v1370_v44 = vld [vmem:[%s13575_s1 + $0x26f8] sm:$0xff] }
 0x259   :  { %v6026_v0 = vpop.f32.mrb[23].mxu0  ;;  %v6060_v20 = vpop.f32.mrb[22].mxu1  ;;  %v1384_v42 = vld [vmem:[%s13575_s1 + $0x2768] sm:$0xff] }
 0x25a   :  { %v6027_v4 = vadd.f32 %v6026_v0, %v6025_v59  ;;  %8122 = vmatpush3.bf16.msra.mxu0 %v8121_v53  ;;  %v6061_v5 = vpop.f32.mrb[23].mxu1  ;;  %v1344_v53 = vld [vmem:[%s13575_s1 + $0x2628] sm:$0xff]  ;;  %v1393_v59 = vld [vmem:[%s13575_s1 + $0x27b0] sm:$0xff] }
 0x25b   :  { %v6062_v26 = vadd.f32 %v6061_v5, %v6060_v20  ;;  %8154 = vmatpush3.bf16.msra.mxu1 %v8153_v54  ;;  %8124 = vmatprep.subr.bf16.mxu0 %v8123_v55  ;;  %v1375_v54 = vld [vmem:[%s13575_s1 + $0x2720] sm:$0xff]  ;;  %v8203_v55 = vpack.c.bf16 %v1392_v1, %v1391_v45  ;;  %v8173_v61 = vpack.c.bf16 %v1344_v53, %v1343_v7  ;;  %v1345_v0 = vld [vmem:[%s13575_s1 + $0x2630] sm:$0xff]  ;;  %v1346_v20 = vld [vmem:[%s13575_s1 + $0x2638] sm:$0xff] }
 0x25c   :  { %v3273_v32 = vadd.f32 %v6027_v4, %v12284_v38  ;;  %8156 = vmatprep.subr.bf16.mxu1 %v8155_v60  ;;  %v1388_v38 = vld [vmem:[%s13575_s1 + $0x2788] sm:$0xff]  ;;  %v1394_v60 = vld [vmem:[%s13575_s1 + $0x27b8] sm:$0xff]  ;;  %v8205_v62 = vpack.c.bf16 %v1376_v56, %v1375_v54  ;;  %v1363_v5 = vld [vmem:[%s13575_s1 + $0x26c0] sm:$0xff]  ;;  %v8221_v53 = vpack.c.bf16 %v1384_v42, %v1383_v58  ;;  %v8191_v54 = vpack.c.bf16 %v1370_v44, %v1369_v43 }
 0x25d   :  { %v8195_v46 = vpack.c.bf16 %v1388_v38, %v1387_v18  ;;  %v8207_v3 = vpack.c.bf16 %v1394_v60, %v1393_v59  ;;  %v1378_v4 = vld [vmem:[%s13575_s1 + $0x2738] sm:$0xff]  ;;  %v1397_v38 = vld [vmem:[%s13575_s1 + $0x27d0] sm:$0xff] }
 0x25e   :  { %v12491_v19 = vadd.f32 %v6062_v26, %v3273_v32  ;;  %8126 = vmatpush3.bf16.msra.mxu0 %v8125_v6  ;;  %v1364_v6 = vld [vmem:[%s13575_s1 + $0x26c8] sm:$0xff]  ;;  %v1395_v26 = vld [vmem:[%s13575_s1 + $0x27c0] sm:$0xff]  ;;  %v8209_v10 = vpack.c.bf16 %v1378_v4, %v1377_v2  ;;  %v1366_v18 = vld [vmem:[%s13575_s1 + $0x26d8] sm:$0xff] }
 0x25f   :  { %8158 = vmatpush3.bf16.msra.mxu1 %v8157_v8  ;;  %8128 = vmatprep.subr.bf16.mxu0 %v8127_v9  ;;  %v1396_v8 = vld [vmem:[%s13575_s1 + $0x27c8] sm:$0xff]  ;;  %v8177_v9 = vpack.c.bf16 %v1346_v20, %v1345_v0  ;;  %v8179_v11 = vpack.c.bf16 %v1364_v6, %v1363_v5  ;;  %v8183_v23 = vpack.c.bf16 %v1366_v18, %v1365_v17  ;;  %v1354_v56 = vld [vmem:[%s13575_s1 + $0x2678] sm:$0xff]  ;;  %v1403_v4 = vld [vmem:[%s13575_s1 + $0x2800] sm:$0xff] }
 0x260   :  { %8160 = vmatprep.subr.bf16.mxu1 %v8159_v14  ;;  %v1348_v32 = vld [vmem:[%s13575_s1 + $0x2648] sm:$0xff]  ;;  %v1379_v14 = vld [vmem:[%s13575_s1 + $0x2740] sm:$0xff]  ;;  %v8211_v15 = vpack.c.bf16 %v1396_v8, %v1395_v26  ;;  %v1386_v60 = vld [vmem:[%s13575_s1 + $0x2778] sm:$0xff] }
 0x261   :  { %v8225_v2 = vpack.c.bf16 %v1386_v60, %v1385_v57  ;;  %v1404_v5 = vld [vmem:[%s13575_s1 + $0x2808] sm:$0xff]  ;;  %v1435_v6 = vld [vmem:[%s13575_s1 + $0x2900] sm:$0xff]  ;;  %v1405_v18 = vld [vmem:[%s13575_s1 + $0x2810] sm:$0xff] }
 0x262   :  { %8130 = vmatpush3.bf16.msra.mxu0 %v8129_v40  ;;  %v1398_v40 = vld [vmem:[%s13575_s1 + $0x27d8] sm:$0xff]  ;;  %v1436_v8 = vld [vmem:[%s13575_s1 + $0x2908] sm:$0xff]  ;;  %v1411_v57 = vld [vmem:[%s13575_s1 + $0x2840] sm:$0xff] }
 0x263   :  { %8162 = vmatpush3.bf16.msra.mxu1 %v8161_v21  ;;  %8164 = vmatprep.subr.bf16.mxu0 %v8163_v22  ;;  %v8181_v21 = vpack.c.bf16 %v1348_v32, %v1347_v12  ;;  %v8213_v22 = vpack.c.bf16 %v1380_v16, %v1379_v14  ;;  %v8215_v27 = vpack.c.bf16 %v1398_v40, %v1397_v38  ;;  %v1454_v12 = vld [vmem:[%s13575_s1 + $0x2998] sm:$0xff]  ;;  %v103_v32 = vld [vmem:[%s13574_s0 + $0x260] sm:$0xff]  ;;  %v1437_v40 = vld [vmem:[%s13575_s1 + $0x2910] sm:$0xff] }
 0x264   :  { %8196 = vmatprep.subr.bf16.mxu1 %v8195_v46  ;;  %v1381_v46 = vld [vmem:[%s13575_s1 + $0x2750] sm:$0xff]  ;;  %v8229_v14 = vpack.c.bf16 %v1404_v5, %v1403_v4  ;;  %v8261_v16 = vpack.c.bf16 %v1436_v8, %v1435_v6  ;;  %v1406_v38 = vld [vmem:[%s13575_s1 + $0x2818] sm:$0xff] }
 0x265   :  { %4251 = vmatmul.mubr.f32.vlgmr.msra.gmra.mrb[36].mxu0 %v99_v52  ;;  %v1400_v52 = vld [vmem:[%s13575_s1 + $0x27e8] sm:$0xff]  ;;  %v1426_v58 = vld [vmem:[%s13575_s1 + $0x28b8] sm:$0xff]  ;;  %v1413_v5 = vld [vmem:[%s13575_s1 + $0x2850] sm:$0xff] }
 0x266   :  { %8166 = vmatpush3.bf16.msra.mxu0 %v8165_v33  ;;  %4321 = vmatmul.mubr.f32.vlgmr.msra.gmra.mrb[36].mxu1 %v101_v34  ;;  %v8185_v33 = vpack.c.bf16 %v1350_v25, %v1349_v24  ;;  %v8217_v34 = vpack.c.bf16 %v1382_v28, %v1381_v46  ;;  %v1424_v24 = vld [vmem:[%s13575_s1 + $0x28a8] sm:$0xff]  ;;  %v1455_v25 = vld [vmem:[%s13575_s1 + $0x29a0] sm:$0xff]  ;;  %v8233_v28 = vpack.c.bf16 %v1406_v38, %v1405_v18  ;;  %v1414_v6 = vld [vmem:[%s13575_s1 + $0x2858] sm:$0xff] }
 0x267   :  { %8198 = vmatpush3.bf16.msra.mxu1 %v8197_v35  ;;  %8168 = vmatprep.subr.bf16.mxu0 %v8167_v36  ;;  %v8187_v35 = vpack.c.bf16 %v1368_v30, %v1367_v29  ;;  %v1351_v36 = vld [vmem:[%s13575_s1 + $0x2660] sm:$0xff]  ;;  %v1456_v46 = vld [vmem:[%s13575_s1 + $0x29a8] sm:$0xff]  ;;  %v110_v29 = vld [vmem:[%s13574_s0 + $0x298] sm:$0xff] }
 0x268   :  { %8200 = vmatprep.subr.bf16.mxu1 %v8199_v41  ;;  %4390 = vmatprep.mubr.f32.mxu0 %v104_v47  ;;  %v8219_v41 = vpack.c.bf16 %v1400_v52, %v1399_v31  ;;  %v1401_v47 = vld [vmem:[%s13575_s1 + $0x27f0] sm:$0xff]  ;;  %v1407_v52 = vld [vmem:[%s13575_s1 + $0x2820] sm:$0xff]  ;;  %v1416_v18 = vld [vmem:[%s13575_s1 + $0x2868] sm:$0xff] }
 0x269   :  { %4460 = vmatprep.mubr.f32.mxu1 %v106_v49  ;;  %v1447_v38 = vld [vmem:[%s13575_s1 + $0x2960] sm:$0xff] }
 0x26a   :  { %8170 = vmatpush3.bf16.msra.mxu0 %v8169_v48  ;;  %v1402_v48 = vld [vmem:[%s13575_s1 + $0x27f8] sm:$0xff] }
 0x26b   :  { %8202 = vmatpush3.bf16.msra.mxu1 %v8201_v50  ;;  %8172 = vmatprep.subr.bf16.mxu0 %v8171_v51  ;;  %v8189_v51 = vpack.c.bf16 %v1352_v37, %v1351_v36  ;;  %v8223_v59 = vpack.c.bf16 %v1402_v48, %v1401_v47  ;;  %v1440_v36 = vld [vmem:[%s13575_s1 + $0x2928] sm:$0xff]  ;;  %v1425_v37 = vld [vmem:[%s13575_s1 + $0x28b0] sm:$0xff] }
 0x26c   :  { %8204 = vmatprep.subr.bf16.mxu1 %v8203_v55  ;;  %v1353_v55 = vld [vmem:[%s13575_s1 + $0x2670] sm:$0xff]  ;;  %v8239_v44 = vpack.c.bf16 %v1426_v58, %v1425_v37 }
 0x26d   :  { %v8193_v20 = vpack.c.bf16 %v1354_v56, %v1353_v55  ;;  %v1441_v47 = vld [vmem:[%s13575_s1 + $0x2930] sm:$0xff] }
 0x26e   :  { %8174 = vmatpush3.bf16.msra.mxu0 %v8173_v61  ;;  %v1419_v61 = vld [vmem:[%s13575_s1 + $0x2880] sm:$0xff]  ;;  %v1449_v37 = vld [vmem:[%s13575_s1 + $0x2970] sm:$0xff] }
 0x26f   :  { %8206 = vmatpush3.bf16.msra.mxu1 %v8205_v62  ;;  %8176 = vmatprep.subr.bf16.mxu0 %v8175_v63  ;;  %v1420_v62 = vld [vmem:[%s13575_s1 + $0x2888] sm:$0xff]  ;;  %v1451_v63 = vld [vmem:[%s13575_s1 + $0x2980] sm:$0xff] }
 0x270   :  { %8208 = vmatprep.subr.bf16.mxu1 %v8207_v3  ;;  %v8227_v3 = vpack.c.bf16 %v1420_v62, %v1419_v61  ;;  %v1444_v61 = vld [vmem:[%s13575_s1 + $0x2948] sm:$0xff]  ;;  %v1429_v62 = vld [vmem:[%s13575_s1 + $0x28d0] sm:$0xff] }
 0x272   :  { %8178 = vmatpush3.bf16.msra.mxu0 %v8177_v9  ;;  %v1421_v9 = vld [vmem:[%s13575_s1 + $0x2890] sm:$0xff] }
 0x273   :  { %8210 = vmatpush3.bf16.msra.mxu1 %v8209_v10  ;;  %8180 = vmatprep.subr.bf16.mxu0 %v8179_v11  ;;  %v1422_v10 = vld [vmem:[%s13575_s1 + $0x2898] sm:$0xff]  ;;  %v1453_v11 = vld [vmem:[%s13575_s1 + $0x2990] sm:$0xff] }
 0x274   :  { %8212 = vmatprep.subr.bf16.mxu1 %v8211_v15  ;;  %v105_v15 = vld [vmem:[%s13574_s0 + $0x270] sm:$0xff]  ;;  %v8231_v17 = vpack.c.bf16 %v1422_v10, %v1421_v9  ;;  %v1446_v9 = vld [vmem:[%s13575_s1 + $0x2958] sm:$0xff]  ;;  %v1431_v10 = vld [vmem:[%s13575_s1 + $0x28e0] sm:$0xff] }
 0x276   :  { %8182 = vmatpush3.bf16.msra.mxu0 %v8181_v21  ;;  %v8263_v21 = vpack.c.bf16 %v1454_v12, %v1453_v11  ;;  %v1432_v11 = vld [vmem:[%s13575_s1 + $0x28e8] sm:$0xff]  ;;  %v1463_v12 = vld [vmem:[%s13575_s1 + $0x29e0] sm:$0xff] }
 0x277   :  { %8214 = vmatpush3.bf16.msra.mxu1 %v8213_v22  ;;  %8184 = vmatprep.subr.bf16.mxu0 %v8183_v23  ;;  %v1438_v22 = vld [vmem:[%s13575_s1 + $0x2918] sm:$0xff]  ;;  %v1423_v23 = vld [vmem:[%s13575_s1 + $0x28a0] sm:$0xff] }
 0x278   :  { %v6095_v39 = vpop.f32.mrb[24].mxu0  ;;  %8216 = vmatprep.subr.bf16.mxu1 %v8215_v27  ;;  %v108_v27 = vld [vmem:[%s13574_s0 + $0x288] sm:$0xff]  ;;  %v8265_v30 = vpack.c.bf16 %v1438_v22, %v1437_v40  ;;  %v8235_v31 = vpack.c.bf16 %v1424_v24, %v1423_v23  ;;  %v1433_v23 = vld [vmem:[%s13575_s1 + $0x28f0] sm:$0xff]  ;;  %v1434_v24 = vld [vmem:[%s13575_s1 + $0x28f8] sm:$0xff] }
 0x279   :  { %v6096_v45 = vpop.f32.mrb[25].mxu0  ;;  %v6130_v1 = vpop.f32.mrb[24].mxu1  ;;  %v1448_v22 = vld [vmem:[%s13575_s1 + $0x2968] sm:$0xff] }
 0x27a   :  { %v6097_v49 = vadd.f32 %v6096_v45, %v6095_v39  ;;  %8186 = vmatpush3.bf16.msra.mxu0 %v8185_v33  ;;  %v6131_v50 = vpop.f32.mrb[25].mxu1  ;;  %v1408_v33 = vld [vmem:[%s13575_s1 + $0x2828] sm:$0xff]  ;;  %v1457_v39 = vld [vmem:[%s13575_s1 + $0x29b0] sm:$0xff] }
 0x27b   :  { %v6132_v7 = vadd.f32 %v6131_v50, %v6130_v1  ;;  %8218 = vmatpush3.bf16.msra.mxu1 %v8217_v34  ;;  %8188 = vmatprep.subr.bf16.mxu0 %v8187_v35  ;;  %v1439_v34 = vld [vmem:[%s13575_s1 + $0x2920] sm:$0xff]  ;;  %v8267_v35 = vpack.c.bf16 %v1456_v46, %v1455_v25  ;;  %v8237_v42 = vpack.c.bf16 %v1408_v33, %v1407_v52  ;;  %v1409_v45 = vld [vmem:[%s13575_s1 + $0x2830] sm:$0xff]  ;;  %v1410_v1 = vld [vmem:[%s13575_s1 + $0x2838] sm:$0xff] }
 0x27c   :  { %v3413_v13 = vadd.f32 %v6097_v49, %v12491_v19  ;;  %8220 = vmatprep.subr.bf16.mxu1 %v8219_v41  ;;  %v1452_v19 = vld [vmem:[%s13575_s1 + $0x2988] sm:$0xff]  ;;  %v1458_v41 = vld [vmem:[%s13575_s1 + $0x29b8] sm:$0xff]  ;;  %v8269_v43 = vpack.c.bf16 %v1440_v36, %v1439_v34  ;;  %v1427_v50 = vld [vmem:[%s13575_s1 + $0x28c0] sm:$0xff]  ;;  %v8285_v33 = vpack.c.bf16 %v1448_v22, %v1447_v38  ;;  %v8255_v34 = vpack.c.bf16 %v1434_v24, %v1433_v23 }
 0x27d   :  { %v8259_v26 = vpack.c.bf16 %v1452_v19, %v1451_v63  ;;  %v8271_v48 = vpack.c.bf16 %v1458_v41, %v1457_v39  ;;  %v1442_v49 = vld [vmem:[%s13575_s1 + $0x2938] sm:$0xff]  ;;  %v1461_v19 = vld [vmem:[%s13575_s1 + $0x29d0] sm:$0xff] }
 0x27e   :  { %v12698_v0 = vadd.f32 %v6132_v7, %v3413_v13  ;;  %8190 = vmatpush3.bf16.msra.mxu0 %v8189_v51  ;;  %v1428_v51 = vld [vmem:[%s13575_s1 + $0x28c8] sm:$0xff]  ;;  %v1459_v7 = vld [vmem:[%s13575_s1 + $0x29c0] sm:$0xff]  ;;  %v8273_v55 = vpack.c.bf16 %v1442_v49, %v1441_v47  ;;  %v1430_v63 = vld [vmem:[%s13575_s1 + $0x28d8] sm:$0xff] }
 0x27f   :  { %8222 = vmatpush3.bf16.msra.mxu1 %v8221_v53  ;;  %8192 = vmatprep.subr.bf16.mxu0 %v8191_v54  ;;  %v1460_v53 = vld [vmem:[%s13575_s1 + $0x29c8] sm:$0xff]  ;;  %v8241_v54 = vpack.c.bf16 %v1410_v1, %v1409_v45  ;;  %v8243_v56 = vpack.c.bf16 %v1428_v51, %v1427_v50  ;;  %v8247_v4 = vpack.c.bf16 %v1430_v63, %v1429_v62  ;;  %v1418_v36 = vld [vmem:[%s13575_s1 + $0x2878] sm:$0xff]  ;;  %v1467_v49 = vld [vmem:[%s13575_s1 + $0x2a00] sm:$0xff] }
 0x280   :  { %8224 = vmatprep.subr.bf16.mxu1 %v8223_v59  ;;  %v1412_v13 = vld [vmem:[%s13575_s1 + $0x2848] sm:$0xff]  ;;  %v1443_v59 = vld [vmem:[%s13575_s1 + $0x2940] sm:$0xff]  ;;  %v8275_v60 = vpack.c.bf16 %v1460_v53, %v1459_v7  ;;  %v1450_v41 = vld [vmem:[%s13575_s1 + $0x2978] sm:$0xff] }
 0x281   :  { %v8289_v47 = vpack.c.bf16 %v1450_v41, %v1449_v37  ;;  %v1468_v50 = vld [vmem:[%s13575_s1 + $0x2a08] sm:$0xff]  ;;  %v1499_v51 = vld [vmem:[%s13575_s1 + $0x2b00] sm:$0xff]  ;;  %v1469_v63 = vld [vmem:[%s13575_s1 + $0x2a10] sm:$0xff] }
 0x282   :  { %8194 = vmatpush3.bf16.msra.mxu0 %v8193_v20  ;;  %v1462_v20 = vld [vmem:[%s13575_s1 + $0x29d8] sm:$0xff]  ;;  %v1500_v53 = vld [vmem:[%s13575_s1 + $0x2b08] sm:$0xff]  ;;  %v1475_v37 = vld [vmem:[%s13575_s1 + $0x2a40] sm:$0xff] }
 0x283   :  { %8226 = vmatpush3.bf16.msra.mxu1 %v8225_v2  ;;  %8228 = vmatprep.subr.bf16.mxu0 %v8227_v3  ;;  %v8245_v2 = vpack.c.bf16 %v1412_v13, %v1411_v57  ;;  %v8277_v3 = vpack.c.bf16 %v1444_v61, %v1443_v59  ;;  %v8279_v8 = vpack.c.bf16 %v1462_v20, %v1461_v19  ;;  %v1518_v57 = vld [vmem:[%s13575_s1 + $0x2b98] sm:$0xff]  ;;  %v107_v13 = vld [vmem:[%s13574_s0 + $0x280] sm:$0xff]  ;;  %v1501_v20 = vld [vmem:[%s13575_s1 + $0x2b10] sm:$0xff] }
 0x284   :  { %8260 = vmatprep.subr.bf16.mxu1 %v8259_v26  ;;  %v1445_v26 = vld [vmem:[%s13575_s1 + $0x2950] sm:$0xff]  ;;  %v8293_v59 = vpack.c.bf16 %v1468_v50, %v1467_v49  ;;  %v8325_v61 = vpack.c.bf16 %v1500_v53, %v1499_v51  ;;  %v1470_v19 = vld [vmem:[%s13575_s1 + $0x2a18] sm:$0xff] }
 0x285   :  { %4391 = vmatmul.mubr.f32.vlgmr.msra.gmra.mrb[38].mxu0 %v103_v32  ;;  %v1464_v32 = vld [vmem:[%s13575_s1 + $0x29e8] sm:$0xff]  ;;  %v1490_v38 = vld [vmem:[%s13575_s1 + $0x2ab8] sm:$0xff]  ;;  %v1477_v50 = vld [vmem:[%s13575_s1 + $0x2a50] sm:$0xff] }
 0x286   :  { %8230 = vmatpush3.bf16.msra.mxu0 %v8229_v14  ;;  %4461 = vmatmul.mubr.f32.vlgmr.msra.gmra.mrb[38].mxu1 %v105_v15  ;;  %v8249_v14 = vpack.c.bf16 %v1414_v6, %v1413_v5  ;;  %v8281_v15 = vpack.c.bf16 %v1446_v9, %v1445_v26  ;;  %v1488_v5 = vld [vmem:[%s13575_s1 + $0x2aa8] sm:$0xff]  ;;  %v1519_v6 = vld [vmem:[%s13575_s1 + $0x2ba0] sm:$0xff]  ;;  %v8297_v9 = vpack.c.bf16 %v1470_v19, %v1469_v63  ;;  %v1478_v51 = vld [vmem:[%s13575_s1 + $0x2a58] sm:$0xff] }
 0x287   :  { %8262 = vmatpush3.bf16.msra.mxu1 %v8261_v16  ;;  %8232 = vmatprep.subr.bf16.mxu0 %v8231_v17  ;;  %v8251_v16 = vpack.c.bf16 %v1432_v11, %v1431_v10  ;;  %v1415_v17 = vld [vmem:[%s13575_s1 + $0x2860] sm:$0xff]  ;;  %v1520_v26 = vld [vmem:[%s13575_s1 + $0x2ba8] sm:$0xff]  ;;  %v114_v10 = vld [vmem:[%s13574_s0 + $0x2b8] sm:$0xff] }
 0x288   :  { %8264 = vmatprep.subr.bf16.mxu1 %v8263_v21  ;;  %4530 = vmatprep.mubr.f32.mxu0 %v108_v27  ;;  %v8283_v21 = vpack.c.bf16 %v1464_v32, %v1463_v12  ;;  %v1465_v27 = vld [vmem:[%s13575_s1 + $0x29f0] sm:$0xff]  ;;  %v1471_v32 = vld [vmem:[%s13575_s1 + $0x2a20] sm:$0xff]  ;;  %v1480_v63 = vld [vmem:[%s13575_s1 + $0x2a68] sm:$0xff] }
 0x289   :  { %4600 = vmatprep.mubr.f32.mxu1 %v110_v29  ;;  %v1511_v19 = vld [vmem:[%s13575_s1 + $0x2b60] sm:$0xff] }
 0x28a   :  { %8234 = vmatpush3.bf16.msra.mxu0 %v8233_v28  ;;  %v1466_v28 = vld [vmem:[%s13575_s1 + $0x29f8] sm:$0xff] }
 0x28b   :  { %8266 = vmatpush3.bf16.msra.mxu1 %v8265_v30  ;;  %8236 = vmatprep.subr.bf16.mxu0 %v8235_v31  ;;  %v8253_v31 = vpack.c.bf16 %v1416_v18, %v1415_v17  ;;  %v8287_v39 = vpack.c.bf16 %v1466_v28, %v1465_v27  ;;  %v1504_v17 = vld [vmem:[%s13575_s1 + $0x2b28] sm:$0xff]  ;;  %v1489_v18 = vld [vmem:[%s13575_s1 + $0x2ab0] sm:$0xff] }
 0x28c   :  { %8268 = vmatprep.subr.bf16.mxu1 %v8267_v35  ;;  %v1417_v35 = vld [vmem:[%s13575_s1 + $0x2870] sm:$0xff]  ;;  %v8303_v24 = vpack.c.bf16 %v1490_v38, %v1489_v18 }
 0x28d   :  { %v8257_v1 = vpack.c.bf16 %v1418_v36, %v1417_v35  ;;  %v1505_v27 = vld [vmem:[%s13575_s1 + $0x2b30] sm:$0xff] }
 0x28e   :  { %8238 = vmatpush3.bf16.msra.mxu0 %v8237_v42  ;;  %v1483_v42 = vld [vmem:[%s13575_s1 + $0x2a80] sm:$0xff]  ;;  %v1513_v18 = vld [vmem:[%s13575_s1 + $0x2b70] sm:$0xff] }
 0x28f   :  { %8270 = vmatpush3.bf16.msra.mxu1 %v8269_v43  ;;  %8240 = vmatprep.subr.bf16.mxu0 %v8239_v44  ;;  %v1484_v43 = vld [vmem:[%s13575_s1 + $0x2a88] sm:$0xff]  ;;  %v1515_v44 = vld [vmem:[%s13575_s1 + $0x2b80] sm:$0xff] }
 0x290   :  { %8272 = vmatprep.subr.bf16.mxu1 %v8271_v48  ;;  %v8291_v48 = vpack.c.bf16 %v1484_v43, %v1483_v42  ;;  %v1508_v42 = vld [vmem:[%s13575_s1 + $0x2b48] sm:$0xff]  ;;  %v1493_v43 = vld [vmem:[%s13575_s1 + $0x2ad0] sm:$0xff] }
 0x292   :  { %8242 = vmatpush3.bf16.msra.mxu0 %v8241_v54  ;;  %v1485_v54 = vld [vmem:[%s13575_s1 + $0x2a90] sm:$0xff] }
 0x293   :  { %8274 = vmatpush3.bf16.msra.mxu1 %v8273_v55  ;;  %8244 = vmatprep.subr.bf16.mxu0 %v8243_v56  ;;  %v1486_v55 = vld [vmem:[%s13575_s1 + $0x2a98] sm:$0xff]  ;;  %v1517_v56 = vld [vmem:[%s13575_s1 + $0x2b90] sm:$0xff] }
 0x294   :  { %8276 = vmatprep.subr.bf16.mxu1 %v8275_v60  ;;  %v109_v60 = vld [vmem:[%s13574_s0 + $0x290] sm:$0xff]  ;;  %v8295_v62 = vpack.c.bf16 %v1486_v55, %v1485_v54  ;;  %v1510_v54 = vld [vmem:[%s13575_s1 + $0x2b58] sm:$0xff]  ;;  %v1495_v55 = vld [vmem:[%s13575_s1 + $0x2ae0] sm:$0xff] }
 0x296   :  { %8246 = vmatpush3.bf16.msra.mxu0 %v8245_v2  ;;  %v8327_v2 = vpack.c.bf16 %v1518_v57, %v1517_v56  ;;  %v1496_v56 = vld [vmem:[%s13575_s1 + $0x2ae8] sm:$0xff]  ;;  %v1527_v57 = vld [vmem:[%s13575_s1 + $0x2be0] sm:$0xff] }
 0x297   :  { %8278 = vmatpush3.bf16.msra.mxu1 %v8277_v3  ;;  %8248 = vmatprep.subr.bf16.mxu0 %v8247_v4  ;;  %v1502_v3 = vld [vmem:[%s13575_s1 + $0x2b18] sm:$0xff]  ;;  %v1487_v4 = vld [vmem:[%s13575_s1 + $0x2aa0] sm:$0xff] }
 0x298   :  { %v6165_v40 = vpop.f32.mrb[26].mxu0  ;;  %8280 = vmatprep.subr.bf16.mxu1 %v8279_v8  ;;  %v112_v8 = vld [vmem:[%s13574_s0 + $0x2a8] sm:$0xff]  ;;  %v8329_v11 = vpack.c.bf16 %v1502_v3, %v1501_v20  ;;  %v8299_v12 = vpack.c.bf16 %v1488_v5, %v1487_v4  ;;  %v1497_v4 = vld [vmem:[%s13575_s1 + $0x2af0] sm:$0xff]  ;;  %v1498_v5 = vld [vmem:[%s13575_s1 + $0x2af8] sm:$0xff] }
 0x299   :  { %v6166_v25 = vpop.f32.mrb[27].mxu0  ;;  %v6200_v46 = vpop.f32.mrb[26].mxu1  ;;  %v1512_v3 = vld [vmem:[%s13575_s1 + $0x2b68] sm:$0xff] }
 0x29a   :  { %v6167_v29 = vadd.f32 %v6166_v25, %v6165_v40  ;;  %8250 = vmatpush3.bf16.msra.mxu0 %v8249_v14  ;;  %v6201_v30 = vpop.f32.mrb[27].mxu1  ;;  %v1472_v14 = vld [vmem:[%s13575_s1 + $0x2a28] sm:$0xff]  ;;  %v1521_v40 = vld [vmem:[%s13575_s1 + $0x2bb0] sm:$0xff] }
 0x29b   :  { %v6202_v52 = vadd.f32 %v6201_v30, %v6200_v46  ;;  %8282 = vmatpush3.bf16.msra.mxu1 %v8281_v15  ;;  %8252 = vmatprep.subr.bf16.mxu0 %v8251_v16  ;;  %v1503_v15 = vld [vmem:[%s13575_s1 + $0x2b20] sm:$0xff]  ;;  %v8331_v16 = vpack.c.bf16 %v1520_v26, %v1519_v6  ;;  %v8301_v22 = vpack.c.bf16 %v1472_v14, %v1471_v32  ;;  %v1473_v25 = vld [vmem:[%s13575_s1 + $0x2a30] sm:$0xff]  ;;  %v1474_v46 = vld [vmem:[%s13575_s1 + $0x2a38] sm:$0xff] }
 0x29c   :  { %v3553_v58 = vadd.f32 %v6167_v29, %v12698_v0  ;;  %8284 = vmatprep.subr.bf16.mxu1 %v8283_v21  ;;  %v1516_v0 = vld [vmem:[%s13575_s1 + $0x2b88] sm:$0xff]  ;;  %v1522_v21 = vld [vmem:[%s13575_s1 + $0x2bb8] sm:$0xff]  ;;  %v8333_v23 = vpack.c.bf16 %v1504_v17, %v1503_v15  ;;  %v1491_v30 = vld [vmem:[%s13575_s1 + $0x2ac0] sm:$0xff]  ;;  %v8349_v14 = vpack.c.bf16 %v1512_v3, %v1511_v19  ;;  %v8319_v15 = vpack.c.bf16 %v1498_v5, %v1497_v4 }
 0x29d   :  { %v8323_v7 = vpack.c.bf16 %v1516_v0, %v1515_v44  ;;  %v8335_v28 = vpack.c.bf16 %v1522_v21, %v1521_v40  ;;  %v1506_v29 = vld [vmem:[%s13575_s1 + $0x2b38] sm:$0xff]  ;;  %v1525_v0 = vld [vmem:[%s13575_s1 + $0x2bd0] sm:$0xff] }
 0x29e   :  { %v12905_v45 = vadd.f32 %v6202_v52, %v3553_v58  ;;  %8254 = vmatpush3.bf16.msra.mxu0 %v8253_v31  ;;  %v1492_v31 = vld [vmem:[%s13575_s1 + $0x2ac8] sm:$0xff]  ;;  %v1523_v52 = vld [vmem:[%s13575_s1 + $0x2bc0] sm:$0xff]  ;;  %v8337_v35 = vpack.c.bf16 %v1506_v29, %v1505_v27  ;;  %v1494_v44 = vld [vmem:[%s13575_s1 + $0x2ad8] sm:$0xff] }
 0x29f   :  { %8286 = vmatpush3.bf16.msra.mxu1 %v8285_v33  ;;  %8256 = vmatprep.subr.bf16.mxu0 %v8255_v34  ;;  %v1524_v33 = vld [vmem:[%s13575_s1 + $0x2bc8] sm:$0xff]  ;;  %v8305_v34 = vpack.c.bf16 %v1474_v46, %v1473_v25  ;;  %v8307_v36 = vpack.c.bf16 %v1492_v31, %v1491_v30  ;;  %v8311_v49 = vpack.c.bf16 %v1494_v44, %v1493_v43  ;;  %v1482_v17 = vld [vmem:[%s13575_s1 + $0x2a78] sm:$0xff]  ;;  %v1531_v29 = vld [vmem:[%s13575_s1 + $0x2c00] sm:$0xff] }
 0x2a0   :  { %8288 = vmatprep.subr.bf16.mxu1 %v8287_v39  ;;  %v1476_v58 = vld [vmem:[%s13575_s1 + $0x2a48] sm:$0xff]  ;;  %v1507_v39 = vld [vmem:[%s13575_s1 + $0x2b40] sm:$0xff]  ;;  %v8339_v41 = vpack.c.bf16 %v1524_v33, %v1523_v52  ;;  %v1514_v21 = vld [vmem:[%s13575_s1 + $0x2b78] sm:$0xff] }
 0x2a1   :  { %v8353_v27 = vpack.c.bf16 %v1514_v21, %v1513_v18  ;;  %v1532_v30 = vld [vmem:[%s13575_s1 + $0x2c08] sm:$0xff]  ;;  %v1563_v31 = vld [vmem:[%s13575_s1 + $0x2d00] sm:$0xff]  ;;  %v1533_v44 = vld [vmem:[%s13575_s1 + $0x2c10] sm:$0xff] }
 0x2a2   :  { %8258 = vmatpush3.bf16.msra.mxu0 %v8257_v1  ;;  %v1526_v1 = vld [vmem:[%s13575_s1 + $0x2bd8] sm:$0xff]  ;;  %v1564_v33 = vld [vmem:[%s13575_s1 + $0x2d08] sm:$0xff]  ;;  %v1539_v18 = vld [vmem:[%s13575_s1 + $0x2c40] sm:$0xff] }
 0x2a3   :  { %8290 = vmatpush3.bf16.msra.mxu1 %v8289_v47  ;;  %8292 = vmatprep.subr.bf16.mxu0 %v8291_v48  ;;  %v8309_v47 = vpack.c.bf16 %v1476_v58, %v1475_v37  ;;  %v8341_v48 = vpack.c.bf16 %v1508_v42, %v1507_v39  ;;  %v8343_v53 = vpack.c.bf16 %v1526_v1, %v1525_v0  ;;  %v1582_v37 = vld [vmem:[%s13575_s1 + $0x2d98] sm:$0xff]  ;;  %v111_v58 = vld [vmem:[%s13574_s0 + $0x2a0] sm:$0xff]  ;;  %v1565_v1 = vld [vmem:[%s13575_s1 + $0x2d10] sm:$0xff] }
 0x2a4   :  { %8324 = vmatprep.subr.bf16.mxu1 %v8323_v7  ;;  %v1509_v7 = vld [vmem:[%s13575_s1 + $0x2b50] sm:$0xff]  ;;  %v8357_v39 = vpack.c.bf16 %v1532_v30, %v1531_v29  ;;  %v8389_v42 = vpack.c.bf16 %v1564_v33, %v1563_v31  ;;  %v1534_v0 = vld [vmem:[%s13575_s1 + $0x2c18] sm:$0xff] }
 0x2a5   :  { %4531 = vmatmul.mubr.f32.vlgmr.msra.gmra.mrb[40].mxu0 %v107_v13  ;;  %v1528_v13 = vld [vmem:[%s13575_s1 + $0x2be8] sm:$0xff]  ;;  %v1554_v19 = vld [vmem:[%s13575_s1 + $0x2cb8] sm:$0xff]  ;;  %v1541_v30 = vld [vmem:[%s13575_s1 + $0x2c50] sm:$0xff] }
 0x2a6   :  { %8294 = vmatpush3.bf16.msra.mxu0 %v8293_v59  ;;  %4601 = vmatmul.mubr.f32.vlgmr.msra.gmra.mrb[40].mxu1 %v109_v60  ;;  %v8313_v59 = vpack.c.bf16 %v1478_v51, %v1477_v50  ;;  %v8345_v60 = vpack.c.bf16 %v1510_v54, %v1509_v7  ;;  %v1552_v50 = vld [vmem:[%s13575_s1 + $0x2ca8] sm:$0xff]  ;;  %v1583_v51 = vld [vmem:[%s13575_s1 + $0x2da0] sm:$0xff]  ;;  %v8361_v54 = vpack.c.bf16 %v1534_v0, %v1533_v44  ;;  %v1542_v31 = vld [vmem:[%s13575_s1 + $0x2c58] sm:$0xff] }
 0x2a7   :  { %8326 = vmatpush3.bf16.msra.mxu1 %v8325_v61  ;;  %8296 = vmatprep.subr.bf16.mxu0 %v8295_v62  ;;  %v8315_v61 = vpack.c.bf16 %v1496_v56, %v1495_v55  ;;  %v1479_v62 = vld [vmem:[%s13575_s1 + $0x2a60] sm:$0xff]  ;;  %v1584_v7 = vld [vmem:[%s13575_s1 + $0x2da8] sm:$0xff]  ;;  %v118_v55 = vld [vmem:[%s13574_s0 + $0x2d8] sm:$0xff] }
 0x2a8   :  { %8328 = vmatprep.subr.bf16.mxu1 %v8327_v2  ;;  %4670 = vmatprep.mubr.f32.mxu0 %v112_v8  ;;  %v8347_v2 = vpack.c.bf16 %v1528_v13, %v1527_v57  ;;  %v1529_v8 = vld [vmem:[%s13575_s1 + $0x2bf0] sm:$0xff]  ;;  %v1535_v13 = vld [vmem:[%s13575_s1 + $0x2c20] sm:$0xff]  ;;  %v1544_v44 = vld [vmem:[%s13575_s1 + $0x2c68] sm:$0xff] }
 0x2a9   :  { %4740 = vmatprep.mubr.f32.mxu1 %v114_v10  ;;  %v1575_v0 = vld [vmem:[%s13575_s1 + $0x2d60] sm:$0xff] }
 0x2aa   :  { %8298 = vmatpush3.bf16.msra.mxu0 %v8297_v9  ;;  %v1530_v9 = vld [vmem:[%s13575_s1 + $0x2bf8] sm:$0xff] }
 0x2ab   :  { %8330 = vmatpush3.bf16.msra.mxu1 %v8329_v11  ;;  %8300 = vmatprep.subr.bf16.mxu0 %v8299_v12  ;;  %v8317_v12 = vpack.c.bf16 %v1480_v63, %v1479_v62  ;;  %v8351_v40 = vpack.c.bf16 %v1530_v9, %v1529_v8  ;;  %v1568_v62 = vld [vmem:[%s13575_s1 + $0x2d28] sm:$0xff]  ;;  %v1553_v63 = vld [vmem:[%s13575_s1 + $0x2cb0] sm:$0xff] }
 0x2ac   :  { %8332 = vmatprep.subr.bf16.mxu1 %v8331_v16  ;;  %v1481_v16 = vld [vmem:[%s13575_s1 + $0x2a70] sm:$0xff]  ;;  %v8367_v5 = vpack.c.bf16 %v1554_v19, %v1553_v63 }
 0x2ad   :  { %v8321_v46 = vpack.c.bf16 %v1482_v17, %v1481_v16  ;;  %v1569_v8 = vld [vmem:[%s13575_s1 + $0x2d30] sm:$0xff] }
 0x2ae   :  { %8302 = vmatpush3.bf16.msra.mxu0 %v8301_v22  ;;  %v1547_v22 = vld [vmem:[%s13575_s1 + $0x2c80] sm:$0xff]  ;;  %v1577_v63 = vld [vmem:[%s13575_s1 + $0x2d70] sm:$0xff] }
 0x2af   :  { %8334 = vmatpush3.bf16.msra.mxu1 %v8333_v23  ;;  %8304 = vmatprep.subr.bf16.mxu0 %v8303_v24  ;;  %v1548_v23 = vld [vmem:[%s13575_s1 + $0x2c88] sm:$0xff]  ;;  %v1579_v24 = vld [vmem:[%s13575_s1 + $0x2d80] sm:$0xff] }
 0x2b0   :  { %8336 = vmatprep.subr.bf16.mxu1 %v8335_v28  ;;  %v8355_v28 = vpack.c.bf16 %v1548_v23, %v1547_v22  ;;  %v1572_v22 = vld [vmem:[%s13575_s1 + $0x2d48] sm:$0xff]  ;;  %v1557_v23 = vld [vmem:[%s13575_s1 + $0x2cd0] sm:$0xff] }
 0x2b2   :  { %8306 = vmatpush3.bf16.msra.mxu0 %v8305_v34  ;;  %v1549_v34 = vld [vmem:[%s13575_s1 + $0x2c90] sm:$0xff] }
 0x2b3   :  { %8338 = vmatpush3.bf16.msra.mxu1 %v8337_v35  ;;  %8308 = vmatprep.subr.bf16.mxu0 %v8307_v36  ;;  %v1550_v35 = vld [vmem:[%s13575_s1 + $0x2c98] sm:$0xff]  ;;  %v1581_v36 = vld [vmem:[%s13575_s1 + $0x2d90] sm:$0xff] }
 0x2b4   :  { %8340 = vmatprep.subr.bf16.mxu1 %v8339_v41  ;;  %v113_v41 = vld [vmem:[%s13574_s0 + $0x2b0] sm:$0xff]  ;;  %v8359_v43 = vpack.c.bf16 %v1550_v35, %v1549_v34  ;;  %v1574_v34 = vld [vmem:[%s13575_s1 + $0x2d58] sm:$0xff]  ;;  %v1559_v35 = vld [vmem:[%s13575_s1 + $0x2ce0] sm:$0xff] }
 0x2b6   :  { %8310 = vmatpush3.bf16.msra.mxu0 %v8309_v47  ;;  %v8391_v47 = vpack.c.bf16 %v1582_v37, %v1581_v36  ;;  %v1560_v36 = vld [vmem:[%s13575_s1 + $0x2ce8] sm:$0xff]  ;;  %v1591_v37 = vld [vmem:[%s13575_s1 + $0x2de0] sm:$0xff] }
 0x2b7   :  { %8342 = vmatpush3.bf16.msra.mxu1 %v8341_v48  ;;  %8312 = vmatprep.subr.bf16.mxu0 %v8311_v49  ;;  %v1566_v48 = vld [vmem:[%s13575_s1 + $0x2d18] sm:$0xff]  ;;  %v1551_v49 = vld [vmem:[%s13575_s1 + $0x2ca0] sm:$0xff] }
 0x2b8   :  { %v6235_v20 = vpop.f32.mrb[28].mxu0  ;;  %8344 = vmatprep.subr.bf16.mxu1 %v8343_v53  ;;  %v116_v53 = vld [vmem:[%s13574_s0 + $0x2c8] sm:$0xff]  ;;  %v8393_v56 = vpack.c.bf16 %v1566_v48, %v1565_v1  ;;  %v8363_v57 = vpack.c.bf16 %v1552_v50, %v1551_v49  ;;  %v1561_v49 = vld [vmem:[%s13575_s1 + $0x2cf0] sm:$0xff]  ;;  %v1562_v50 = vld [vmem:[%s13575_s1 + $0x2cf8] sm:$0xff] }
 0x2b9   :  { %v6236_v6 = vpop.f32.mrb[29].mxu0  ;;  %v6270_v26 = vpop.f32.mrb[28].mxu1  ;;  %v1576_v48 = vld [vmem:[%s13575_s1 + $0x2d68] sm:$0xff] }
 0x2ba   :  { %v6237_v10 = vadd.f32 %v6236_v6, %v6235_v20  ;;  %8314 = vmatpush3.bf16.msra.mxu0 %v8313_v59  ;;  %v6271_v11 = vpop.f32.mrb[29].mxu1  ;;  %v1536_v59 = vld [vmem:[%s13575_s1 + $0x2c28] sm:$0xff]  ;;  %v1585_v20 = vld [vmem:[%s13575_s1 + $0x2db0] sm:$0xff] }
 0x2bb   :  { %v6272_v32 = vadd.f32 %v6271_v11, %v6270_v26  ;;  %8346 = vmatpush3.bf16.msra.mxu1 %v8345_v60  ;;  %8316 = vmatprep.subr.bf16.mxu0 %v8315_v61  ;;  %v1567_v60 = vld [vmem:[%s13575_s1 + $0x2d20] sm:$0xff]  ;;  %v8395_v61 = vpack.c.bf16 %v1584_v7, %v1583_v51  ;;  %v8365_v3 = vpack.c.bf16 %v1536_v59, %v1535_v13  ;;  %v1537_v6 = vld [vmem:[%s13575_s1 + $0x2c30] sm:$0xff]  ;;  %v1538_v26 = vld [vmem:[%s13575_s1 + $0x2c38] sm:$0xff] }
 0x2bc   :  { %v3693_v38 = vadd.f32 %v6237_v10, %v12905_v45  ;;  %8348 = vmatprep.subr.bf16.mxu1 %v8347_v2  ;;  %v1580_v45 = vld [vmem:[%s13575_s1 + $0x2d88] sm:$0xff]  ;;  %v1586_v2 = vld [vmem:[%s13575_s1 + $0x2db8] sm:$0xff]  ;;  %v8397_v4 = vpack.c.bf16 %v1568_v62, %v1567_v60  ;;  %v1555_v11 = vld [vmem:[%s13575_s1 + $0x2cc0] sm:$0xff]  ;;  %v8413_v59 = vpack.c.bf16 %v1576_v48, %v1575_v0  ;;  %v8383_v60 = vpack.c.bf16 %v1562_v50, %v1561_v49 }
 0x2bd   :  { %v8387_v52 = vpack.c.bf16 %v1580_v45, %v1579_v24  ;;  %v8399_v9 = vpack.c.bf16 %v1586_v2, %v1585_v20  ;;  %v1570_v10 = vld [vmem:[%s13575_s1 + $0x2d38] sm:$0xff]  ;;  %v1589_v45 = vld [vmem:[%s13575_s1 + $0x2dd0] sm:$0xff] }
 0x2be   :  { %v13112_v25 = vadd.f32 %v6272_v32, %v3693_v38  ;;  %8318 = vmatpush3.bf16.msra.mxu0 %v8317_v12  ;;  %v1556_v12 = vld [vmem:[%s13575_s1 + $0x2cc8] sm:$0xff]  ;;  %v1587_v32 = vld [vmem:[%s13575_s1 + $0x2dc0] sm:$0xff]  ;;  %v8401_v16 = vpack.c.bf16 %v1570_v10, %v1569_v8  ;;  %v1558_v24 = vld [vmem:[%s13575_s1 + $0x2cd8] sm:$0xff] }
 0x2bf   :  { %8350 = vmatpush3.bf16.msra.mxu1 %v8349_v14  ;;  %8320 = vmatprep.subr.bf16.mxu0 %v8319_v15  ;;  %v1588_v14 = vld [vmem:[%s13575_s1 + $0x2dc8] sm:$0xff]  ;;  %v8369_v15 = vpack.c.bf16 %v1538_v26, %v1537_v6  ;;  %v8371_v17 = vpack.c.bf16 %v1556_v12, %v1555_v11  ;;  %v8375_v29 = vpack.c.bf16 %v1558_v24, %v1557_v23  ;;  %v1546_v62 = vld [vmem:[%s13575_s1 + $0x2c78] sm:$0xff]  ;;  %v1595_v10 = vld [vmem:[%s13575_s1 + $0x2e00] sm:$0xff] }
 0x2c0   :  { %8352 = vmatprep.subr.bf16.mxu1 %v8351_v40  ;;  %v1540_v38 = vld [vmem:[%s13575_s1 + $0x2c48] sm:$0xff]  ;;  %v1571_v40 = vld [vmem:[%s13575_s1 + $0x2d40] sm:$0xff]  ;;  %v8403_v21 = vpack.c.bf16 %v1588_v14, %v1587_v32  ;;  %v1578_v2 = vld [vmem:[%s13575_s1 + $0x2d78] sm:$0xff] }
 0x2c1   :  { %v8417_v8 = vpack.c.bf16 %v1578_v2, %v1577_v63  ;;  %v1596_v11 = vld [vmem:[%s13575_s1 + $0x2e08] sm:$0xff]  ;;  %v1627_v12 = vld [vmem:[%s13575_s1 + $0x2f00] sm:$0xff]  ;;  %v1597_v24 = vld [vmem:[%s13575_s1 + $0x2e10] sm:$0xff] }
 0x2c2   :  { %8322 = vmatpush3.bf16.msra.mxu0 %v8321_v46  ;;  %v1590_v46 = vld [vmem:[%s13575_s1 + $0x2dd8] sm:$0xff]  ;;  %v1628_v14 = vld [vmem:[%s13575_s1 + $0x2f08] sm:$0xff]  ;;  %v1603_v63 = vld [vmem:[%s13575_s1 + $0x2e40] sm:$0xff] }
 0x2c3   :  { %8354 = vmatpush3.bf16.msra.mxu1 %v8353_v27  ;;  %8356 = vmatprep.subr.bf16.mxu0 %v8355_v28  ;;  %v8373_v27 = vpack.c.bf16 %v1540_v38, %v1539_v18  ;;  %v8405_v28 = vpack.c.bf16 %v1572_v22, %v1571_v40  ;;  %v8407_v33 = vpack.c.bf16 %v1590_v46, %v1589_v45  ;;  %v1646_v18 = vld [vmem:[%s13575_s1 + $0x2f98] sm:$0xff]  ;;  %v115_v38 = vld [vmem:[%s13574_s0 + $0x2c0] sm:$0xff]  ;;  %v1629_v46 = vld [vmem:[%s13575_s1 + $0x2f10] sm:$0xff] }
 0x2c4   :  { %8388 = vmatprep.subr.bf16.mxu1 %v8387_v52  ;;  %v1573_v52 = vld [vmem:[%s13575_s1 + $0x2d50] sm:$0xff]  ;;  %v8421_v40 = vpack.c.bf16 %v1596_v11, %v1595_v10  ;;  %v8453_v22 = vpack.c.bf16 %v1628_v14, %v1627_v12  ;;  %v1598_v45 = vld [vmem:[%s13575_s1 + $0x2e18] sm:$0xff] }
 0x2c5   :  { %4671 = vmatmul.mubr.f32.vlgmr.msra.gmra.mrb[42].mxu0 %v111_v58  ;;  %v1592_v58 = vld [vmem:[%s13575_s1 + $0x2de8] sm:$0xff]  ;;  %v1618_v0 = vld [vmem:[%s13575_s1 + $0x2eb8] sm:$0xff]  ;;  %v1605_v11 = vld [vmem:[%s13575_s1 + $0x2e50] sm:$0xff] }
 0x2c6   :  { %8358 = vmatpush3.bf16.msra.mxu0 %v8357_v39  ;;  %4741 = vmatmul.mubr.f32.vlgmr.msra.gmra.mrb[42].mxu1 %v113_v41  ;;  %v8377_v39 = vpack.c.bf16 %v1542_v31, %v1541_v30  ;;  %v8409_v41 = vpack.c.bf16 %v1574_v34, %v1573_v52  ;;  %v1616_v30 = vld [vmem:[%s13575_s1 + $0x2ea8] sm:$0xff]  ;;  %v1647_v31 = vld [vmem:[%s13575_s1 + $0x2fa0] sm:$0xff]  ;;  %v8425_v34 = vpack.c.bf16 %v1598_v45, %v1597_v24  ;;  %v1606_v12 = vld [vmem:[%s13575_s1 + $0x2e58] sm:$0xff] }
 0x2c7   :  { %8390 = vmatpush3.bf16.msra.mxu1 %v8389_v42  ;;  %8360 = vmatprep.subr.bf16.mxu0 %v8359_v43  ;;  %v8379_v42 = vpack.c.bf16 %v1560_v36, %v1559_v35  ;;  %v1543_v43 = vld [vmem:[%s13575_s1 + $0x2c60] sm:$0xff]  ;;  %v1648_v52 = vld [vmem:[%s13575_s1 + $0x2fa8] sm:$0xff]  ;;  %v122_v35 = vld [vmem:[%s13574_s0 + $0x2f8] sm:$0xff] }
 0x2c8   :  { %8392 = vmatprep.subr.bf16.mxu1 %v8391_v47  ;;  %4810 = vmatprep.mubr.f32.mxu0 %v116_v53  ;;  %v8411_v47 = vpack.c.bf16 %v1592_v58, %v1591_v37  ;;  %v1593_v53 = vld [vmem:[%s13575_s1 + $0x2df0] sm:$0xff]  ;;  %v1599_v58 = vld [vmem:[%s13575_s1 + $0x2e20] sm:$0xff]  ;;  %v1608_v24 = vld [vmem:[%s13575_s1 + $0x2e68] sm:$0xff] }
 0x2c9   :  { %4880 = vmatprep.mubr.f32.mxu1 %v118_v55  ;;  %v1639_v45 = vld [vmem:[%s13575_s1 + $0x2f60] sm:$0xff] }
 0x2ca   :  { %8362 = vmatpush3.bf16.msra.mxu0 %v8361_v54  ;;  %v1594_v54 = vld [vmem:[%s13575_s1 + $0x2df8] sm:$0xff] }
 0x2cb   :  { %8394 = vmatpush3.bf16.msra.mxu1 %v8393_v56  ;;  %8364 = vmatprep.subr.bf16.mxu0 %v8363_v57  ;;  %v8381_v57 = vpack.c.bf16 %v1544_v44, %v1543_v43  ;;  %v8415_v20 = vpack.c.bf16 %v1594_v54, %v1593_v53  ;;  %v1632_v43 = vld [vmem:[%s13575_s1 + $0x2f28] sm:$0xff]  ;;  %v1617_v44 = vld [vmem:[%s13575_s1 + $0x2eb0] sm:$0xff] }
 0x2cc   :  { %8396 = vmatprep.subr.bf16.mxu1 %v8395_v61  ;;  %v1545_v61 = vld [vmem:[%s13575_s1 + $0x2c70] sm:$0xff]  ;;  %v8431_v50 = vpack.c.bf16 %v1618_v0, %v1617_v44 }
 0x2cd   :  { %v8385_v26 = vpack.c.bf16 %v1546_v62, %v1545_v61  ;;  %v1633_v53 = vld [vmem:[%s13575_s1 + $0x2f30] sm:$0xff] }
 0x2ce   :  { %8366 = vmatpush3.bf16.msra.mxu0 %v8365_v3  ;;  %v1611_v3 = vld [vmem:[%s13575_s1 + $0x2e80] sm:$0xff] }
 0x2cf   :  { %8398 = vmatpush3.bf16.msra.mxu1 %v8397_v4  ;;  %8368 = vmatprep.subr.bf16.mxu0 %v8367_v5  ;;  %v1612_v4 = vld [vmem:[%s13575_s1 + $0x2e88] sm:$0xff]  ;;  %v1643_v5 = vld [vmem:[%s13575_s1 + $0x2f80] sm:$0xff] }
 0x2d0   :  { %8400 = vmatprep.subr.bf16.mxu1 %v8399_v9  ;;  %v8419_v9 = vpack.c.bf16 %v1612_v4, %v1611_v3  ;;  %v1636_v3 = vld [vmem:[%s13575_s1 + $0x2f48] sm:$0xff]  ;;  %v1621_v4 = vld [vmem:[%s13575_s1 + $0x2ed0] sm:$0xff] }
 0x2d2   :  { %8370 = vmatpush3.bf16.msra.mxu0 %v8369_v15  ;;  %v1613_v15 = vld [vmem:[%s13575_s1 + $0x2e90] sm:$0xff] }
 0x2d3   :  { %8402 = vmatpush3.bf16.msra.mxu1 %v8401_v16  ;;  %8372 = vmatprep.subr.bf16.mxu0 %v8371_v17  ;;  %v1614_v16 = vld [vmem:[%s13575_s1 + $0x2e98] sm:$0xff]  ;;  %v1645_v17 = vld [vmem:[%s13575_s1 + $0x2f90] sm:$0xff] }
 0x2d4   :  { %8404 = vmatprep.subr.bf16.mxu1 %v8403_v21  ;;  %v117_v21 = vld [vmem:[%s13574_s0 + $0x2d0] sm:$0xff]  ;;  %v8423_v23 = vpack.c.bf16 %v1614_v16, %v1613_v15  ;;  %v1638_v15 = vld [vmem:[%s13575_s1 + $0x2f58] sm:$0xff]  ;;  %v1623_v16 = vld [vmem:[%s13575_s1 + $0x2ee0] sm:$0xff] }
 0x2d6   :  { %8374 = vmatpush3.bf16.msra.mxu0 %v8373_v27  ;;  %v8455_v27 = vpack.c.bf16 %v1646_v18, %v1645_v17  ;;  %v1624_v17 = vld [vmem:[%s13575_s1 + $0x2ee8] sm:$0xff]  ;;  %v1655_v18 = vld [vmem:[%s13575_s1 + $0x2fe0] sm:$0xff] }
 0x2d7   :  { %8406 = vmatpush3.bf16.msra.mxu1 %v8405_v28  ;;  %8376 = vmatprep.subr.bf16.mxu0 %v8375_v29  ;;  %v1630_v28 = vld [vmem:[%s13575_s1 + $0x2f18] sm:$0xff]  ;;  %v1615_v29 = vld [vmem:[%s13575_s1 + $0x2ea0] sm:$0xff] }
 0x2d8   :  { %v6305_v1 = vpop.f32.mrb[30].mxu0  ;;  %8408 = vmatprep.subr.bf16.mxu1 %v8407_v33  ;;  %v120_v33 = vld [vmem:[%s13574_s0 + $0x2e8] sm:$0xff]  ;;  %v8457_v36 = vpack.c.bf16 %v1630_v28, %v1629_v46  ;;  %v8427_v37 = vpack.c.bf16 %v1616_v30, %v1615_v29  ;;  %v1625_v29 = vld [vmem:[%s13575_s1 + $0x2ef0] sm:$0xff]  ;;  %v1626_v30 = vld [vmem:[%s13575_s1 + $0x2ef8] sm:$0xff] }
 0x2d9   :  { %v6306_v51 = vpop.f32.mrb[31].mxu0  ;;  %v6340_v7 = vpop.f32.mrb[30].mxu1  ;;  %v1640_v28 = vld [vmem:[%s13575_s1 + $0x2f68] sm:$0xff] }
 0x2da   :  { %v6307_v55 = vadd.f32 %v6306_v51, %v6305_v1  ;;  %8378 = vmatpush3.bf16.msra.mxu0 %v8377_v39  ;;  %v6341_v56 = vpop.f32.mrb[31].mxu1  ;;  %v1600_v39 = vld [vmem:[%s13575_s1 + $0x2e28] sm:$0xff]  ;;  %v1649_v1 = vld [vmem:[%s13575_s1 + $0x2fb0] sm:$0xff] }
 0x2db   :  { %v6342_v13 = vadd.f32 %v6341_v56, %v6340_v7  ;;  %8410 = vmatpush3.bf16.msra.mxu1 %v8409_v41  ;;  %8380 = vmatprep.subr.bf16.mxu0 %v8379_v42  ;;  %v1631_v41 = vld [vmem:[%s13575_s1 + $0x2f20] sm:$0xff]  ;;  %v8459_v42 = vpack.c.bf16 %v1648_v52, %v1647_v31  ;;  %v8429_v48 = vpack.c.bf16 %v1600_v39, %v1599_v58  ;;  %v1601_v51 = vld [vmem:[%s13575_s1 + $0x2e30] sm:$0xff]  ;;  %v1602_v7 = vld [vmem:[%s13575_s1 + $0x2e38] sm:$0xff] }
 0x2dc   :  { %v3833_v19 = vadd.f32 %v6307_v55, %v13112_v25  ;;  %8412 = vmatprep.subr.bf16.mxu1 %v8411_v47  ;;  %v1644_v25 = vld [vmem:[%s13575_s1 + $0x2f88] sm:$0xff]  ;;  %v1650_v47 = vld [vmem:[%s13575_s1 + $0x2fb8] sm:$0xff]  ;;  %v8461_v49 = vpack.c.bf16 %v1632_v43, %v1631_v41  ;;  %v1619_v56 = vld [vmem:[%s13575_s1 + $0x2ec0] sm:$0xff]  ;;  %v8477_v39 = vpack.c.bf16 %v1640_v28, %v1639_v45  ;;  %v8447_v41 = vpack.c.bf16 %v1626_v30, %v1625_v29 }
 0x2dd   :  { %v8451_v32 = vpack.c.bf16 %v1644_v25, %v1643_v5  ;;  %v8463_v54 = vpack.c.bf16 %v1650_v47, %v1649_v1  ;;  %v1634_v55 = vld [vmem:[%s13575_s1 + $0x2f38] sm:$0xff]  ;;  %v1653_v25 = vld [vmem:[%s13575_s1 + $0x2fd0] sm:$0xff]  ;;  %v8531_v45 = vmov 0.0  }
 0x2de   :  { %v13319_v6 = vadd.f32 %v6342_v13, %v3833_v19  ;;  %8382 = vmatpush3.bf16.msra.mxu0 %v8381_v57  ;;  %v1620_v57 = vld [vmem:[%s13575_s1 + $0x2ec8] sm:$0xff]  ;;  %v1651_v13 = vld [vmem:[%s13575_s1 + $0x2fc0] sm:$0xff]  ;;  %v8465_v61 = vpack.c.bf16 %v1634_v55, %v1633_v53  ;;  %v1622_v5 = vld [vmem:[%s13575_s1 + $0x2ed8] sm:$0xff] }
 0x2df   :  { %8414 = vmatpush3.bf16.msra.mxu1 %v8413_v59  ;;  %8384 = vmatprep.subr.bf16.mxu0 %v8383_v60  ;;  %v1652_v59 = vld [vmem:[%s13575_s1 + $0x2fc8] sm:$0xff]  ;;  %v8433_v60 = vpack.c.bf16 %v1602_v7, %v1601_v51  ;;  %v8435_v62 = vpack.c.bf16 %v1620_v57, %v1619_v56  ;;  %v8439_v10 = vpack.c.bf16 %v1622_v5, %v1621_v4  ;;  %v1610_v43 = vld [vmem:[%s13575_s1 + $0x2e78] sm:$0xff]  ;;  %v1641_v1 = vld [vmem:[%s13575_s1 + $0x2f70] sm:$0xff] }
 0x2e0   :  { %8416 = vmatprep.subr.bf16.mxu1 %v8415_v20  ;;  %v1604_v19 = vld [vmem:[%s13575_s1 + $0x2e48] sm:$0xff]  ;;  %v1635_v20 = vld [vmem:[%s13575_s1 + $0x2f40] sm:$0xff]  ;;  %v8467_v2 = vpack.c.bf16 %v1652_v59, %v1651_v13  ;;  %v1642_v47 = vld [vmem:[%s13575_s1 + $0x2f78] sm:$0xff] }
 0x2e1   :  { %v121_v51 = vld [vmem:[%s13574_s0 + $0x2f0] sm:$0xff]  ;;  %v5027_v4 = vld [vmem:[%s13577_s3] sm:$0xff]  ;;  %v5028_v5 = vld [vmem:[%s13577_s3 + $0x8] sm:$0xff] }
 0x2e2   :  { %8386 = vmatpush3.bf16.msra.mxu0 %v8385_v26  ;;  %v1654_v26 = vld [vmem:[%s13575_s1 + $0x2fd8] sm:$0xff] }
 0x2e3   :  { %8418 = vmatpush3.bf16.msra.mxu1 %v8417_v8  ;;  %8420 = vmatprep.subr.bf16.mxu0 %v8419_v9  ;;  %v8437_v8 = vpack.c.bf16 %v1604_v19, %v1603_v63  ;;  %v8469_v9 = vpack.c.bf16 %v1636_v3, %v1635_v20  ;;  %v8471_v14 = vpack.c.bf16 %v1654_v26, %v1653_v25  ;;  %v5029_v25 = vld [vmem:[%s13577_s3 + $0x10] sm:$0xff]  ;;  %v8529_v26 = vmov 0.0|0.0  }
 0x2e4   :  { %8452 = vmatprep.subr.bf16.mxu1 %v8451_v32  ;;  %v1637_v32 = vld [vmem:[%s13575_s1 + $0x2f50] sm:$0xff] }
 0x2e5   :  { %4811 = vmatmul.mubr.f32.vlgmr.msra.gmra.mrb[44].mxu0 %v115_v38  ;;  %v1656_v38 = vld [vmem:[%s13575_s1 + $0x2fe8] sm:$0xff] }
 0x2e6   :  { %8422 = vmatpush3.bf16.msra.mxu0 %v8421_v40  ;;  %4881 = vmatmul.mubr.f32.vlgmr.msra.gmra.mrb[44].mxu1 %v117_v21  ;;  %v8441_v40 = vpack.c.bf16 %v1606_v12, %v1605_v11  ;;  %v8473_v21 = vpack.c.bf16 %v1638_v15, %v1637_v32  ;;  %v5031_v12 = vld [vmem:[%s13577_s3 + $0x20] sm:$0xff]  ;;  %v5032_v32 = vld [vmem:[%s13577_s3 + $0x28] sm:$0xff] }
 0x2e7   :  { %8454 = vmatpush3.bf16.msra.mxu1 %v8453_v22  ;;  %8424 = vmatprep.subr.bf16.mxu0 %v8423_v23  ;;  %v8443_v22 = vpack.c.bf16 %v1624_v17, %v1623_v16  ;;  %v1607_v23 = vld [vmem:[%s13575_s1 + $0x2e60] sm:$0xff]  ;;  %v8490_v16 = vpack.c.bf16 %v5032_v32, %v5031_v12 }
 0x2e8   :  { %8456 = vmatprep.subr.bf16.mxu1 %v8455_v27  ;;  %4950 = vmatprep.mubr.f32.mxu0 %v120_v33  ;;  %v8475_v27 = vpack.c.bf16 %v1656_v38, %v1655_v18  ;;  %v1657_v33 = vld [vmem:[%s13575_s1 + $0x2ff0] sm:$0xff] }
 0x2e9   :  { %5020 = vmatprep.mubr.f32.mxu1 %v122_v35 }
 0x2ea   :  { %8426 = vmatpush3.bf16.msra.mxu0 %v8425_v34  ;;  %v1658_v34 = vld [vmem:[%s13575_s1 + $0x2ff8] sm:$0xff] }
 0x2eb   :  { %8458 = vmatpush3.bf16.msra.mxu1 %v8457_v36  ;;  %8428 = vmatprep.subr.bf16.mxu0 %v8427_v37  ;;  %v8445_v37 = vpack.c.bf16 %v1608_v24, %v1607_v23  ;;  %v8479_v0 = vpack.c.bf16 %v1658_v34, %v1657_v33 }
 0x2ec   :  { %8460 = vmatprep.subr.bf16.mxu1 %v8459_v42  ;;  %v1609_v42 = vld [vmem:[%s13575_s1 + $0x2e70] sm:$0xff] }
 0x2ee   :  { %8430 = vmatpush3.bf16.msra.mxu0 %v8429_v48 }
 0x2ef   :  { %8462 = vmatpush3.bf16.msra.mxu1 %v8461_v49  ;;  %8432 = vmatprep.subr.bf16.mxu0 %v8431_v50  ;;  %v8449_v49 = vpack.c.bf16 %v1610_v43, %v1609_v42  ;;  %v8481_v50 = vpack.c.bf16 %v1642_v47, %v1641_v1 }
 0x2f0   :  { %8464 = vmatprep.subr.bf16.mxu1 %v8463_v54 }
 0x2f2   :  { %8434 = vmatpush3.bf16.msra.mxu0 %v8433_v60 }
 0x2f3   :  { %8466 = vmatpush3.bf16.msra.mxu1 %v8465_v61  ;;  %8436 = vmatprep.subr.bf16.mxu0 %v8435_v62 }
 0x2f4   :  { %8468 = vmatprep.subr.bf16.mxu1 %v8467_v2 }
 0x2f6   :  { %8438 = vmatpush3.bf16.msra.mxu0 %v8437_v8  ;;  %v8484_v8 = vpack.c.bf16 %v5028_v5, %v5027_v4 }
 0x2f7   :  { %8470 = vmatpush3.bf16.msra.mxu1 %v8469_v9  ;;  %8440 = vmatprep.subr.bf16.mxu0 %v8439_v10  ;;  %v5030_v9 = vld [vmem:[%s13577_s3 + $0x18] sm:$0xff] }
 0x2f8   :  { %v6375_v46 = vpop.f32.mrb[32].mxu0  ;;  %8472 = vmatprep.subr.bf16.mxu1 %v8471_v14  ;;  %v8487_v10 = vpack.c.bf16 %v5030_v9, %v5029_v25  ;;  %v5221_v25 = vld [vmem:[%s13580_s6] ss:$0 sm:$0xff] }
 0x2f9   :  { %v6376_v31 = vpop.f32.mrb[33].mxu0  ;;  %v6410_v52 = vpop.f32.mrb[32].mxu1 }
 0x2fa   :  { %v6377_v35 = vadd.f32 %v6376_v31, %v6375_v46  ;;  %8442 = vmatpush3.bf16.msra.mxu0 %v8441_v40  ;;  %v6411_v36 = vpop.f32.mrb[33].mxu1  ;;  %v5117_v46 = vld [vmem:[%s13579_s5] sm:$0xff] }
 0x2fb   :  { %v6412_v58 = vadd.f32 %v6411_v36, %v6410_v52  ;;  %8474 = vmatpush3.bf16.msra.mxu1 %v8473_v21  ;;  %8444 = vmatprep.subr.bf16.mxu0 %v8443_v22  ;;  %v5033_v21 = vld [vmem:[%s13577_s3 + $0x30] sm:$0xff]  ;;  %v5034_v22 = vld [vmem:[%s13577_s3 + $0x38] sm:$0xff] }
 0x2fc   :  { %v3973_v44 = vadd.f32 %v6377_v35, %v13319_v6  ;;  %8476 = vmatprep.subr.bf16.mxu1 %v8475_v27  ;;  %v119_v6 = vld [vmem:[%s13574_s0 + $0x2e0] sm:$0xff]  ;;  %v8493_v23 = vpack.c.bf16 %v5034_v22, %v5033_v21  ;;  %v5118_v27 = vld [vmem:[%s13579_s5 + $0x8] sm:$0xff]  ;;  %s8532_s0 = smov [#allocation2]  }
 0x2fd   :  { %v8496_v28 = vpack.c.bf16 %v5118_v27, %v5117_v46  ;;  %s5210_s24 = sshll.u32 %s8532_s0, 4  ;;  %s5211_s24 = int_to_ptr.vmem [resolvable:$true] %s5210_s24 }
 0x2fe   :  { %v4043_v48 = vadd.f32 %v6412_v58, %v3973_v44  ;;  %8446 = vmatpush3.bf16.msra.mxu0 %v8445_v37  ;;  %p8510_p1 = scmp.lt.s32.totalorder %s5211_s24, %s5211_s24 }
 0x2ff   :  { %8478 = vmatpush3.bf16.msra.mxu1 %v8477_v39  ;;  %8448 = vmatprep.subr.bf16.mxu0 %v8447_v41 }
 0x300   :  { %8480 = vmatprep.subr.bf16.mxu1 %v8479_v0 }
 0x302   :  { %8450 = vmatpush3.bf16.msra.mxu0 %v8449_v49 }
 0x303   :  { %8482 = vmatpush3.bf16.msra.mxu1 %v8481_v50  ;;  %8483 = vmatprep.subr.bf16.mxu0 %v8529_v26 }
 0x304   :  { %8495 = vmatprep.subr.bf16.mxu1 %v8529_v26 }
 0x305   :  { %4951 = vmatmul.mubr.f32.vlgmr.msra.gmra.mrb[46].mxu0 %v119_v6 }
 0x306   :  { %5021 = vmatmul.mubr.f32.vlgmr.msra.gmra.mrb[46].mxu1 %v121_v51  ;;  %8485 = vmatpush3.bf16.msra.mxu0 %v8484_v8 }
 0x307   :  { %8486 = vmatprep.subr.bf16.mxu0 %v8529_v26  ;;  %6933 = vmatprep.mubr.msk.f32.mxu0 %vm8530_vm0, %v8531_v45 }
 0x308   :  { %6944 = vmatprep.mubr.msk.f32.mxu1 %vm8530_vm0, %v8531_v45  ;;  %8497 = vmatpush3.bf16.msra.mxu1 %v8496_v28 }
 0x309   :  { %8498 = vmatprep.subr.bf16.mxu1 %v8529_v26 }
 0x30a   :  { %8488 = vmatpush3.bf16.msra.mxu0 %v8487_v10 }
 0x30b   :  { %8489 = vmatprep.subr.bf16.mxu0 %v8529_v26 }
 0x30e   :  { %8491 = vmatpush3.bf16.msra.mxu0 %v8490_v16 }
 0x30f   :  { %8492 = vmatprep.subr.bf16.mxu0 %v8529_v26 }
 0x312   :  { %8494 = vmatpush3.bf16.msra.mxu0 %v8493_v23 }
 0x318   :  { %v6445_v7 = vpop.f32.mrb[34].mxu0 }
 0x319   :  { %v6446_v53 = vpop.f32.mrb[35].mxu0  ;;  %v6480_v54 = vpop.f32.mrb[34].mxu1 }
 0x31a   :  { %v6447_v55 = vadd.f32 %v6446_v53, %v6445_v7  ;;  %v6481_v56 = vpop.f32.mrb[35].mxu1 }
 0x31b   :  { %v6482_v57 = vadd.f32 %v6481_v56, %v6480_v54 }
 0x31c   :  { %v4113_v13 = vadd.f32 %v6447_v55, %v4043_v48 }
 0x31e   :  { %v4183_v59 = vadd.f32 %v6482_v57, %v4113_v13 }
 0x338   :  { %v6515_v60 = vpop.f32.mrb[36].mxu0 }
 0x339   :  { %v6516_v61 = vpop.f32.mrb[37].mxu0  ;;  %v6550_v62 = vpop.f32.mrb[36].mxu1 }
 0x33a   :  { %v6517_v63 = vadd.f32 %v6516_v61, %v6515_v60  ;;  %v6551_v19 = vpop.f32.mrb[37].mxu1 }
 0x33b   :  { %v6552_v20 = vadd.f32 %v6551_v19, %v6550_v62  ;;  %v5119_v62 = vld [vmem:[%s13579_s5 + $0x10] sm:$0xff] }
 0x33c   :  { %v4253_v2 = vadd.f32 %v6517_v63, %v4183_v59  ;;  %v5120_v63 = vld [vmem:[%s13579_s5 + $0x18] sm:$0xff]  ;;  %s8505_s5 = scalar_lea.vmem %s5211_s24, 128 }
 0x33d   :  { %v8499_v19 = vpack.c.bf16 %v5120_v63, %v5119_v62  ;;  %p8506_p0 = scmp.ne.s32.totalorder %s5211_s24, %s8505_s5  ;;  %p8511_p2 = scmp.lt.s32.totalorder %s8505_s5, %s8505_s5 }
 0x33e   :  { %v4323_v3 = vadd.f32 %v6552_v20, %v4253_v2  ;;  %v5219_v20 = vld [vmem:[%s13578_s4] ss:$0 sm:$0xff] }
 0x33f   :  { %8500 = vmatpush3.bf16.msra.mxu1 %v8499_v19  ;;  %p8512_p3 = por %p8511_p2, %p8510_p1 }
 0x341   :  { %p8513_p4 = pnand %p8512_p3, %p8506_p0 }
 0x358   :  { %v6585_v11 = vpop.f32.mrb[38].mxu0 }
 0x359   :  { %v6586_v14 = vpop.f32.mrb[39].mxu0  ;;  %v6620_v15 = vpop.f32.mrb[38].mxu1 }
 0x35a   :  { %v6587_v17 = vadd.f32 %v6586_v14, %v6585_v11  ;;  %v6621_v18 = vpop.f32.mrb[39].mxu1 }
 0x35b   :  { %v6622_v38 = vadd.f32 %v6621_v18, %v6620_v15 }
 0x35c   :  { %v4393_v40 = vadd.f32 %v6587_v17, %v4323_v3 }
 0x35e   :  { %v4463_v24 = vadd.f32 %v6622_v38, %v4393_v40 }
 0x378   :  { %v6655_v29 = vpop.f32.mrb[40].mxu0 }
 0x379   :  { %v6656_v30 = vpop.f32.mrb[41].mxu0  ;;  %v6690_v31 = vpop.f32.mrb[40].mxu1 }
 0x37a   :  { %v6657_v52 = vadd.f32 %v6656_v30, %v6655_v29  ;;  %v6691_v33 = vpop.f32.mrb[41].mxu1 }
 0x37b   :  { %v6692_v34 = vadd.f32 %v6691_v33, %v6690_v31 }
 0x37c   :  { %v4533_v35 = vadd.f32 %v6657_v52, %v4463_v24 }
 0x37e   :  { %v4603_v36 = vadd.f32 %v6692_v34, %v4533_v35 }
 0x398   :  { %v6725_v37 = vpop.f32.mrb[42].mxu0 }
 0x399   :  { %v6726_v58 = vpop.f32.mrb[43].mxu0  ;;  %v6760_v39 = vpop.f32.mrb[42].mxu1 }
 0x39a   :  { %v6727_v41 = vadd.f32 %v6726_v58, %v6725_v37  ;;  %v6761_v42 = vpop.f32.mrb[43].mxu1 }
 0x39b   :  { %v6762_v43 = vadd.f32 %v6761_v42, %v6760_v39 }
 0x39c   :  { %v4673_v44 = vadd.f32 %v6727_v41, %v4603_v36 }
 0x39e   :  { %v4743_v0 = vadd.f32 %v6762_v43, %v4673_v44 }
 0x3b8   :  { %v6795_v1 = vpop.f32.mrb[44].mxu0 }
 0x3b9   :  { %v6796_v47 = vpop.f32.mrb[45].mxu0  ;;  %v6830_v48 = vpop.f32.mrb[44].mxu1 }
 0x3ba   :  { %v6797_v49 = vadd.f32 %v6796_v47, %v6795_v1  ;;  %v6831_v50 = vpop.f32.mrb[45].mxu1 }
 0x3bb   :  { %v6832_v6 = vadd.f32 %v6831_v50, %v6830_v48 }
 0x3bc   :  { %v4813_v51 = vadd.f32 %v6797_v49, %v4743_v0 }
 0x3be   :  { %v4883_v7 = vadd.f32 %v6832_v6, %v4813_v51 }
 0x3d8   :  { %v6865_v53 = vpop.f32.mrb[46].mxu0 }
 0x3d9   :  { %v6866_v54 = vpop.f32.mrb[47].mxu0  ;;  %v6900_v55 = vpop.f32.mrb[46].mxu1 }
 0x3da   :  { %v6867_v56 = vadd.f32 %v6866_v54, %v6865_v53  ;;  %v6901_v57 = vpop.f32.mrb[47].mxu1 }
 0x3db   :  { %v6902_v13 = vadd.f32 %v6901_v57, %v6900_v55 }
 0x3dc   :  { %v4953_v59 = vadd.f32 %v6867_v56, %v4883_v7 }
 0x3de   :  { %v5023_v60 = vadd.f32 %v6902_v13, %v4953_v59 }
 0x3e0   :  { %v5026_v61 = vmax.f32 %v5023_v60, 0.0 }
 0x3e2   :  { %6934 = vmatmul.mubr.msk.f32.vlgmr.msra.gmra.mrb[48].mxu0 %vm5042_vm1, %v5026_v61 }
 0x4b5   :  { %v5112_v2 = vpop.f32.mrb[48].mxu0 }
 0x4b6   :  { %v5113_v3 = vadd.f32 %v5219_v20, %v5112_v2  ;;  %v6935_v4 = vpop.f32.mrb[49].mxu0 }
 0x4b8   :  { %v5116_v5 = vmax.f32 %v5113_v3, 0.0 }
 0x4ba   :  { %6945 = vmatmul.mubr.msk.f32.vlgmr.msra.gmra.mrb[48].mxu1 %vm5128_vm2, %v5116_v5 }
 0x58d   :  { %v5198_v26 = vpop.f32.mrb[48].mxu1 }
 0x58e   :  { %v5199_v8 = vadd.f32 %v5221_v25, %v5198_v26  ;;  %v6946_v9 = vpop.f32.mrb[49].mxu1 }
 0x590   :  { %5203 = vst.msk [vmem:[#allocation2] sm:$0xff] %vm5202_vm3, %v5199_v8 }
 0x591   :  { %8516 = shalt.err (!%p8513_p4)
}
 0x592   :  { %s8517_s26 = scalar_lea.hbm %s13581_s7, 128 }
 0x593   :  { %p8518_p5 = scmp.ne.s32.totalorder %s13581_s7, %s8517_s26  ;;  %p8521_p6 = scmp.lt.u32.totalorder %s8517_s26, %s13581_s7 }
 0x595   :  { %p8523_p7 = pnand %p8521_p6, %p8518_p5 }
 0x597   :  { %8526 = shalt.err (!%p8523_p7)
}
 0x598   :  { %5213 = dma.vmem_to_hbm [thread:$0]  %s5211_s24, 128, %s13581_s7, [#allocation3]  }
 0x599   :  { %8527 = dma.done.wait [#allocation3], 128  }
 0x59a   :  { %8528 = vsyncadd [#allocation3], 4294967168 }
 0x59b   :  { %5217 = vsyncpa [#allocation3], 1 }

</bundles_post_ra>
